<compile_context>
chip_gen: v6e
topology: v6e:2x2x1
jax: 0.10.0
libtpu: 0.0.40
codegen_flags: <defaults>
</compile_context>

<pallas_src>
import functools

import jax
import jax.numpy as jnp
from jax.experimental import pallas as pl
from jax.experimental.pallas import tpu as pltpu


def _round_up(x, m):
    return (x + m - 1) // m * m


_VMEM_LIMIT = 32 * 1024 * 1024   # do NOT raise toward 128 MiB: v7x has 64 MiB
_K = 5                           # conv kernel size
_HS2 = 24                        # stored rows / image of the layer-2 input slab
_LANE2 = 384                     # stored lanes / image of the layer-2 input slab


def _pick_tb(batch):
    """Images per grid step: amortize per-step overhead but keep >=2 grid
    steps so dimension_semantics=("parallel",) still uses both v7x TCs."""
    tb = 8
    while tb > 1 and _round_up(batch, tb) // tb < 2:
        tb //= 2
    return tb


# ---------------------------------------------------------------------------
# Kernel 1: conv5x5(1->16) + BN(eval) + ReLU + 2x2 pool for TB images per step.
# Writes the *padded* layer-2 input slab (zero halo) directly.
# ---------------------------------------------------------------------------
def _layer1_kernel(x_ref, wband_ref, scale_ref, shift_ref, selh_ref, selw_ref,
                   o_ref, *, K, M):
    x = x_ref[...]                                        # (TB*32, 32) bf16
    # banded conv: one matmul per kernel row dh, f32 accumulation on the MXU
    acc = jnp.dot(x[0:M, :], wband_ref[0], preferred_element_type=jnp.float32)
    for dh in range(1, K):
        acc = acc + jnp.dot(x[dh:dh + M, :], wband_ref[dh],
                            preferred_element_type=jnp.float32)
    # fused conv-bias + eval BatchNorm affine + ReLU (f32 epilogue)
    y = jnp.maximum(acc * scale_ref[...] + shift_ref[...], 0.0)   # (M, 448)
    yb = y.astype(jnp.bfloat16)
    # H-pool + scatter into padded slab rows (one-hot left matmuls, exact)
    yh = jnp.maximum(
        jnp.dot(selh_ref[0], yb, preferred_element_type=jnp.float32),
        jnp.dot(selh_ref[1], yb, preferred_element_type=jnp.float32),
    ).astype(jnp.bfloat16)                                # (TB*24, 448)
    # W-pool + scatter into padded slab lanes (one-hot right matmuls, exact)
    o_ref[...] = jnp.maximum(
        jnp.dot(yh, selw_ref[0], preferred_element_type=jnp.float32),
        jnp.dot(yh, selw_ref[1], preferred_element_type=jnp.float32),
    ).astype(jnp.bfloat16)                                # (TB*24, 384)


# ---------------------------------------------------------------------------
# Kernel 2: conv5x5(16->32) + BN(eval) + ReLU + 2x2 pool + FC, TB images/step.
# Pool rows come out h-major (group h holds all TB images), so the FC is seven
# contiguous-row-slice matmuls accumulated into the logits.
# ---------------------------------------------------------------------------
def _layer2_fc_kernel(s_ref, wband_ref, scale_ref, shift_ref, selh_ref,
                      selw_ref, wfc_ref, bias_ref, o_ref, *, K, M, TB):
    s = s_ref[...]                                        # (TB*24, 384) bf16
    acc = jnp.dot(s[0:M, :], wband_ref[0], preferred_element_type=jnp.float32)
    for dh in range(1, K):
        acc = acc + jnp.dot(s[dh:dh + M, :], wband_ref[dh],
                            preferred_element_type=jnp.float32)
    y = jnp.maximum(acc * scale_ref[...] + shift_ref[...], 0.0)   # (M, 448)
    yb = y.astype(jnp.bfloat16)
    yh = jnp.maximum(
        jnp.dot(selh_ref[0], yb, preferred_element_type=jnp.float32),
        jnp.dot(selh_ref[1], yb, preferred_element_type=jnp.float32),
    ).astype(jnp.bfloat16)                                # (TB*7, 448)
    pooled = jnp.maximum(
        jnp.dot(yh, selw_ref[0], preferred_element_type=jnp.float32),
        jnp.dot(yh, selw_ref[1], preferred_element_type=jnp.float32),
    ).astype(jnp.bfloat16)                                # (TB*7, 224) h-major
    # fused FC: logits[b] = sum_h pooled[h*TB + b] @ wfc[h] + bias
    logits = jnp.dot(pooled[0:TB, :], wfc_ref[0],
                     preferred_element_type=jnp.float32)
    for h in range(1, 7):
        logits = logits + jnp.dot(pooled[h * TB:(h + 1) * TB, :], wfc_ref[h],
                                  preferred_element_type=jnp.float32)
    o_ref[0] = logits + bias_ref[...]                     # (TB, 128) f32


# ---------------------------------------------------------------------------
# One-time (per parameter set) construction of grid-invariant kernel operands.
# ---------------------------------------------------------------------------
def _banded_weight(w, H, W, Cin, Cout):
    # wband[dh, wp*Cin+ci, w*Cout+co] = w[co, ci, dh, wp-w] for 0 <= wp-w < K
    K = _K
    Wp = W + K - 1
    wt = jnp.transpose(w, (2, 3, 1, 0)).astype(jnp.float32)        # (dh,dw,ci,co)
    band = (jnp.arange(Wp)[None, :, None]
            == jnp.arange(W)[None, None, :]
            + jnp.arange(K)[:, None, None]).astype(jnp.float32)     # (dw,wp,w)
    wband = jnp.einsum("dpw,hdcn->hpcwn", band, wt)
    return wband.reshape(K, Wp * Cin, W * Cout)


def _bn_affine(conv_b, gamma, beta, mean, var, W, Cout, eps=1e-5):
    scale = gamma / jnp.sqrt(var + eps)
    shift = (conv_b - mean) * scale + beta
    return (jnp.tile(scale, W).reshape(1, W * Cout).astype(jnp.float32),
            jnp.tile(shift, W).reshape(1, W * Cout).astype(jnp.float32))


def _layer1_consts(p, TB):
    H, W, Cin, Cout = 28, 28, 1, 16
    Hp = H + _K - 1                                   # 32 padded input rows
    M = TB * Hp - (_K - 1)                            # conv output rows / step
    wband = _banded_weight(p["w1"], H, W, Cin, Cout).astype(jnp.bfloat16)
    scale2, shift2 = _bn_affine(p["b1"], p["g1"], p["beta1"], p["m1"], p["v1"],
                                W, Cout)
    # H-pool selector + embed into padded-slab rows (halo rows stay all-zero)
    r = jnp.arange(TB * _HS2)
    pidx = jnp.arange(M)
    b_r, ho = r // _HS2, (r % _HS2) - 2
    valid = (ho >= 0) & (ho < H // 2)
    src0 = b_r * Hp + 2 * ho
    sel_h = jnp.stack([
        valid[:, None] & (pidx[None, :] == src0[:, None]),
        valid[:, None] & (pidx[None, :] == src0[:, None] + 1),
    ]).astype(jnp.bfloat16)                           # (2, TB*24, M)
    # W-pool selector + embed into padded-slab lanes (halo/pad lanes all-zero)
    j = jnp.arange(W * Cout)                          # conv lane: w*16 + c
    q = jnp.arange(_LANE2)                            # slab lane: wp*16 + c
    wo = (q // Cout) - 2
    valid_q = (wo >= 0) & (wo < W // 2)
    same_c = (j % Cout)[:, None] == (q % Cout)[None, :]
    sel_w = jnp.stack([
        same_c & valid_q[None, :] & ((j // Cout)[:, None] == 2 * wo[None, :]),
        same_c & valid_q[None, :] & ((j // Cout)[:, None] == 2 * wo[None, :] + 1),
    ]).astype(jnp.bfloat16)                           # (2, 448, 384)
    return wband, scale2, shift2, sel_h, sel_w


def _layer2_consts(p, TB):
    H, W, Cin, Cout = 14, 14, 16, 32
    Wp = W + _K - 1                                   # 18 padded columns
    M = TB * _HS2 - (_K - 1)
    wband = _banded_weight(p["w2"], H, W, Cin, Cout)  # (5, 288, 448)
    wband = jnp.pad(wband, ((0, 0), (0, _LANE2 - Wp * Cin), (0, 0)))
    wband = wband.astype(jnp.bfloat16)                # (5, 384, 448)
    scale2, shift2 = _bn_affine(p["b2"], p["g2"], p["beta2"], p["m2"], p["v2"],
                                W, Cout)
    # H-pool selector, rows ordered h-major so the FC can slice row groups
    Ho, Wo = H // 2, W // 2
    r = jnp.arange(TB * Ho)
    pidx = jnp.arange(M)
    h_r, b_r = r // TB, r % TB
    src0 = b_r * _HS2 + 2 * h_r
    sel_h = jnp.stack([
        pidx[None, :] == src0[:, None],
        pidx[None, :] == src0[:, None] + 1,
    ]).astype(jnp.bfloat16)                           # (2, TB*7, M)
    j = jnp.arange(W * Cout)
    q = jnp.arange(Wo * Cout)
    same_c = (j % Cout)[:, None] == (q % Cout)[None, :]
    sel_w = jnp.stack([
        same_c & ((j // Cout)[:, None] == 2 * (q // Cout)[None, :]),
        same_c & ((j // Cout)[:, None] == 2 * (q // Cout)[None, :] + 1),
    ]).astype(jnp.bfloat16)                           # (2, 448, 224)
    return wband, scale2, shift2, sel_h, sel_w


def _fc_consts(p):
    num_out = p["wfc"].shape[0]
    NP = _round_up(num_out, 128)
    # PyTorch flattens (c, h, w); activations are (h, w, c) -> fold into weight
    w = jnp.transpose(p["wfc"].reshape(num_out, 32, 7, 7), (2, 3, 1, 0))
    w = w.reshape(7, 7 * 32, num_out)
    w = jnp.pad(w, ((0, 0), (0, 0), (0, NP - num_out))).astype(jnp.bfloat16)
    b = jnp.pad(p["bfc"], (0, NP - num_out)).reshape(1, NP).astype(jnp.float32)
    return w, b                                       # (7, 224, 128), (1, 128)


def prepare_params(p, TB):
    """Precompute all grid-invariant kernel operands once per parameter set."""
    wband1, sc1, sh1, selh1, selw1 = _layer1_consts(p, TB)
    wband2, sc2, sh2, selh2, selw2 = _layer2_consts(p, TB)
    wfc, bias_fc = _fc_consts(p)
    return dict(wband1=wband1, scale1=sc1, shift1=sh1, selh1=selh1, selw1=selw1,
                wband2=wband2, scale2=sc2, shift2=sh2, selh2=selh2, selw2=selw2,
                wfc=wfc, bias_fc=bias_fc)


# ---------------------------------------------------------------------------
# Full forward pass (matches ConvNet.forward, BatchNorm in eval mode)
# ---------------------------------------------------------------------------
def convnet_forward(x_nchw, prepped, num_classes=10):
    B = x_nchw.shape[0]
    TB = prepped["selh2"].shape[1] // 7               # static (trace time)
    NP = prepped["wfc"].shape[2]
    Bp = _round_up(B, TB)
    nsteps = Bp // TB
    M1 = TB * 32 - (_K - 1)
    M2 = TB * _HS2 - (_K - 1)

    # layer-1 input: spatially padded, bf16, images stacked along sublanes
    x = x_nchw[:, 0, :, :]
    x = jnp.pad(x, ((0, Bp - B), (2, 2), (2, 2))).astype(jnp.bfloat16)
    x = x.reshape(Bp * 32, 32)

    flops1 = nsteps * (2 * _K * M1 * 32 * 448
                       + 4 * (TB * _HS2) * M1 * 448
                       + 4 * (TB * _HS2) * 448 * _LANE2)
    bytes1 = (x.size * 2 + prepped["wband1"].size * 2
              + prepped["selh1"].size * 2 + prepped["selw1"].size * 2
              + 2 * 448 * 4 + Bp * _HS2 * _LANE2 * 2)

    slab = pl.pallas_call(
        functools.partial(_layer1_kernel, K=_K, M=M1),
        out_shape=jax.ShapeDtypeStruct((Bp * _HS2, _LANE2), jnp.bfloat16),
        grid=(nsteps,),
        in_specs=[
            pl.BlockSpec((TB * 32, 32), lambda i: (i, 0)),
            pl.BlockSpec(prepped["wband1"].shape, lambda i: (0, 0, 0)),
            pl.BlockSpec((1, 448), lambda i: (0, 0)),
            pl.BlockSpec((1, 448), lambda i: (0, 0)),
            pl.BlockSpec(prepped["selh1"].shape, lambda i: (0, 0, 0)),
            pl.BlockSpec(prepped["selw1"].shape, lambda i: (0, 0, 0)),
        ],
        out_specs=pl.BlockSpec((TB * _HS2, _LANE2), lambda i: (i, 0)),
        compiler_params=pltpu.CompilerParams(
            dimension_semantics=("parallel",), vmem_limit_bytes=_VMEM_LIMIT),
        cost_estimate=pl.CostEstimate(flops=flops1, transcendentals=0,
                                      bytes_accessed=bytes1),
    )(x, prepped["wband1"], prepped["scale1"], prepped["shift1"],
      prepped["selh1"], prepped["selw1"])

    flops2 = nsteps * (2 * _K * M2 * _LANE2 * 448
                       + 4 * (TB * 7) * M2 * 448
                       + 4 * (TB * 7) * 448 * 224
                       + 2 * 7 * TB * 224 * NP)
    bytes2 = (Bp * _HS2 * _LANE2 * 2 + prepped["wband2"].size * 2
              + prepped["selh2"].size * 2 + prepped["selw2"].size * 2
              + prepped["wfc"].size * 2 + 2 * 448 * 4 + NP * 4
              + nsteps * TB * NP * 4)

    logits = pl.pallas_call(
        functools.partial(_layer2_fc_kernel, K=_K, M=M2, TB=TB),
        out_shape=jax.ShapeDtypeStruct((nsteps, TB, NP), jnp.float32),
        grid=(nsteps,),
        in_specs=[
            pl.BlockSpec((TB * _HS2, _LANE2), lambda i: (i, 0)),
            pl.BlockSpec(prepped["wband2"].shape, lambda i: (0, 0, 0)),
            pl.BlockSpec((1, 448), lambda i: (0, 0)),
            pl.BlockSpec((1, 448), lambda i: (0, 0)),
            pl.BlockSpec(prepped["selh2"].shape, lambda i: (0, 0, 0)),
            pl.BlockSpec(prepped["selw2"].shape, lambda i: (0, 0, 0)),
            pl.BlockSpec(prepped["wfc"].shape, lambda i: (0, 0, 0)),
            pl.BlockSpec((1, NP), lambda i: (0, 0)),
        ],
        out_specs=pl.BlockSpec((1, TB, NP), lambda i: (i, 0, 0)),
        compiler_params=pltpu.CompilerParams(
            dimension_semantics=("parallel",), vmem_limit_bytes=_VMEM_LIMIT),
        cost_estimate=pl.CostEstimate(flops=flops2, transcendentals=0,
                                      bytes_accessed=bytes2),
    )(slab, prepped["wband2"], prepped["scale2"], prepped["shift2"],
      prepped["selh2"], prepped["selw2"], prepped["wfc"], prepped["bias_fc"])

    return logits.reshape(Bp, NP)[:B, :num_classes]


def init_params(key, num_classes=10):
    ks = jax.random.split(key, 8)
    return {
        # layer1: Conv2d(1, 16, 5, padding=2) + BatchNorm2d(16)
        "w1": jax.random.normal(ks[0], (16, 1, 5, 5), jnp.float32) * 0.1,
        "b1": jax.random.normal(ks[1], (16,), jnp.float32) * 0.1,
        "g1": jnp.ones((16,), jnp.float32),
        "beta1": jnp.zeros((16,), jnp.float32),
        "m1": jax.random.normal(ks[2], (16,), jnp.float32) * 0.01,
        "v1": jnp.abs(jax.random.normal(ks[3], (16,), jnp.float32)) * 0.1 + 1.0,
        # layer2: Conv2d(16, 32, 5, padding=2) + BatchNorm2d(32)
        "w2": jax.random.normal(ks[4], (32, 16, 5, 5), jnp.float32) * 0.05,
        "b2": jax.random.normal(ks[5], (32,), jnp.float32) * 0.1,
        "g2": jnp.ones((32,), jnp.float32),
        "beta2": jnp.zeros((32,), jnp.float32),
        "m2": jax.random.normal(ks[6], (32,), jnp.float32) * 0.01,
        "v2": jnp.abs(jax.random.normal(ks[7], (32,), jnp.float32)) * 0.1 + 1.0,
        # fc: Linear(7*7*32, num_classes)
        "wfc": jax.random.normal(jax.random.PRNGKey(42),
                                 (num_classes, 7 * 7 * 32), jnp.float32) * 0.02,
        "bfc": jnp.zeros((num_classes,), jnp.float32),
    }
    # TODO(synk): BatchNorm is implemented in eval mode only (running stats
    # folded into scale/shift); training-mode batch statistics are not lowered.


if __name__ == "__main__":
    key = jax.random.PRNGKey(0)
    k_in, k_par = jax.random.split(key)
    # ConvNet's fc layer (7*7*32) implies 28x28 single-channel input.
    x = jax.random.normal(k_in, (2, 1, 28, 28), jnp.float32)
    params = init_params(k_par, num_classes=10)

    TB = _pick_tb(x.shape[0])                 # images per grid step
    prepped = prepare_params(params, TB)      # built once per parameter set

    logits = jax.jit(convnet_forward)(x, prepped)
    jax.block_until_ready(logits)
    assert logits.shape == (2, 10), logits.shape
    print("KERNEL_OK")
</pallas_src>

<mosaic_0001>
module attributes {stable_mosaic.version = 11 : i64} {
  func.func @_layer1_kernel(%arg0: i32, %arg1: memref<32x32xbf16, #tpu.memory_space<vmem>>, %arg2: memref<5x32x448xbf16, #tpu.memory_space<vmem>>, %arg3: memref<1x448xf32, #tpu.memory_space<vmem>>, %arg4: memref<1x448xf32, #tpu.memory_space<vmem>>, %arg5: memref<2x24x28xbf16, #tpu.memory_space<vmem>>, %arg6: memref<2x448x384xbf16, #tpu.memory_space<vmem>>, %arg7: memref<24x384xbf16, #tpu.memory_space<vmem>>) attributes {dimension_semantics = [#tpu.dimension_semantics<parallel>], iteration_bounds = array<i64: 2>, scalar_prefetch = 0 : i64, scratch_operands = 0 : i64, tpu.core_type = #tpu.core_type<tc>, window_params = [{transform_indices = @transform_0, window_bounds = array<i64: 32, 32>}, {pipeline_mode = #tpu.pipeline_mode<synchronous>, transform_indices = @transform_1, window_bounds = array<i64: 5, 32, 448>}, {pipeline_mode = #tpu.pipeline_mode<synchronous>, transform_indices = @transform_2, window_bounds = array<i64: 1, 448>}, {pipeline_mode = #tpu.pipeline_mode<synchronous>, transform_indices = @transform_3, window_bounds = array<i64: 1, 448>}, {pipeline_mode = #tpu.pipeline_mode<synchronous>, transform_indices = @transform_4, window_bounds = array<i64: 2, 24, 28>}, {pipeline_mode = #tpu.pipeline_mode<synchronous>, transform_indices = @transform_5, window_bounds = array<i64: 2, 448, 384>}, {transform_indices = @transform_6, window_bounds = array<i64: 24, 384>}]} {
    %c0 = arith.constant 0 : index
    %c0_0 = arith.constant 0 : index
    %0 = vector.load %arg1[%c0, %c0_0] : memref<32x32xbf16, #tpu.memory_space<vmem>>, vector<32x32xbf16>
    %1 = vector.extract_strided_slice %0 {offsets = [0, 0], sizes = [28, 32], strides = [1, 1]} : vector<32x32xbf16> to vector<28x32xbf16>
    %c0_1 = arith.constant 0 : index
    %c0_2 = arith.constant 0 : index
    %c0_3 = arith.constant 0 : index
    %2 = vector.load %arg2[%c0_1, %c0_2, %c0_3] : memref<5x32x448xbf16, #tpu.memory_space<vmem>>, vector<1x32x448xbf16>
    %3 = vector.shape_cast %2 : vector<1x32x448xbf16> to vector<32x448xbf16>
    %cst = arith.constant dense<0.000000e+00> : vector<28x448xf32>
    %4 = tpu.matmul %1, %3, %cst {dimension_numbers = #tpu.dot_dimension_numbers<[1], [0], [0], [1], [0, 0, 1, 1], [], []>} : vector<28x32xbf16>, vector<32x448xbf16>, vector<28x448xf32> -> vector<28x448xf32>
    %5 = vector.extract_strided_slice %0 {offsets = [1, 0], sizes = [28, 32], strides = [1, 1]} : vector<32x32xbf16> to vector<28x32xbf16>
    %c1 = arith.constant 1 : index
    %c0_4 = arith.constant 0 : index
    %c0_5 = arith.constant 0 : index
    %6 = vector.load %arg2[%c1, %c0_4, %c0_5] : memref<5x32x448xbf16, #tpu.memory_space<vmem>>, vector<1x32x448xbf16>
    %7 = vector.shape_cast %6 : vector<1x32x448xbf16> to vector<32x448xbf16>
    %cst_6 = arith.constant dense<0.000000e+00> : vector<28x448xf32>
    %8 = tpu.matmul %5, %7, %cst_6 {dimension_numbers = #tpu.dot_dimension_numbers<[1], [0], [0], [1], [0, 0, 1, 1], [], []>} : vector<28x32xbf16>, vector<32x448xbf16>, vector<28x448xf32> -> vector<28x448xf32>
    %9 = arith.addf %4, %8 : vector<28x448xf32>
    %10 = vector.extract_strided_slice %0 {offsets = [2, 0], sizes = [28, 32], strides = [1, 1]} : vector<32x32xbf16> to vector<28x32xbf16>
    %c2 = arith.constant 2 : index
    %c0_7 = arith.constant 0 : index
    %c0_8 = arith.constant 0 : index
    %11 = vector.load %arg2[%c2, %c0_7, %c0_8] : memref<5x32x448xbf16, #tpu.memory_space<vmem>>, vector<1x32x448xbf16>
    %12 = vector.shape_cast %11 : vector<1x32x448xbf16> to vector<32x448xbf16>
    %cst_9 = arith.constant dense<0.000000e+00> : vector<28x448xf32>
    %13 = tpu.matmul %10, %12, %cst_9 {dimension_numbers = #tpu.dot_dimension_numbers<[1], [0], [0], [1], [0, 0, 1, 1], [], []>} : vector<28x32xbf16>, vector<32x448xbf16>, vector<28x448xf32> -> vector<28x448xf32>
    %14 = arith.addf %9, %13 : vector<28x448xf32>
    %15 = vector.extract_strided_slice %0 {offsets = [3, 0], sizes = [28, 32], strides = [1, 1]} : vector<32x32xbf16> to vector<28x32xbf16>
    %c3 = arith.constant 3 : index
    %c0_10 = arith.constant 0 : index
    %c0_11 = arith.constant 0 : index
    %16 = vector.load %arg2[%c3, %c0_10, %c0_11] : memref<5x32x448xbf16, #tpu.memory_space<vmem>>, vector<1x32x448xbf16>
    %17 = vector.shape_cast %16 : vector<1x32x448xbf16> to vector<32x448xbf16>
    %cst_12 = arith.constant dense<0.000000e+00> : vector<28x448xf32>
    %18 = tpu.matmul %15, %17, %cst_12 {dimension_numbers = #tpu.dot_dimension_numbers<[1], [0], [0], [1], [0, 0, 1, 1], [], []>} : vector<28x32xbf16>, vector<32x448xbf16>, vector<28x448xf32> -> vector<28x448xf32>
    %19 = arith.addf %14, %18 : vector<28x448xf32>
    %20 = vector.extract_strided_slice %0 {offsets = [4, 0], sizes = [28, 32], strides = [1, 1]} : vector<32x32xbf16> to vector<28x32xbf16>
    %c4 = arith.constant 4 : index
    %c0_13 = arith.constant 0 : index
    %c0_14 = arith.constant 0 : index
    %21 = vector.load %arg2[%c4, %c0_13, %c0_14] : memref<5x32x448xbf16, #tpu.memory_space<vmem>>, vector<1x32x448xbf16>
    %22 = vector.shape_cast %21 : vector<1x32x448xbf16> to vector<32x448xbf16>
    %cst_15 = arith.constant dense<0.000000e+00> : vector<28x448xf32>
    %23 = tpu.matmul %20, %22, %cst_15 {dimension_numbers = #tpu.dot_dimension_numbers<[1], [0], [0], [1], [0, 0, 1, 1], [], []>} : vector<28x32xbf16>, vector<32x448xbf16>, vector<28x448xf32> -> vector<28x448xf32>
    %24 = arith.addf %19, %23 : vector<28x448xf32>
    %c0_16 = arith.constant 0 : index
    %c0_17 = arith.constant 0 : index
    %25 = vector.load %arg3[%c0_16, %c0_17] : memref<1x448xf32, #tpu.memory_space<vmem>>, vector<1x448xf32>
    %26 = vector.broadcast %25 : vector<1x448xf32> to vector<28x448xf32>
    %27 = arith.mulf %24, %26 : vector<28x448xf32>
    %c0_18 = arith.constant 0 : index
    %c0_19 = arith.constant 0 : index
    %28 = vector.load %arg4[%c0_18, %c0_19] : memref<1x448xf32, #tpu.memory_space<vmem>>, vector<1x448xf32>
    %29 = vector.broadcast %28 : vector<1x448xf32> to vector<28x448xf32>
    %30 = arith.addf %27, %29 : vector<28x448xf32>
    %cst_20 = arith.constant 0.000000e+00 : f32
    %31 = vector.broadcast %cst_20 : f32 to vector<28x448xf32>
    %32 = arith.maximumf %30, %31 : vector<28x448xf32>
    %33 = arith.truncf %32 : vector<28x448xf32> to vector<28x448xbf16>
    %c0_21 = arith.constant 0 : index
    %c0_22 = arith.constant 0 : index
    %c0_23 = arith.constant 0 : index
    %34 = vector.load %arg5[%c0_21, %c0_22, %c0_23] : memref<2x24x28xbf16, #tpu.memory_space<vmem>>, vector<1x24x28xbf16>
    %35 = vector.shape_cast %34 : vector<1x24x28xbf16> to vector<24x28xbf16>
    %cst_24 = arith.constant dense<0.000000e+00> : vector<24x448xf32>
    %36 = tpu.matmul %35, %33, %cst_24 {dimension_numbers = #tpu.dot_dimension_numbers<[1], [0], [0], [1], [0, 0, 1, 1], [], []>} : vector<24x28xbf16>, vector<28x448xbf16>, vector<24x448xf32> -> vector<24x448xf32>
    %c1_25 = arith.constant 1 : index
    %c0_26 = arith.constant 0 : index
    %c0_27 = arith.constant 0 : index
    %37 = vector.load %arg5[%c1_25, %c0_26, %c0_27] : memref<2x24x28xbf16, #tpu.memory_space<vmem>>, vector<1x24x28xbf16>
    %38 = vector.shape_cast %37 : vector<1x24x28xbf16> to vector<24x28xbf16>
    %cst_28 = arith.constant dense<0.000000e+00> : vector<24x448xf32>
    %39 = tpu.matmul %38, %33, %cst_28 {dimension_numbers = #tpu.dot_dimension_numbers<[1], [0], [0], [1], [0, 0, 1, 1], [], []>} : vector<24x28xbf16>, vector<28x448xbf16>, vector<24x448xf32> -> vector<24x448xf32>
    %40 = arith.maximumf %36, %39 : vector<24x448xf32>
    %41 = arith.truncf %40 : vector<24x448xf32> to vector<24x448xbf16>
    %c0_29 = arith.constant 0 : index
    %c0_30 = arith.constant 0 : index
    %c0_31 = arith.constant 0 : index
    %42 = vector.load %arg6[%c0_29, %c0_30, %c0_31] : memref<2x448x384xbf16, #tpu.memory_space<vmem>>, vector<1x448x384xbf16>
    %43 = vector.shape_cast %42 : vector<1x448x384xbf16> to vector<448x384xbf16>
    %cst_32 = arith.constant dense<0.000000e+00> : vector<24x384xf32>
    %44 = tpu.matmul %41, %43, %cst_32 {dimension_numbers = #tpu.dot_dimension_numbers<[1], [0], [0], [1], [0, 0, 1, 1], [], []>} : vector<24x448xbf16>, vector<448x384xbf16>, vector<24x384xf32> -> vector<24x384xf32>
    %c1_33 = arith.constant 1 : index
    %c0_34 = arith.constant 0 : index
    %c0_35 = arith.constant 0 : index
    %45 = vector.load %arg6[%c1_33, %c0_34, %c0_35] : memref<2x448x384xbf16, #tpu.memory_space<vmem>>, vector<1x448x384xbf16>
    %46 = vector.shape_cast %45 : vector<1x448x384xbf16> to vector<448x384xbf16>
    %cst_36 = arith.constant dense<0.000000e+00> : vector<24x384xf32>
    %47 = tpu.matmul %41, %46, %cst_36 {dimension_numbers = #tpu.dot_dimension_numbers<[1], [0], [0], [1], [0, 0, 1, 1], [], []>} : vector<24x448xbf16>, vector<448x384xbf16>, vector<24x384xf32> -> vector<24x384xf32>
    %48 = arith.maximumf %44, %47 : vector<24x384xf32>
    %49 = arith.truncf %48 : vector<24x384xf32> to vector<24x384xbf16>
    %c0_37 = arith.constant 0 : index
    %c0_38 = arith.constant 0 : index
    %50 = vector.load %arg7[%c0_37, %c0_38] : memref<24x384xbf16, #tpu.memory_space<vmem>>, vector<24x384xbf16>
    tpu.vector_store %arg7[%c0_37, %c0_38], %49 {strides = array<i32>} : memref<24x384xbf16, #tpu.memory_space<vmem>>, vector<24x384xbf16>,
    return
  }
  func.func @transform_0(%arg0: i32) -> (i32, i32) {
    %c0_i32 = arith.constant 0 : i32
    %c0_i32_0 = arith.constant 0 : i32
    return %arg0, %c0_i32 : i32, i32
  }
  func.func @transform_1(%arg0: i32) -> (i32, i32, i32) {
    %c0_i32 = arith.constant 0 : i32
    %c0_i32_0 = arith.constant 0 : i32
    %c0_i32_1 = arith.constant 0 : i32
    %c0_i32_2 = arith.constant 0 : i32
    return %c0_i32, %c0_i32_0, %c0_i32_1 : i32, i32, i32
  }
  func.func @transform_2(%arg0: i32) -> (i32, i32) {
    %c0_i32 = arith.constant 0 : i32
    %c0_i32_0 = arith.constant 0 : i32
    %c0_i32_1 = arith.constant 0 : i32
    return %c0_i32, %c0_i32_0 : i32, i32
  }
  func.func @transform_3(%arg0: i32) -> (i32, i32) {
    %c0_i32 = arith.constant 0 : i32
    %c0_i32_0 = arith.constant 0 : i32
    %c0_i32_1 = arith.constant 0 : i32
    return %c0_i32, %c0_i32_0 : i32, i32
  }
  func.func @transform_4(%arg0: i32) -> (i32, i32, i32) {
    %c0_i32 = arith.constant 0 : i32
    %c0_i32_0 = arith.constant 0 : i32
    %c0_i32_1 = arith.constant 0 : i32
    %c0_i32_2 = arith.constant 0 : i32
    return %c0_i32, %c0_i32_0, %c0_i32_1 : i32, i32, i32
  }
  func.func @transform_5(%arg0: i32) -> (i32, i32, i32) {
    %c0_i32 = arith.constant 0 : i32
    %c0_i32_0 = arith.constant 0 : i32
    %c0_i32_1 = arith.constant 0 : i32
    %c0_i32_2 = arith.constant 0 : i32
    return %c0_i32, %c0_i32_0, %c0_i32_1 : i32, i32, i32
  }
  func.func @transform_6(%arg0: i32) -> (i32, i32) {
    %c0_i32 = arith.constant 0 : i32
    %c0_i32_0 = arith.constant 0 : i32
    return %arg0, %c0_i32 : i32, i32
  }
}

module attributes {stable_mosaic.version = 11 : i64} {
  func.func @_layer2_fc_kernel(%arg0: i32, %arg1: memref<24x384xbf16, #tpu.memory_space<vmem>>, %arg2: memref<5x384x448xbf16, #tpu.memory_space<vmem>>, %arg3: memref<1x448xf32, #tpu.memory_space<vmem>>, %arg4: memref<1x448xf32, #tpu.memory_space<vmem>>, %arg5: memref<2x7x20xbf16, #tpu.memory_space<vmem>>, %arg6: memref<2x448x224xbf16, #tpu.memory_space<vmem>>, %arg7: memref<7x224x128xbf16, #tpu.memory_space<vmem>>, %arg8: memref<1x128xf32, #tpu.memory_space<vmem>>, %arg9: memref<1x1x128xf32, #tpu.memory_space<vmem>>) attributes {dimension_semantics = [#tpu.dimension_semantics<parallel>], iteration_bounds = array<i64: 2>, scalar_prefetch = 0 : i64, scratch_operands = 0 : i64, tpu.core_type = #tpu.core_type<tc>, window_params = [{transform_indices = @transform_0, window_bounds = array<i64: 24, 384>}, {pipeline_mode = #tpu.pipeline_mode<synchronous>, transform_indices = @transform_1, window_bounds = array<i64: 5, 384, 448>}, {pipeline_mode = #tpu.pipeline_mode<synchronous>, transform_indices = @transform_2, window_bounds = array<i64: 1, 448>}, {pipeline_mode = #tpu.pipeline_mode<synchronous>, transform_indices = @transform_3, window_bounds = array<i64: 1, 448>}, {pipeline_mode = #tpu.pipeline_mode<synchronous>, transform_indices = @transform_4, window_bounds = array<i64: 2, 7, 20>}, {pipeline_mode = #tpu.pipeline_mode<synchronous>, transform_indices = @transform_5, window_bounds = array<i64: 2, 448, 224>}, {pipeline_mode = #tpu.pipeline_mode<synchronous>, transform_indices = @transform_6, window_bounds = array<i64: 7, 224, 128>}, {pipeline_mode = #tpu.pipeline_mode<synchronous>, transform_indices = @transform_7, window_bounds = array<i64: 1, 128>}, {transform_indices = @transform_8, window_bounds = array<i64: 1, 1, 128>}]} {
    %c0 = arith.constant 0 : index
    %c0_0 = arith.constant 0 : index
    %0 = vector.load %arg1[%c0, %c0_0] : memref<24x384xbf16, #tpu.memory_space<vmem>>, vector<24x384xbf16>
    %1 = vector.extract_strided_slice %0 {offsets = [0, 0], sizes = [20, 384], strides = [1, 1]} : vector<24x384xbf16> to vector<20x384xbf16>
    %c0_1 = arith.constant 0 : index
    %c0_2 = arith.constant 0 : index
    %c0_3 = arith.constant 0 : index
    %2 = vector.load %arg2[%c0_1, %c0_2, %c0_3] : memref<5x384x448xbf16, #tpu.memory_space<vmem>>, vector<1x384x448xbf16>
    %3 = vector.shape_cast %2 : vector<1x384x448xbf16> to vector<384x448xbf16>
    %cst = arith.constant dense<0.000000e+00> : vector<20x448xf32>
    %4 = tpu.matmul %1, %3, %cst {dimension_numbers = #tpu.dot_dimension_numbers<[1], [0], [0], [1], [0, 0, 1, 1], [], []>} : vector<20x384xbf16>, vector<384x448xbf16>, vector<20x448xf32> -> vector<20x448xf32>
    %5 = vector.extract_strided_slice %0 {offsets = [1, 0], sizes = [20, 384], strides = [1, 1]} : vector<24x384xbf16> to vector<20x384xbf16>
    %c1 = arith.constant 1 : index
    %c0_4 = arith.constant 0 : index
    %c0_5 = arith.constant 0 : index
    %6 = vector.load %arg2[%c1, %c0_4, %c0_5] : memref<5x384x448xbf16, #tpu.memory_space<vmem>>, vector<1x384x448xbf16>
    %7 = vector.shape_cast %6 : vector<1x384x448xbf16> to vector<384x448xbf16>
    %cst_6 = arith.constant dense<0.000000e+00> : vector<20x448xf32>
    %8 = tpu.matmul %5, %7, %cst_6 {dimension_numbers = #tpu.dot_dimension_numbers<[1], [0], [0], [1], [0, 0, 1, 1], [], []>} : vector<20x384xbf16>, vector<384x448xbf16>, vector<20x448xf32> -> vector<20x448xf32>
    %9 = arith.addf %4, %8 : vector<20x448xf32>
    %10 = vector.extract_strided_slice %0 {offsets = [2, 0], sizes = [20, 384], strides = [1, 1]} : vector<24x384xbf16> to vector<20x384xbf16>
    %c2 = arith.constant 2 : index
    %c0_7 = arith.constant 0 : index
    %c0_8 = arith.constant 0 : index
    %11 = vector.load %arg2[%c2, %c0_7, %c0_8] : memref<5x384x448xbf16, #tpu.memory_space<vmem>>, vector<1x384x448xbf16>
    %12 = vector.shape_cast %11 : vector<1x384x448xbf16> to vector<384x448xbf16>
    %cst_9 = arith.constant dense<0.000000e+00> : vector<20x448xf32>
    %13 = tpu.matmul %10, %12, %cst_9 {dimension_numbers = #tpu.dot_dimension_numbers<[1], [0], [0], [1], [0, 0, 1, 1], [], []>} : vector<20x384xbf16>, vector<384x448xbf16>, vector<20x448xf32> -> vector<20x448xf32>
    %14 = arith.addf %9, %13 : vector<20x448xf32>
    %15 = vector.extract_strided_slice %0 {offsets = [3, 0], sizes = [20, 384], strides = [1, 1]} : vector<24x384xbf16> to vector<20x384xbf16>
    %c3 = arith.constant 3 : index
    %c0_10 = arith.constant 0 : index
    %c0_11 = arith.constant 0 : index
    %16 = vector.load %arg2[%c3, %c0_10, %c0_11] : memref<5x384x448xbf16, #tpu.memory_space<vmem>>, vector<1x384x448xbf16>
    %17 = vector.shape_cast %16 : vector<1x384x448xbf16> to vector<384x448xbf16>
    %cst_12 = arith.constant dense<0.000000e+00> : vector<20x448xf32>
    %18 = tpu.matmul %15, %17, %cst_12 {dimension_numbers = #tpu.dot_dimension_numbers<[1], [0], [0], [1], [0, 0, 1, 1], [], []>} : vector<20x384xbf16>, vector<384x448xbf16>, vector<20x448xf32> -> vector<20x448xf32>
    %19 = arith.addf %14, %18 : vector<20x448xf32>
    %20 = vector.extract_strided_slice %0 {offsets = [4, 0], sizes = [20, 384], strides = [1, 1]} : vector<24x384xbf16> to vector<20x384xbf16>
    %c4 = arith.constant 4 : index
    %c0_13 = arith.constant 0 : index
    %c0_14 = arith.constant 0 : index
    %21 = vector.load %arg2[%c4, %c0_13, %c0_14] : memref<5x384x448xbf16, #tpu.memory_space<vmem>>, vector<1x384x448xbf16>
    %22 = vector.shape_cast %21 : vector<1x384x448xbf16> to vector<384x448xbf16>
    %cst_15 = arith.constant dense<0.000000e+00> : vector<20x448xf32>
    %23 = tpu.matmul %20, %22, %cst_15 {dimension_numbers = #tpu.dot_dimension_numbers<[1], [0], [0], [1], [0, 0, 1, 1], [], []>} : vector<20x384xbf16>, vector<384x448xbf16>, vector<20x448xf32> -> vector<20x448xf32>
    %24 = arith.addf %19, %23 : vector<20x448xf32>
    %c0_16 = arith.constant 0 : index
    %c0_17 = arith.constant 0 : index
    %25 = vector.load %arg3[%c0_16, %c0_17] : memref<1x448xf32, #tpu.memory_space<vmem>>, vector<1x448xf32>
    %26 = vector.broadcast %25 : vector<1x448xf32> to vector<20x448xf32>
    %27 = arith.mulf %24, %26 : vector<20x448xf32>
    %c0_18 = arith.constant 0 : index
    %c0_19 = arith.constant 0 : index
    %28 = vector.load %arg4[%c0_18, %c0_19] : memref<1x448xf32, #tpu.memory_space<vmem>>, vector<1x448xf32>
    %29 = vector.broadcast %28 : vector<1x448xf32> to vector<20x448xf32>
    %30 = arith.addf %27, %29 : vector<20x448xf32>
    %cst_20 = arith.constant 0.000000e+00 : f32
    %31 = vector.broadcast %cst_20 : f32 to vector<20x448xf32>
    %32 = arith.maximumf %30, %31 : vector<20x448xf32>
    %33 = arith.truncf %32 : vector<20x448xf32> to vector<20x448xbf16>
    %c0_21 = arith.constant 0 : index
    %c0_22 = arith.constant 0 : index
    %c0_23 = arith.constant 0 : index
    %34 = vector.load %arg5[%c0_21, %c0_22, %c0_23] : memref<2x7x20xbf16, #tpu.memory_space<vmem>>, vector<1x7x20xbf16>
    %35 = vector.shape_cast %34 : vector<1x7x20xbf16> to vector<7x20xbf16>
    %cst_24 = arith.constant dense<0.000000e+00> : vector<7x448xf32>
    %36 = tpu.matmul %35, %33, %cst_24 {dimension_numbers = #tpu.dot_dimension_numbers<[1], [0], [0], [1], [0, 0, 1, 1], [], []>} : vector<7x20xbf16>, vector<20x448xbf16>, vector<7x448xf32> -> vector<7x448xf32>
    %c1_25 = arith.constant 1 : index
    %c0_26 = arith.constant 0 : index
    %c0_27 = arith.constant 0 : index
    %37 = vector.load %arg5[%c1_25, %c0_26, %c0_27] : memref<2x7x20xbf16, #tpu.memory_space<vmem>>, vector<1x7x20xbf16>
    %38 = vector.shape_cast %37 : vector<1x7x20xbf16> to vector<7x20xbf16>
    %cst_28 = arith.constant dense<0.000000e+00> : vector<7x448xf32>
    %39 = tpu.matmul %38, %33, %cst_28 {dimension_numbers = #tpu.dot_dimension_numbers<[1], [0], [0], [1], [0, 0, 1, 1], [], []>} : vector<7x20xbf16>, vector<20x448xbf16>, vector<7x448xf32> -> vector<7x448xf32>
    %40 = arith.maximumf %36, %39 : vector<7x448xf32>
    %41 = arith.truncf %40 : vector<7x448xf32> to vector<7x448xbf16>
    %c0_29 = arith.constant 0 : index
    %c0_30 = arith.constant 0 : index
    %c0_31 = arith.constant 0 : index
    %42 = vector.load %arg6[%c0_29, %c0_30, %c0_31] : memref<2x448x224xbf16, #tpu.memory_space<vmem>>, vector<1x448x224xbf16>
    %43 = vector.shape_cast %42 : vector<1x448x224xbf16> to vector<448x224xbf16>
    %cst_32 = arith.constant dense<0.000000e+00> : vector<7x224xf32>
    %44 = tpu.matmul %41, %43, %cst_32 {dimension_numbers = #tpu.dot_dimension_numbers<[1], [0], [0], [1], [0, 0, 1, 1], [], []>} : vector<7x448xbf16>, vector<448x224xbf16>, vector<7x224xf32> -> vector<7x224xf32>
    %c1_33 = arith.constant 1 : index
    %c0_34 = arith.constant 0 : index
    %c0_35 = arith.constant 0 : index
    %45 = vector.load %arg6[%c1_33, %c0_34, %c0_35] : memref<2x448x224xbf16, #tpu.memory_space<vmem>>, vector<1x448x224xbf16>
    %46 = vector.shape_cast %45 : vector<1x448x224xbf16> to vector<448x224xbf16>
    %cst_36 = arith.constant dense<0.000000e+00> : vector<7x224xf32>
    %47 = tpu.matmul %41, %46, %cst_36 {dimension_numbers = #tpu.dot_dimension_numbers<[1], [0], [0], [1], [0, 0, 1, 1], [], []>} : vector<7x448xbf16>, vector<448x224xbf16>, vector<7x224xf32> -> vector<7x224xf32>
    %48 = arith.maximumf %44, %47 : vector<7x224xf32>
    %49 = arith.truncf %48 : vector<7x224xf32> to vector<7x224xbf16>
    %50 = vector.extract_strided_slice %49 {offsets = [0, 0], sizes = [1, 224], strides = [1, 1]} : vector<7x224xbf16> to vector<1x224xbf16>
    %c0_37 = arith.constant 0 : index
    %c0_38 = arith.constant 0 : index
    %c0_39 = arith.constant 0 : index
    %51 = vector.load %arg7[%c0_37, %c0_38, %c0_39] : memref<7x224x128xbf16, #tpu.memory_space<vmem>>, vector<1x224x128xbf16>
    %52 = vector.shape_cast %51 : vector<1x224x128xbf16> to vector<224x128xbf16>
    %cst_40 = arith.constant dense<0.000000e+00> : vector<1x128xf32>
    %53 = tpu.matmul %50, %52, %cst_40 {dimension_numbers = #tpu.dot_dimension_numbers<[1], [0], [0], [1], [0, 0, 1, 1], [], []>} : vector<1x224xbf16>, vector<224x128xbf16>, vector<1x128xf32> -> vector<1x128xf32>
    %54 = vector.extract_strided_slice %49 {offsets = [1, 0], sizes = [1, 224], strides = [1, 1]} : vector<7x224xbf16> to vector<1x224xbf16>
    %c1_41 = arith.constant 1 : index
    %c0_42 = arith.constant 0 : index
    %c0_43 = arith.constant 0 : index
    %55 = vector.load %arg7[%c1_41, %c0_42, %c0_43] : memref<7x224x128xbf16, #tpu.memory_space<vmem>>, vector<1x224x128xbf16>
    %56 = vector.shape_cast %55 : vector<1x224x128xbf16> to vector<224x128xbf16>
    %cst_44 = arith.constant dense<0.000000e+00> : vector<1x128xf32>
    %57 = tpu.matmul %54, %56, %cst_44 {dimension_numbers = #tpu.dot_dimension_numbers<[1], [0], [0], [1], [0, 0, 1, 1], [], []>} : vector<1x224xbf16>, vector<224x128xbf16>, vector<1x128xf32> -> vector<1x128xf32>
    %58 = arith.addf %53, %57 : vector<1x128xf32>
    %59 = vector.extract_strided_slice %49 {offsets = [2, 0], sizes = [1, 224], strides = [1, 1]} : vector<7x224xbf16> to vector<1x224xbf16>
    %c2_45 = arith.constant 2 : index
    %c0_46 = arith.constant 0 : index
    %c0_47 = arith.constant 0 : index
    %60 = vector.load %arg7[%c2_45, %c0_46, %c0_47] : memref<7x224x128xbf16, #tpu.memory_space<vmem>>, vector<1x224x128xbf16>
    %61 = vector.shape_cast %60 : vector<1x224x128xbf16> to vector<224x128xbf16>
    %cst_48 = arith.constant dense<0.000000e+00> : vector<1x128xf32>
    %62 = tpu.matmul %59, %61, %cst_48 {dimension_numbers = #tpu.dot_dimension_numbers<[1], [0], [0], [1], [0, 0, 1, 1], [], []>} : vector<1x224xbf16>, vector<224x128xbf16>, vector<1x128xf32> -> vector<1x128xf32>
    %63 = arith.addf %58, %62 : vector<1x128xf32>
    %64 = vector.extract_strided_slice %49 {offsets = [3, 0], sizes = [1, 224], strides = [1, 1]} : vector<7x224xbf16> to vector<1x224xbf16>
    %c3_49 = arith.constant 3 : index
    %c0_50 = arith.constant 0 : index
    %c0_51 = arith.constant 0 : index
    %65 = vector.load %arg7[%c3_49, %c0_50, %c0_51] : memref<7x224x128xbf16, #tpu.memory_space<vmem>>, vector<1x224x128xbf16>
    %66 = vector.shape_cast %65 : vector<1x224x128xbf16> to vector<224x128xbf16>
    %cst_52 = arith.constant dense<0.000000e+00> : vector<1x128xf32>
    %67 = tpu.matmul %64, %66, %cst_52 {dimension_numbers = #tpu.dot_dimension_numbers<[1], [0], [0], [1], [0, 0, 1, 1], [], []>} : vector<1x224xbf16>, vector<224x128xbf16>, vector<1x128xf32> -> vector<1x128xf32>
    %68 = arith.addf %63, %67 : vector<1x128xf32>
    %69 = vector.extract_strided_slice %49 {offsets = [4, 0], sizes = [1, 224], strides = [1, 1]} : vector<7x224xbf16> to vector<1x224xbf16>
    %c4_53 = arith.constant 4 : index
    %c0_54 = arith.constant 0 : index
    %c0_55 = arith.constant 0 : index
    %70 = vector.load %arg7[%c4_53, %c0_54, %c0_55] : memref<7x224x128xbf16, #tpu.memory_space<vmem>>, vector<1x224x128xbf16>
    %71 = vector.shape_cast %70 : vector<1x224x128xbf16> to vector<224x128xbf16>
    %cst_56 = arith.constant dense<0.000000e+00> : vector<1x128xf32>
    %72 = tpu.matmul %69, %71, %cst_56 {dimension_numbers = #tpu.dot_dimension_numbers<[1], [0], [0], [1], [0, 0, 1, 1], [], []>} : vector<1x224xbf16>, vector<224x128xbf16>, vector<1x128xf32> -> vector<1x128xf32>
    %73 = arith.addf %68, %72 : vector<1x128xf32>
    %74 = vector.extract_strided_slice %49 {offsets = [5, 0], sizes = [1, 224], strides = [1, 1]} : vector<7x224xbf16> to vector<1x224xbf16>
    %c5 = arith.constant 5 : index
    %c0_57 = arith.constant 0 : index
    %c0_58 = arith.constant 0 : index
    %75 = vector.load %arg7[%c5, %c0_57, %c0_58] : memref<7x224x128xbf16, #tpu.memory_space<vmem>>, vector<1x224x128xbf16>
    %76 = vector.shape_cast %75 : vector<1x224x128xbf16> to vector<224x128xbf16>
    %cst_59 = arith.constant dense<0.000000e+00> : vector<1x128xf32>
    %77 = tpu.matmul %74, %76, %cst_59 {dimension_numbers = #tpu.dot_dimension_numbers<[1], [0], [0], [1], [0, 0, 1, 1], [], []>} : vector<1x224xbf16>, vector<224x128xbf16>, vector<1x128xf32> -> vector<1x128xf32>
    %78 = arith.addf %73, %77 : vector<1x128xf32>
    %79 = vector.extract_strided_slice %49 {offsets = [6, 0], sizes = [1, 224], strides = [1, 1]} : vector<7x224xbf16> to vector<1x224xbf16>
    %c6 = arith.constant 6 : index
    %c0_60 = arith.constant 0 : index
    %c0_61 = arith.constant 0 : index
    %80 = vector.load %arg7[%c6, %c0_60, %c0_61] : memref<7x224x128xbf16, #tpu.memory_space<vmem>>, vector<1x224x128xbf16>
    %81 = vector.shape_cast %80 : vector<1x224x128xbf16> to vector<224x128xbf16>
    %cst_62 = arith.constant dense<0.000000e+00> : vector<1x128xf32>
    %82 = tpu.matmul %79, %81, %cst_62 {dimension_numbers = #tpu.dot_dimension_numbers<[1], [0], [0], [1], [0, 0, 1, 1], [], []>} : vector<1x224xbf16>, vector<224x128xbf16>, vector<1x128xf32> -> vector<1x128xf32>
    %83 = arith.addf %78, %82 : vector<1x128xf32>
    %c0_63 = arith.constant 0 : index
    %c0_64 = arith.constant 0 : index
    %84 = vector.load %arg8[%c0_63, %c0_64] : memref<1x128xf32, #tpu.memory_space<vmem>>, vector<1x128xf32>
    %85 = arith.addf %83, %84 : vector<1x128xf32>
    %c0_65 = arith.constant 0 : index
    %c0_66 = arith.constant 0 : index
    %c0_67 = arith.constant 0 : index
    %86 = vector.load %arg9[%c0_65, %c0_66, %c0_67] : memref<1x1x128xf32, #tpu.memory_space<vmem>>, vector<1x1x128xf32>
    %87 = vector.shape_cast %86 : vector<1x1x128xf32> to vector<1x128xf32>
    %88 = vector.shape_cast %85 : vector<1x128xf32> to vector<1x1x128xf32>
    tpu.vector_store %arg9[%c0_65, %c0_66, %c0_67], %88 {strides = array<i32>} : memref<1x1x128xf32, #tpu.memory_space<vmem>>, vector<1x1x128xf32>,
    return
  }
  func.func @transform_0(%arg0: i32) -> (i32, i32) {
    %c0_i32 = arith.constant 0 : i32
    %c0_i32_0 = arith.constant 0 : i32
    return %arg0, %c0_i32 : i32, i32
  }
  func.func @transform_1(%arg0: i32) -> (i32, i32, i32) {
    %c0_i32 = arith.constant 0 : i32
    %c0_i32_0 = arith.constant 0 : i32
    %c0_i32_1 = arith.constant 0 : i32
    %c0_i32_2 = arith.constant 0 : i32
    return %c0_i32, %c0_i32_0, %c0_i32_1 : i32, i32, i32
  }
  func.func @transform_2(%arg0: i32) -> (i32, i32) {
    %c0_i32 = arith.constant 0 : i32
    %c0_i32_0 = arith.constant 0 : i32
    %c0_i32_1 = arith.constant 0 : i32
    return %c0_i32, %c0_i32_0 : i32, i32
  }
  func.func @transform_3(%arg0: i32) -> (i32, i32) {
    %c0_i32 = arith.constant 0 : i32
    %c0_i32_0 = arith.constant 0 : i32
    %c0_i32_1 = arith.constant 0 : i32
    return %c0_i32, %c0_i32_0 : i32, i32
  }
  func.func @transform_4(%arg0: i32) -> (i32, i32, i32) {
    %c0_i32 = arith.constant 0 : i32
    %c0_i32_0 = arith.constant 0 : i32
    %c0_i32_1 = arith.constant 0 : i32
    %c0_i32_2 = arith.constant 0 : i32
    return %c0_i32, %c0_i32_0, %c0_i32_1 : i32, i32, i32
  }
  func.func @transform_5(%arg0: i32) -> (i32, i32, i32) {
    %c0_i32 = arith.constant 0 : i32
    %c0_i32_0 = arith.constant 0 : i32
    %c0_i32_1 = arith.constant 0 : i32
    %c0_i32_2 = arith.constant 0 : i32
    return %c0_i32, %c0_i32_0, %c0_i32_1 : i32, i32, i32
  }
  func.func @transform_6(%arg0: i32) -> (i32, i32, i32) {
    %c0_i32 = arith.constant 0 : i32
    %c0_i32_0 = arith.constant 0 : i32
    %c0_i32_1 = arith.constant 0 : i32
    %c0_i32_2 = arith.constant 0 : i32
    return %c0_i32, %c0_i32_0, %c0_i32_1 : i32, i32, i32
  }
  func.func @transform_7(%arg0: i32) -> (i32, i32) {
    %c0_i32 = arith.constant 0 : i32
    %c0_i32_0 = arith.constant 0 : i32
    %c0_i32_1 = arith.constant 0 : i32
    return %c0_i32, %c0_i32_0 : i32, i32
  }
  func.func @transform_8(%arg0: i32) -> (i32, i32, i32) {
    %c0_i32 = arith.constant 0 : i32
    %c0_i32_0 = arith.constant 0 : i32
    %c0_i32_1 = arith.constant 0 : i32
    return %arg0, %c0_i32, %c0_i32_0 : i32, i32, i32
  }
}

</mosaic_0001>

<bundles_post_ra>
// kernel: convnet_forward.2
= control target key start
LH: loop header
LB: loop body
LE: loop exit
PB: predicated region body
PF: predicated region fallthrough
CT: control target
= control target key end

     0   :  { %11 = vsyncpa [#allocation3], 0  ;;  %s4599_s0 = inlined_call_operand.vmem [shape: bf16[64,32], index: 0, kind: input, shape index: {}]   ;;  %s4600_s1 = inlined_call_operand.hbm [shape: bf16[5,32,448], index: 1, kind: input, shape index: {}]   ;;  %s4601_s2 = inlined_call_operand.hbm [shape: f32[1,448], index: 2, kind: input, shape index: {}]   ;;  %s4602_s3 = inlined_call_operand.hbm [shape: f32[1,448], index: 3, kind: input, shape index: {}]   ;;  %s4603_s4 = inlined_call_operand.hbm [shape: bf16[2,24,28], index: 4, kind: input, shape index: {}]   ;;  %s4604_s5 = inlined_call_operand.hbm [shape: bf16[2,448,384], index: 5, kind: input, shape index: {}]   ;;  %s4605_s6 = inlined_call_operand.vmem [shape: bf16[48,384], index: 6, kind: output, shape index: {}]  }
   0x1   :  { %12 = vsyncpa [#allocation5], 0 }
   0x2   :  { %13 = vsyncpa [#allocation8], 0  ;;  %s4173_s21 = smov 0  }
   0x3 LB: > { %s4126_s22 = smov [#allocation4]   ;;  %s4179_s24 = sadd.s32 4294967295, %s4124_s21   ;;  %s4124_s21 = sphi %s4173_s21, %s19_s21  }
   0x4   : > { %s207_s23 = sshll.u32 %s4126_s22, 4  ;;  %p3279_p0 = scmp.ge.s32.totalorder %s4124_s21, 1  ;;  %s208_s23 = int_to_ptr.vmem [resolvable:$true] %s207_s23 }
   0x5   : > { %p181_p1 = scmp.lt.s32.totalorder %s4124_s21, 3  ;;  %p4606_p2 = scmp.eq.s32.totalorder %s4179_s24, 0 }
   0x6   : > { %s4127_s26 = smov [#allocation7]   ;;  %s4128_s29 = smov [#allocation2]  }
   0x7   : > { %p4184_p3 = pnand %p3279_p0, %p181_p1  ;;  %s228_s27 = sshll.u32 %s4127_s26, 4  ;;  %s4190_s27 = int_to_ptr.vmem [resolvable:$true] %s228_s27 }
   0x8   : > { %s193_s30 = sshll.u32 %s4128_s29, 4  ;;  %s3987_s8 = scalar_lea.vmem %s208_s23, 64  ;;  %s4198_s30 = int_to_ptr.vmem [resolvable:$true] %s193_s30 }
   0x9   : > { %s4610_s25 = scalar_select %p4184_p3, 1, 0 }
   0xa   : > { %p3640_p4 = pneg %p4184_p3  ;;  %p3988_p7 = scmp.ne.s32.totalorder %s208_s23, %s3987_s8 }
   0xb   : > { %p3995_p10 = scmp.lt.s32.totalorder %s208_s23, %s208_s23  ;;  %p3996_p11 = scmp.lt.s32.totalorder %s3987_s8, %s3987_s8 }
   0xc   : > { %p4194_p5 = pnand %p4606_p2, %p3640_p4 }
   0xd   : > { %p3997_p12 = por %p3996_p11, %p3995_p10 }
   0xe   : > { %p4202_p6 = pneg %p4194_p5 }
  0x10   : > { %p3990_p8 = pnand %p3988_p7, %p4202_p6 }
  0x12   : > { %p3991_p9 = pneg %p3990_p8 }
  0x14   : > { %p3998_p13 = pnand %p3997_p12, %p3991_p9 }
  0x16   : > { %4001 = shalt.err (!%p3998_p13)
}
  0x17   : > { %3646 = dma.hbm_to_vmem [thread:$0]  (!%p4194_p5), %s4601_s2, 64, %s208_s23, [#allocation5]  }
  0x18   : > { %s4013_s11 = scalar_lea.vmem %s4190_s27, 384  ;;  %p4021_p7 = scmp.lt.s32.totalorder %s4190_s27, %s4190_s27 }
  0x19   : > { %p4014_p0 = scmp.ne.s32.totalorder %s4190_s27, %s4013_s11  ;;  %p4022_p8 = scmp.lt.s32.totalorder %s4013_s11, %s4013_s11 }
  0x1b   : > { %p4016_p1 = pnand %p4014_p0, %p4202_p6  ;;  %p4023_p9 = por %p4022_p8, %p4021_p7 }
  0x1d   : > { %p4017_p4 = pneg %p4016_p1 }
  0x1f   : > { %p4024_p10 = pnand %p4023_p9, %p4017_p4 }
  0x21   : > { %4027 = shalt.err (!%p4024_p10)
}
  0x22   : > { %s4129_s12 = smov 64   ;;  %s4130_s13 = smov 4  }
  0x23   : > { %3652 = dma.hbm_to_vmem [thread:$0]  (!%p4194_p5), %s4603_s4, 384, %s4190_s27, [#allocation8], %s4129_s12, %s4129_s12, %s4130_s13  }
  0x24   : > { %s4039_s16 = scalar_lea.vmem %s4198_s30, 5120  ;;  %p4047_p0 = scmp.lt.s32.totalorder %s4198_s30, %s4198_s30 }
  0x25   : > { %p4040_p11 = scmp.ne.s32.totalorder %s4198_s30, %s4039_s16  ;;  %p4048_p1 = scmp.lt.s32.totalorder %s4039_s16, %s4039_s16 }
  0x27   : > { %p4042_p12 = pnand %p4040_p11, %p4202_p6  ;;  %p4049_p4 = por %p4048_p1, %p4047_p0 }
  0x29   : > { %p4043_p13 = pneg %p4042_p12 }
  0x2b   : > { %p4050_p7 = pnand %p4049_p4, %p4043_p13 }
  0x2d   : > { %4053 = shalt.err (!%p4050_p7)
}
  0x2e   : > { %s4131_s17 = smov 256   ;;  %s4132_s18 = smov 16  }
  0x2f   : > { %3643 = dma.hbm_to_vmem [thread:$0]  (!%p4194_p5), %s4600_s1, 5120, %s4198_s30, [#allocation3], %s4131_s17, %s4131_s17, %s4132_s18  }
  0x30   : > { %s4133_s22 = smov [#allocation6]   ;;  %s4134_s26 = smov [#allocation9]  }
  0x31   : > { %s218_s23 = sshll.u32 %s4133_s22, 4  ;;  %s241_s27 = sshll.u32 %s4134_s26, 4  ;;  %s219_s23 = int_to_ptr.vmem [resolvable:$true] %s218_s23  ;;  %s242_s27 = int_to_ptr.vmem [resolvable:$true] %s241_s27 }
  0x32   : > { %s4065_s29 = scalar_lea.vmem %s219_s23, 64  ;;  %p4073_p11 = scmp.lt.s32.totalorder %s219_s23, %s219_s23 }
  0x33   : > { %p4066_p8 = scmp.ne.s32.totalorder %s219_s23, %s4065_s29  ;;  %p4074_p12 = scmp.lt.s32.totalorder %s4065_s29, %s4065_s29 }
  0x35   : > { %p4068_p9 = pnand %p4066_p8, %p4202_p6  ;;  %p4075_p13 = por %p4074_p12, %p4073_p11 }
  0x37   : > { %p4069_p10 = pneg %p4068_p9 }
  0x39   : > { %p4076_p0 = pnand %p4075_p13, %p4069_p10 }
  0x3b   : > { %4079 = shalt.err (!%p4076_p0)
}
  0x3c   : > { %3649 = dma.hbm_to_vmem [thread:$0]  (!%p4194_p5), %s4602_s3, 64, %s219_s23, [#allocation5]  }
  0x3d   : > { %s4091_s9 = scalar_lea.vmem %s242_s27, 21504  ;;  %p4099_p2 = scmp.lt.s32.totalorder %s242_s27, %s242_s27 }
  0x3e   : > { %p4092_p1 = scmp.ne.s32.totalorder %s242_s27, %s4091_s9  ;;  %p4100_p8 = scmp.lt.s32.totalorder %s4091_s9, %s4091_s9 }
  0x40   : > { %p4094_p4 = pnand %p4092_p1, %p4202_p6  ;;  %p4101_p9 = por %p4100_p8, %p4099_p2 }
  0x42   : > { %p4095_p7 = pneg %p4094_p4 }
  0x44   : > { %p4102_p3 = pnand %p4101_p9, %p4095_p7 }
  0x46   : > { %4105 = shalt.err (!%p4102_p3)
}
  0x47   : > { %s4135_s10 = smov 192   ;;  %s4136_s11 = smov 12  }
  0x48   : > { %3655 = dma.hbm_to_vmem [thread:$0]  (!%p4194_p5), %s4604_s5, 21504, %s242_s27, [#allocation8], %s4135_s10, %s4135_s10, %s4136_s11  }
  0x49   : > { %p4613_p10 = scmp.ne.s32.totalorder %s4610_s25, 0 }
  0x4b   : > { %266 = sbr.rel (%p4613_p10) target bundleno = 969 (0x3c9), region = 44 }
  0x50   : > { %p4614_p11 = scmp.eq.s32.totalorder %s4179_s24, 0 }
  0x52   : > { %4111 = dma.done.wait (%p4614_p11), [#allocation3], 5120   ;;  %p4615_p6 = pmov %p4614_p11 }
  0x54   : > { %4113 = vsyncadd (%p4615_p6), [#allocation3], 4294962176  ;;  %p4616_p2 = pmov %p4615_p6 }
  0x56   : > { %4115 = dma.done.wait (%p4616_p2), [#allocation5], 128   ;;  %p4617_p3 = pmov %p4616_p2 }
  0x57   : > { %p4618_p12 = pmov %p4616_p2 }
  0x58   : > { %4117 = vsyncadd (%p4617_p3), [#allocation5], 4294967168 }
  0x59   : > { %4119 = dma.done.wait (%p4618_p12), [#allocation8], 21888   ;;  %p4619_p5 = pmov %p4616_p2 }
  0x5a   : > { %s3292_s25 = sshll.u32 %s4179_s24, 2  ;;  %v4608_v0 = vmov 0   ;;  %v3686_v1 = vld [vmem:[#allocation2 + $0x64] ss:$16 sps:$4 sm:$0xff]   ;;  %v3690_v3 = vld [vmem:[#allocation2 + $0x60] ss:$16 sps:$4 sm:$0xff]  }
  0x5b   : > { %4121 = vsyncadd (%p4619_p5), [#allocation8], 4294945408  ;;  %453 = vmatprep.mubr.bf16.mxu1 %v4608_v0  ;;  %603 = vmatprep.mubr.bf16.mxu0 %v4608_v0  ;;  %p314_p13 = scmp.lt.s32.totalorder %s3292_s25, 7  ;;  %v3688_v2 = vld [vmem:[#allocation2 + $0x24] ss:$16 sps:$4 sm:$0xff]   ;;  %vm414_vm0 = vcmask 261120  }
  0x5c   : > { %433 = vmatprep.subr.bf16.mxu1 %v3686_v1  ;;  %v3691_v4 = vld [vmem:[#allocation2 + $0x20] ss:$16 sps:$4 sm:$0xff]   ;;  %583 = vmatprep.subr.bf16.mxu0 %v3688_v2  ;;  %v3692_v5 = vld [vmem:[#allocation2 + $0x44] ss:$16 sps:$4 sm:$0xff]   ;;  %v3702_v13 = vld [vmem:[#allocation2 + $0x6c] ss:$16 sps:$4 sm:$0xff]  }
  0x5d   : > { %s4628_s25 = smov (!%p314_p13, %s3292_s25), 7  ;;  %434 = vmatpush1.bf16.msra.mxu1 %v3690_v3  ;;  %584 = vmatpush1.bf16.msra.mxu0 %v3691_v4  ;;  %v3694_v6 = vld [vmem:[#allocation2 + $0x4] ss:$16 sps:$4 sm:$0xff]   ;;  %v3696_v7 = vld [vmem:[#allocation2 + $0x40] ss:$16 sps:$4 sm:$0xff]   ;;  %vm686_vm2 = vcmask 1046528  }
  0x5e   : > { %s3293_s28 = sshll.u32 %s4628_s25, 2  ;;  %435 = vmatprep.subr.bf16.mxu1 %v3692_v5  ;;  %v3697_v8 = vld [vmem:[#allocation2] ss:$16 sps:$4 sm:$0xff]   ;;  %585 = vmatprep.subr.bf16.mxu0 %v3694_v6  ;;  %v3705_v17 = vld [vmem:[#allocation2 + $0xa4] ss:$16 sps:$4 sm:$0xff]   ;;  %vm1052_vm4 = vcmask 1045504  }
  0x5f   : > { %s317_s15 = scalar_lea.vmem %s4599_s0, %s3293_s28  ;;  %v3703_v15 = vld [vmem:[#allocation2 + $0xa0] ss:$16 sps:$4 sm:$0xff]   ;;  %vm358_vm1 = vsmask.f32 7424  ;;  %v3700_v19 = vld [vmem:[#allocation2 + $0x68] ss:$16 sps:$4 sm:$0xff]  }
  0x60   : > { %v4271_v9 = vld [vmem:[%s317_s15] sm:$0xff]   ;;  %v4273_v10 = vld [vmem:[%s317_s15 + $0x8] sm:$0xff]   ;;  %vm867_vm3 = vsmask.f32 6400  ;;  %vm1335_vm5 = vcmask 228352   ;;  %vm2157_vm6 = vcmask 523264  }
  0x61   : > { %436 = vmatpush1.bf16.msra.mxu1 %v3696_v7  ;;  %586 = vmatpush1.bf16.msra.mxu0 %v3697_v8  ;;  %v360_v11 = vshrl.u32 %v4271_v9, 16  ;;  %v362_v12 = vshll.u32 %v4271_v9, 16  ;;  %v367_v14 = vshll.u32 %v4273_v10, 16  ;;  %v3708_v21 = vld [vmem:[#allocation2 + $0x4c] ss:$16 sps:$4 sm:$0xff]   ;;  %v371_v25 = vshrl.u32 %v4273_v10, 16 }
  0x62   : > { %486 = vmatprep.subr.bf16.mxu1 %v3702_v13  ;;  %748 = vmatprep.subr.bf16.mxu0 %v3705_v17  ;;  %v3709_v22 = vld [vmem:[#allocation2 + $0x80] ss:$16 sps:$4 sm:$0xff]   ;;  %v3711_v23 = vld [vmem:[#allocation2 + $0x84] ss:$16 sps:$4 sm:$0xff]   ;;  %v3706_v26 = vld [vmem:[#allocation2 + $0x48] ss:$16 sps:$4 sm:$0xff]  }
  0x63   : > { %v364_v16 = vrot.slane %v362_v12, 1  ;;  %v369_v18 = vrot.slane %v367_v14, 1  ;;  %v3717_v27 = vld [vmem:[#allocation2 + $0xe4] ss:$16 sps:$4 sm:$0xff]   ;;  %v3714_v28 = vld [vmem:[#allocation2 + $0x2c] ss:$16 sps:$4 sm:$0xff]  }
  0x64   : > { %3317 = vmatmul.mubr.msk.bf16.vlgmr.msra.gmra.mxu0 %vm414_vm0, %v4271_v9  ;;  %v687_v30 = vrot.slane %v4271_v9, 1  ;;  %v4289_v31 = vrot.slane %v4273_v10, 1  ;;  %v3715_v33 = vld [vmem:[#allocation2 + $0xe0] ss:$16 sps:$4 sm:$0xff]   ;;  %v3723_v34 = vld [vmem:[#allocation2 + $0xc4] ss:$16 sps:$4 sm:$0xff]  }
  0x65   : > { %v365_v20 = vor.u32 %v364_v16, %v360_v11  ;;  %613 = vmatprep.mubr.bf16.mxu0 %v4608_v0  ;;  %749 = vmatpush1.bf16.msra.mxu0 %v3703_v15  ;;  %v373_v29 = vor.u32 %v371_v25, %v369_v18  ;;  %v3712_v35 = vld [vmem:[#allocation2 + $0x28] ss:$16 sps:$4 sm:$0xff]   ;;  %v3720_v36 = vld [vmem:[#allocation2 + $0xc] ss:$16 sps:$4 sm:$0xff]   ;;  %v3721_v37 = vld [vmem:[#allocation2 + $0xc0] ss:$16 sps:$4 sm:$0xff]  }
  0x66   : > { %750 = vmatprep.subr.bf16.mxu0 %v3711_v23  ;;  %v4294_v32 = vsel %vm686_vm2, %v687_v30, %v4289_v31  ;;  %v3729_v38 = vld [vmem:[#allocation2 + $0x124] ss:$16 sps:$4 sm:$0xff]   ;;  %v3718_v39 = vld [vmem:[#allocation2 + $0x8] ss:$16 sps:$4 sm:$0xff]   ;;  %v868_v40 = vrot.slane %v360_v11, 1  ;;  %v869_v42 = vrot.slane %v362_v12, 2 }
  0x67   : > { %v370_v24 = vsel %vm358_vm1, %v365_v20, %v369_v18  ;;  %v3726_v41 = vld [vmem:[#allocation2 + $0xac] ss:$16 sps:$4 sm:$0xff]   ;;  %v872_v43 = vrot.slane %v367_v14, 2  ;;  %v871_v44 = vrot.slane %v371_v25, 1  ;;  %v3727_v47 = vld [vmem:[#allocation2 + $0x120] ss:$16 sps:$4 sm:$0xff]  }
  0x68   : > { %3305 = vmatmul.mubr.msk.bf16.vlgmr.msra.gmra.mxu1 %vm414_vm0, %v370_v24  ;;  %v870_v45 = vor.u32 %v869_v42, %v868_v40  ;;  %v3735_v48 = vld [vmem:[#allocation2 + $0x104] ss:$16 sps:$4 sm:$0xff]   ;;  %v3724_v50 = vld [vmem:[#allocation2 + $0xa8] ss:$16 sps:$4 sm:$0xff]   ;;  %v3732_v51 = vld [vmem:[#allocation2 + $0x8c] ss:$16 sps:$4 sm:$0xff]  }
  0x69   : > { %463 = vmatprep.mubr.bf16.mxu1 %v4608_v0  ;;  %487 = vmatpush1.bf16.msra.mxu1 %v3700_v19  ;;  %v873_v46 = vor.u32 %v872_v43, %v871_v44  ;;  %v3733_v52 = vld [vmem:[#allocation2 + $0x100] ss:$16 sps:$4 sm:$0xff]   ;;  %v3730_v53 = vld [vmem:[#allocation2 + $0x88] ss:$16 sps:$4 sm:$0xff]   ;;  %v3738_v54 = vld [vmem:[#allocation2 + $0xec] ss:$16 sps:$4 sm:$0xff]  }
  0x6a   : > { %488 = vmatprep.subr.bf16.mxu1 %v3708_v21  ;;  %751 = vmatpush1.bf16.msra.mxu0 %v3709_v22  ;;  %v1053_v55 = vrot.slane %v4271_v9, 2  ;;  %v1054_v56 = vrot.slane %v4273_v10, 2  ;;  %v3736_v58 = vld [vmem:[#allocation2 + $0xe8] ss:$16 sps:$4 sm:$0xff]   ;;  %v3741_v59 = vld [vmem:[#allocation2 + $0xcc] ss:$16 sps:$4 sm:$0xff]  }
  0x6b   : > { %933 = vmatprep.subr.bf16.mxu0 %v3717_v27  ;;  %v874_v49 = vsel %vm867_vm3, %v870_v45, %v873_v46  ;;  %v3739_v60 = vld [vmem:[#allocation2 + $0xc8] ss:$16 sps:$4 sm:$0xff]   ;;  %v3744_v61 = vld [vmem:[#allocation2 + $0x12c] ss:$16 sps:$4 sm:$0xff]   ;;  %s319_s16 = smul.u32 3, %s4179_s24 }
  0x6c   : > { %3318 = vmatmul.mubr.msk.bf16.gmra.mxu0 %vm414_vm0, %v4273_v10  ;;  %v1055_v57 = vsel %vm1052_vm4, %v1053_v55, %v1054_v56  ;;  %v3742_v62 = vld [vmem:[#allocation2 + $0x128] ss:$16 sps:$4 sm:$0xff]   ;;  %v3747_v63 = vld [vmem:[#allocation2 + $0x10c] ss:$16 sps:$4 sm:$0xff]  }
  0x6d   : > { %489 = vmatpush1.bf16.msra.mxu1 %v3706_v26  ;;  %768 = vmatprep.mubr.bf16.mxu0 %v4608_v0  ;;  %v3745_v1 = vld [vmem:[#allocation2 + $0x108] ss:$16 sps:$4 sm:$0xff]   ;;  %p320_p0 = scmp.lt.s32.totalorder %s319_s16, 5 }
  0x6e   : > { %636 = vmatprep.subr.bf16.mxu1 %v3714_v28 }
  0x6f   : > { %s4630_s16 = smov (!%p320_p0, %s319_s16), 5 }
  0x70   : > { %3306 = vmatmul.mubr.msk.bf16.gmra.mxu1 %vm414_vm0, %v373_v29  ;;  %s3619_s17 = smul.u32 12, %s4630_s16 }
  0x71   : > { %506 = vmatprep.mubr.bf16.mxu1 %v4608_v0 }
  0x72   : > { %s4583_s20 = scalar_lea.vmem %s4605_s6, %s3619_s17 }
  0x74   : > { %3329 = vmatmul.mubr.msk.bf16.vlgmr.msra.gmra.mxu0 %vm414_vm0, %v4294_v32 }
  0x75   : > { %778 = vmatprep.mubr.bf16.mxu0 %v4608_v0  ;;  %934 = vmatpush1.bf16.msra.mxu0 %v3715_v33 }
  0x76   : > { %935 = vmatprep.subr.bf16.mxu0 %v3723_v34 }
  0x78   : > { %3307 = vmatmul.mubr.msk.bf16.vlgmr.msra.gmra.mxu1 %vm414_vm0, %v370_v24 }
  0x79   : > { %516 = vmatprep.mubr.bf16.mxu1 %v4608_v0  ;;  %637 = vmatpush1.bf16.msra.mxu1 %v3712_v35 }
  0x7a   : > { %638 = vmatprep.subr.bf16.mxu1 %v3720_v36  ;;  %936 = vmatpush1.bf16.msra.mxu0 %v3721_v37 }
  0x7b   : > { %1114 = vmatprep.subr.bf16.mxu0 %v3729_v38 }
  0x7c   : > { %3330 = vmatmul.mubr.msk.bf16.gmra.mxu0 %vm414_vm0, %v4289_v31 }
  0x7d   : > { %639 = vmatpush1.bf16.msra.mxu1 %v3718_v39  ;;  %953 = vmatprep.mubr.bf16.mxu0 %v4608_v0 }
  0x7e   : > { %801 = vmatprep.subr.bf16.mxu1 %v3726_v41 }
  0x80   : > { %3308 = vmatmul.mubr.msk.bf16.gmra.mxu1 %vm414_vm0, %v373_v29 }
  0x81   : > { %656 = vmatprep.mubr.bf16.mxu1 %v4608_v0 }
  0x84   : > { %3341 = vmatmul.mubr.msk.bf16.vlgmr.msra.gmra.mxu0 %vm414_vm0, %v874_v49 }
  0x85   : > { %963 = vmatprep.mubr.bf16.mxu0 %v4608_v0  ;;  %1115 = vmatpush1.bf16.msra.mxu0 %v3727_v47 }
  0x86   : > { %1116 = vmatprep.subr.bf16.mxu0 %v3735_v48  ;;  %v1226_v48 = vlaneseq }
  0x88   : > { %3319 = vmatmul.mubr.msk.bf16.vlgmr.msra.gmra.mxu1 %vm414_vm0, %v4271_v9 }
  0x89   : > { %666 = vmatprep.mubr.bf16.mxu1 %v4608_v0  ;;  %802 = vmatpush1.bf16.msra.mxu1 %v3724_v50 }
  0x8a   : > { %803 = vmatprep.subr.bf16.mxu1 %v3732_v51  ;;  %1117 = vmatpush1.bf16.msra.mxu0 %v3733_v52  ;;  %v4375_v52 = vshrl.u32 %v1226_v48, 7 }
  0x8c   : > { %3342 = vmatmul.mubr.msk.bf16.gmra.mxu0 %vm414_vm0, %v873_v46 }
  0x8d   : > { %804 = vmatpush1.bf16.msra.mxu1 %v3730_v53  ;;  %1134 = vmatprep.mubr.bf16.mxu0 %v4608_v0 }
  0x8e   : > { %986 = vmatprep.subr.bf16.mxu1 %v3738_v54 }
  0x90   : > { %3320 = vmatmul.mubr.msk.bf16.gmra.mxu1 %vm414_vm0, %v4273_v10 }
  0x91   : > { %821 = vmatprep.mubr.bf16.mxu1 %v4608_v0 }
  0x94   : > { %3353 = vmatmul.mubr.msk.bf16.vlgmr.msra.gmra.mxu0 %vm414_vm0, %v1055_v57 }
  0x95   : > { %1144 = vmatprep.mubr.bf16.mxu0 %v4608_v0 }
  0x98   : > { %3331 = vmatmul.mubr.msk.bf16.vlgmr.msra.gmra.mxu1 %vm414_vm0, %v4294_v32 }
  0x99   : > { %831 = vmatprep.mubr.bf16.mxu1 %v4608_v0  ;;  %987 = vmatpush1.bf16.msra.mxu1 %v3736_v58 }
  0x9a   : > { %988 = vmatprep.subr.bf16.mxu1 %v3741_v59 }
  0x9c   : > { %3354 = vmatmul.mubr.msk.bf16.gmra.mxu0 %vm414_vm0, %v1054_v56 }
  0x9d   : > { %989 = vmatpush1.bf16.msra.mxu1 %v3739_v60  ;;  %1387 = vmatprep.mubr.bf16.mxu0 %v4608_v0 }
  0x9e   : > { %1167 = vmatprep.subr.bf16.mxu1 %v3744_v61 }
  0xa0   : > { %3332 = vmatmul.mubr.msk.bf16.gmra.mxu1 %vm414_vm0, %v4289_v31 }
  0xa1   : > { %1006 = vmatprep.mubr.bf16.mxu1 %v4608_v0 }
  0xa8   : > { %3343 = vmatmul.mubr.msk.bf16.vlgmr.msra.gmra.mxu1 %vm414_vm0, %v874_v49 }
  0xa9   : > { %1016 = vmatprep.mubr.bf16.mxu1 %v4608_v0  ;;  %1168 = vmatpush1.bf16.msra.mxu1 %v3742_v62 }
  0xaa   : > { %1169 = vmatprep.subr.bf16.mxu1 %v3747_v63  ;;  %v1228_v63 = vsub.s32 0, %v4375_v52 }
  0xad   : > { %1170 = vmatpush1.bf16.msra.mxu1 %v3745_v1 }
  0xb0   : > { %3344 = vmatmul.mubr.msk.bf16.gmra.mxu1 %vm414_vm0, %v873_v46 }
  0xb1   : > { %1187 = vmatprep.mubr.bf16.mxu1 %v4608_v0 }
  0xb8   : > { %3355 = vmatmul.mubr.msk.bf16.vlgmr.msra.gmra.mxu1 %vm414_vm0, %v1055_v57 }
  0xb9   : > { %1197 = vmatprep.mubr.bf16.mxu1 %v4608_v0 }
  0xc0   : > { %3356 = vmatmul.mubr.msk.bf16.gmra.mxu1 %vm414_vm0, %v1054_v56 }
  0xc1   : > { %1438 = vmatprep.mubr.bf16.mxu1 %v4608_v0  ;;  %v1232_v0 = vsub.s32 1, %v4375_v52 }
 0x124   : > { %v4337_v2 = vpop.f32.mrf.mxu0 }
 0x126   : > { %v607_v3 = vpop.f32.mrf.mxu0 }
 0x128   : > { %v4339_v4 = vpop.f32.mrf.mxu1  ;;  %v609_v5 = vpop.f32.mrf.mxu0 }
 0x12a   : > { %v457_v6 = vpop.f32.mrf.mxu1  ;;  %v611_v7 = vpop.f32.mrf.mxu0 }
 0x12b   : > { %v608_v58 = vadd.f32 %v607_v3, %v457_v6  ;;  %v606_v3 = vadd.f32 %v4337_v2, %v4339_v4  ;;  %v4393_v4 = vld [vmem:[#allocation6] sm:$0xf] }
 0x12c   : > { %v459_v8 = vpop.f32.mrf.mxu1  ;;  %v615_v9 = vpop.f32.mrf.mxu0 }
 0x12d   : > { %v610_v62 = vadd.f32 %v609_v5, %v459_v8 }
 0x12e   : > { %v461_v10 = vpop.f32.mrf.mxu1  ;;  %v617_v11 = vpop.f32.mrf.mxu0 }
 0x12f   : > { %v612_v54 = vadd.f32 %v611_v7, %v461_v10 }
 0x130   : > { %v465_v12 = vpop.f32.mrf.mxu1  ;;  %v619_v13 = vpop.f32.mrf.mxu0 }
 0x131   : > { %v616_v55 = vadd.f32 %v615_v9, %v465_v12  ;;  %v4383_v9 = vld [vmem:[#allocation4] sm:$0xf] }
 0x132   : > { %v467_v14 = vpop.f32.mrf.mxu1  ;;  %v621_v15 = vpop.f32.mrf.mxu0 }
 0x133   : > { %v618_v59 = vadd.f32 %v617_v11, %v467_v14 }
 0x134   : > { %v469_v16 = vpop.f32.mrf.mxu1  ;;  %v4341_v17 = vpop.f32.mrf.mxu0 }
 0x135   : > { %v620_v6 = vadd.f32 %v619_v13, %v469_v16 }
 0x136   : > { %v471_v18 = vpop.f32.mrf.mxu1  ;;  %v772_v19 = vpop.f32.mrf.mxu0 }
 0x137   : > { %v843_v48 = vadd.f32 %v772_v19, %v608_v58  ;;  %v622_v10 = vadd.f32 %v621_v15, %v471_v18  ;;  %v842_v19 = vadd.f32 %v4341_v17, %v606_v3  ;;  %v1233_v15 = vrot.slane %v4383_v9, %v1232_v0 }
 0x138   : > { %v4343_v20 = vpop.f32.mrf.mxu1  ;;  %v774_v21 = vpop.f32.mrf.mxu0  ;;  %v1267_v58 = vrot.slane %v4393_v4, %v1228_v63 }
 0x139   : > { %v846_v11 = vadd.f32 %v774_v21, %v610_v62 }
 0x13a   : > { %v4345_v22 = vpop.f32.mrf.mxu1  ;;  %v776_v23 = vpop.f32.mrf.mxu0 }
 0x13b   : > { %v847_v60 = vadd.f32 %v776_v23, %v612_v54 }
 0x13c   : > { %v4347_v24 = vpop.f32.mrf.mxu1  ;;  %v780_v25 = vpop.f32.mrf.mxu0 }
 0x13d   : > { %v850_v61 = vadd.f32 %v780_v25, %v616_v55 }
 0x13e   : > { %v4349_v26 = vpop.f32.mrf.mxu1  ;;  %v782_v27 = vpop.f32.mrf.mxu0 }
 0x140   : > { %v4351_v28 = vpop.f32.mrf.mxu1  ;;  %v784_v29 = vpop.f32.mrf.mxu0 }
 0x142   : > { %v4353_v30 = vpop.f32.mrf.mxu1  ;;  %v786_v31 = vpop.f32.mrf.mxu0 }
 0x143   : > { %v855_v2 = vadd.f32 %v786_v31, %v622_v10 }
 0x144   : > { %v4355_v32 = vpop.f32.mrf.mxu1  ;;  %v955_v33 = vpop.f32.mrf.mxu0 }
 0x145   : > { %v1027_v18 = vadd.f32 %v955_v33, %v842_v19 }
 0x146   : > { %v4357_v34 = vpop.f32.mrf.mxu1  ;;  %v957_v35 = vpop.f32.mrf.mxu0 }
 0x147   : > { %4620 = vst [vmem:[#allocation13_spill] sm:$0xff] %v4357_v34  ;;  %v851_v34 = vadd.f32 %v782_v27, %v618_v59  ;;  %v1028_v12 = vadd.f32 %v957_v35, %v843_v48  ;;  %v854_v27 = vadd.f32 %v784_v29, %v620_v6 }
 0x148   : > { %v4359_v36 = vpop.f32.mrf.mxu1  ;;  %v959_v37 = vpop.f32.mrf.mxu0 }
 0x14a   : > { %v4361_v38 = vpop.f32.mrf.mxu1  ;;  %v961_v39 = vpop.f32.mrf.mxu0 }
 0x14c   : > { %v4363_v40 = vpop.f32.mrf.mxu1  ;;  %v965_v41 = vpop.f32.mrf.mxu0 }
 0x14d   : > { %v1035_v7 = vadd.f32 %v965_v41, %v850_v61  ;;  %v1229_v41 = vrot.slane %v4383_v9, %v1228_v63  ;;  %v1271_v61 = vrot.slane %v4393_v4, %v1232_v0 }
 0x14e   : > { %v4365_v42 = vpop.f32.mrf.mxu1  ;;  %v967_v43 = vpop.f32.mrf.mxu0 }
 0x14f   : > { %v1036_v14 = vadd.f32 %v967_v43, %v851_v34 }
 0x150   : > { %v4367_v44 = vpop.f32.mrf.mxu1  ;;  %v969_v45 = vpop.f32.mrf.mxu0 }
 0x151   : > { %v1039_v21 = vadd.f32 %v969_v45, %v854_v27 }
 0x152   : > { %v4369_v46 = vpop.f32.mrf.mxu1  ;;  %v971_v47 = vpop.f32.mrf.mxu0 }
 0x154   : > { %v4371_v49 = vpop.f32.mrf.mxu1  ;;  %v1136_v50 = vpop.f32.mrf.mxu0 }
 0x155   : > { %4621 = vst [vmem:[#allocation14_spill] sm:$0xff] %v4371_v49  ;;  %v1032_v49 = vadd.f32 %v961_v39, %v847_v60  ;;  %v1031_v39 = vadd.f32 %v959_v37, %v846_v11  ;;  %v1040_v37 = vadd.f32 %v971_v47, %v855_v2 }
 0x156   : > { %v4373_v51 = vpop.f32.mrf.mxu1  ;;  %v1138_v53 = vpop.f32.mrf.mxu0 }
 0x157   : > { %4622 = vst [vmem:[#allocation15_spill] sm:$0xff] %v4373_v51  ;;  %v1209_v13 = vadd.f32 %v1138_v53, %v1028_v12 }
 0x158   : > { %v4377_v56 = vpop.f32.mrf.mxu1  ;;  %v1140_v57 = vpop.f32.mrf.mxu0 }
 0x159   : > { %v1212_v34 = vadd.f32 %v1140_v57, %v1031_v39  ;;  %v1247_v60 = vmul.f32 %v1233_v15, %v1209_v13 }
 0x15a   : > { %v4380_v1 = vpop.f32.mrf.mxu1  ;;  %v1142_v51 = vpop.f32.mrf.mxu0 }
 0x15b   : > { %v1213_v23 = vadd.f32 %v1142_v51, %v1032_v49  ;;  %v1208_v51 = vadd.f32 %v1136_v50, %v1027_v18  ;;  %v1250_v45 = vmul.f32 %v1229_v41, %v1212_v34  ;;  %v1285_v63 = vadd.f32 %v1271_v61, %v1247_v60 }
 0x15c   : > { %v4387_v5 = vpop.f32.mrf.mxu1  ;;  %v1146_v8 = vpop.f32.mrf.mxu0 }
 0x15d   : > { %v1216_v25 = vadd.f32 %v1146_v8, %v1035_v7  ;;  %v1251_v43 = vmul.f32 %v1233_v15, %v1213_v23  ;;  %v1246_v6 = vmul.f32 %v1229_v41, %v1208_v51  ;;  %v1288_v8 = vadd.f32 %v1267_v58, %v1250_v45 }
 0x15e   : > { %v4391_v54 = vpop.f32.mrf.mxu1  ;;  %v1148_v55 = vpop.f32.mrf.mxu0  ;;  %v1301_v2 = vmax.f32 %v1285_v63, 0.0  ;;  %v1236_v51 = vsub.s32 2, %v4375_v52 }
 0x15f   : > { %v1217_v16 = vadd.f32 %v1148_v55, %v1036_v14  ;;  %v1254_v17 = vmul.f32 %v1229_v41, %v1216_v25  ;;  %v1289_v7 = vadd.f32 %v1271_v61, %v1251_v43  ;;  %v1284_v27 = vadd.f32 %v1267_v58, %v1246_v6 }
 0x160   : > { %v4396_v35 = vpop.f32.mrf.mxu1  ;;  %v1150_v29 = vpop.f32.mrf.mxu0 }
 0x161   : > { %v1255_v49 = vmul.f32 %v1233_v15, %v1217_v16  ;;  %v1220_v59 = vadd.f32 %v1150_v29, %v1039_v21  ;;  %v1292_v57 = vadd.f32 %v1267_v58, %v1254_v17  ;;  %v1305_v0 = vmax.f32 %v1289_v7, 0.0 }
 0x162   : > { %v4399_v31 = vpop.f32.mrf.mxu1  ;;  %v1152_v53 = vpop.f32.mrf.mxu0  ;;  %v1304_v16 = vmax.f32 %v1288_v8, 0.0  ;;  %v1300_v21 = vmax.f32 %v1284_v27, 0.0 }
 0x163   : > { %v1221_v33 = vadd.f32 %v1152_v53, %v1040_v37  ;;  %v1258_v48 = vmul.f32 %v1229_v41, %v1220_v59  ;;  %v1293_v47 = vadd.f32 %v1271_v61, %v1255_v49  ;;  %v1308_v12 = vmax.f32 %v1292_v57, 0.0  ;;  %v4408_v37 = vld [vmem:[#allocation7] sm:$0xff]  }
 0x164   : > { %v4402_v62 = vpop.f32.mrf.mxu1  ;;  %v1317_v18 = vpack.c.bf16 %v1305_v0, %v1301_v2  ;;  %v1316_v17 = vpack.c.bf16 %v1304_v16, %v1300_v21  ;;  %v659_v49 = vadd.f32 %v4359_v36, %v4343_v20  ;;  %v1240_v59 = vsub.s32 3, %v4375_v52  ;;  %v4625_v0 = vld [vmem:[#allocation13_spill] sm:$0xff]  ;;  %v4461_v16 = vld [vmem:[#allocation7 + $0xc] sm:$0xff]  }
 0x165   : > { %v1259_v3 = vmul.f32 %v1233_v15, %v1221_v33  ;;  %v1296_v50 = vadd.f32 %v1267_v58, %v1258_v48  ;;  %v1309_v25 = vmax.f32 %v1293_v47, 0.0  ;;  %v661_v53 = vadd.f32 %v4361_v38, %v4345_v22  ;;  %v3754_v22 = vld [vmem:[#allocation9 + $0xac] ss:$12 sps:$4 sm:$0xff]   ;;  %v3752_v21 = vld [vmem:[#allocation9 + $0xa8] ss:$12 sps:$4 sm:$0xff]  }
 0x166   : > { %v4404_v10 = vpop.f32.mrf.mxu1  ;;  %v844_v60 = vadd.f32 %v4377_v56, %v659_v49  ;;  %v4623_v33 = vmov 0   ;;  %v663_v20 = vadd.f32 %v4363_v40, %v4347_v24  ;;  %v4427_v52 = vrot.slane %v4383_v9, %v1236_v51  ;;  %v4435_v24 = vld [vmem:[#allocation7 + $0x8] ss:$0 sps:$4 sm:$0xff]  }
 0x167   : > { %v1297_v11 = vadd.f32 %v1271_v61, %v1259_v3  ;;  %v1312_v14 = vmax.f32 %v1296_v50, 0.0  ;;  %v845_v36 = vadd.f32 %v4380_v1, %v661_v53  ;;  %v4430_v56 = vrot.slane %v4383_v9, %v1240_v59 }
 0x168   : > { %v1008_v23 = vpop.f32.mrf.mxu1  ;;  %v665_v57 = vadd.f32 %v4365_v42, %v4349_v26  ;;  %v848_v48 = vadd.f32 %v4387_v5, %v663_v20  ;;  %v669_v40 = vadd.f32 %v4367_v44, %v4351_v28  ;;  %v4440_v1 = vrot.slane %v4393_v4, %v1236_v51 }
 0x169   : > { %v1313_v19 = vmax.f32 %v1297_v11, 0.0  ;;  %v1320_v55 = vpack.c.bf16 %v1312_v14, %v1308_v12  ;;  %v1029_v45 = vadd.f32 %v1008_v23, %v844_v60  ;;  %v671_v42 = vadd.f32 %v4369_v46, %v4353_v30 }
 0x16a   : > { %v1010_v39 = vpop.f32.mrf.mxu1  ;;  %v849_v9 = vadd.f32 %v4391_v54, %v665_v57  ;;  %v1279_v5 = vrot.slane %v4393_v4, %v1240_v59  ;;  %v852_v28 = vadd.f32 %v4396_v35, %v669_v40  ;;  %v4624_v35 = vld [vmem:[#allocation14_spill] sm:$0xff]  ;;  %v3751_v40 = vld [vmem:[#allocation7 + $0x14] ss:$0 sps:$4 sm:$0xff]  }
 0x16b   : > { %v1321_v13 = vpack.c.bf16 %v1313_v19, %v1309_v25  ;;  %v1344_v41 = vsel %vm1052_vm4, %v1320_v55, 0  ;;  %v1030_v7 = vadd.f32 %v1010_v39, %v845_v36  ;;  %v853_v54 = vadd.f32 %v4399_v31, %v671_v42  ;;  %v4626_v25 = vld [vmem:[#allocation15_spill] sm:$0xff] }
 0x16c   : > { %v1012_v15 = vpop.f32.mrf.mxu1  ;;  %v673_v23 = vadd.f32 %v4624_v35, %v4355_v32  ;;  %v675_v19 = vadd.f32 %v4626_v25, %v4625_v0  ;;  %v3781_v35 = vld [vmem:[#allocation9 + $0x154] ss:$12 sps:$4 sm:$0xff]   ;;  %v3782_v0 = vld [vmem:[#allocation9 + $0x138] ss:$12 sps:$4 sm:$0xff]   ;;  %v3784_v25 = vld [vmem:[#allocation9 + $0x13c] ss:$12 sps:$4 sm:$0xff]  }
 0x16d   : > { %3359 = vmatprep.subr.msk.bf16.mxu0 %vm1052_vm4, %v1321_v13  ;;  %v1033_v6 = vadd.f32 %v1012_v15, %v848_v48 }
 0x16e   : > { %v1014_v34 = vpop.f32.mrf.mxu1  ;;  %1368 = vmatpush1.bf16.msra.mxu0 %v1344_v41  ;;  %v856_v15 = vadd.f32 %v4402_v62, %v673_v23  ;;  %v3779_v23 = vld [vmem:[#allocation9 + $0x150] ss:$12 sps:$4 sm:$0xff]  }
 0x16f   : > { %1369 = vmatprep.subr.bf16.mxu0 %v1317_v18  ;;  %v1034_v44 = vadd.f32 %v1014_v34, %v849_v9  ;;  %v3758_v9 = vld [vmem:[#allocation9 + $0x78] ss:$12 sps:$4 sm:$0xff]  }
 0x170   : > { %v1018_v29 = vpop.f32.mrf.mxu1 }
 0x171   : > { %v1037_v14 = vadd.f32 %v1018_v29, %v852_v28 }
 0x172   : > { %v1020_v43 = vpop.f32.mrf.mxu1  ;;  %1370 = vmatpush1.bf16.msra.mxu0 %v1316_v17 }
 0x173   : > { %3367 = vmatprep.subr.msk.bf16.mxu0 %vm1052_vm4, %v1321_v13  ;;  %v1038_v27 = vadd.f32 %v1020_v43, %v853_v54  ;;  %v3757_v43 = vld [vmem:[#allocation9 + $0x94] ss:$12 sps:$4 sm:$0xff]   ;;  %v3767_v54 = vld [vmem:[#allocation9 + $0x30] ss:$12 sps:$4 sm:$0xff]  }
 0x174   : > { %v4414_v58 = vpop.f32.mrf.mxu1 }
 0x175   : > { %3360 = vmatmul.mubr.msk.bf16.vlgmr.msra.gmra.mxu0 %vm1335_vm5, %v4408_v37  ;;  %v1041_v49 = vadd.f32 %v4414_v58, %v856_v15  ;;  %v3799_v15 = vld [vmem:[#allocation9 + $0x214] ss:$12 sps:$4 sm:$0xff]  }
 0x176   : > { %v1024_v61 = vpop.f32.mrf.mxu1  ;;  %1488 = vmatpush1.bf16.msra.mxu0 %v1344_v41  ;;  %1397 = vmatprep.mubr.bf16.mxu0 %v4623_v33  ;;  %v857_v41 = vadd.f32 %v4404_v10, %v675_v19  ;;  %v3787_v19 = vld [vmem:[#allocation9 + $0x124] ss:$12 sps:$4 sm:$0xff]  }
 0x177   : > { %1489 = vmatprep.subr.bf16.mxu0 %v1317_v18 }
 0x178   : > { %v1189_v38 = vpop.f32.mrf.mxu1  ;;  %v1042_v51 = vadd.f32 %v1024_v61, %v857_v41  ;;  %v3760_v61 = vld [vmem:[#allocation9 + $0x7c] ss:$12 sps:$4 sm:$0xff]   ;;  %v3800_v41 = vld [vmem:[#allocation9 + $0xd8] ss:$12 sps:$4 sm:$0xff]  }
 0x179   : > { %v1210_v47 = vadd.f32 %v1189_v38, %v1029_v45 }
 0x17a   : > { %v1191_v3 = vpop.f32.mrf.mxu1  ;;  %1490 = vmatpush1.bf16.msra.mxu0 %v1316_v17 }
 0x17b   : > { %v1248_v50 = vmul.f32 %v4427_v52, %v1210_v47  ;;  %v1211_v26 = vadd.f32 %v1191_v3, %v1030_v7  ;;  %2164 = vmatprep.subr.bf16.mxu0 %v3754_v22  ;;  %v3755_v22 = vld [vmem:[#allocation9 + $0x90] ss:$12 sps:$4 sm:$0xff]  }
 0x17c   : > { %v1193_v63 = vpop.f32.mrf.mxu1 }
 0x17d   : > { %v1249_v11 = vmul.f32 %v4430_v56, %v1211_v26  ;;  %v1214_v8 = vadd.f32 %v1193_v63, %v1033_v6  ;;  %3361 = vmatmul.mubr.msk.bf16.gmra.mxu0 %vm1335_vm5, %v4435_v24  ;;  %v1286_v30 = vadd.f32 %v4440_v1, %v1248_v50  ;;  %v3763_v50 = vld [vmem:[#allocation9 + $0x64] ss:$12 sps:$4 sm:$0xff]  }
 0x17e   : > { %v1195_v12 = vpop.f32.mrf.mxu1  ;;  %1507 = vmatprep.mubr.bf16.mxu0 %v4623_v33 }
 0x17f   : > { %v1252_v46 = vmul.f32 %v4427_v52, %v1214_v8  ;;  %v1215_v4 = vadd.f32 %v1195_v12, %v1034_v44  ;;  %v1287_v55 = vadd.f32 %v1279_v5, %v1249_v11  ;;  %v1302_v32 = vmax.f32 %v1286_v30, 0.0  ;;  %v3769_v8 = vld [vmem:[#allocation9 + $0x34] ss:$12 sps:$4 sm:$0xff]   ;;  %v3772_v12 = vld [vmem:[#allocation9 + $0x1c] ss:$12 sps:$4 sm:$0xff]  }
 0x180   : > { %v1199_v39 = vpop.f32.mrf.mxu1  ;;  %v3775_v30 = vld [vmem:[#allocation9 + $0x4] ss:$12 sps:$4 sm:$0xff]  }
 0x181   : > { %v1290_v31 = vadd.f32 %v4440_v1, %v1252_v46  ;;  %v1253_v2 = vmul.f32 %v4430_v56, %v1215_v4  ;;  %v1218_v13 = vadd.f32 %v1199_v39, %v1037_v14  ;;  %v1303_v60 = vmax.f32 %v1287_v55, 0.0  ;;  %v3770_v14 = vld [vmem:[#allocation9 + $0x18] ss:$12 sps:$4 sm:$0xff]   ;;  %v3773_v46 = vld [vmem:[#allocation9] ss:$12 sps:$4 sm:$0xff]  }
 0x182   : > { %v1201_v18 = vpop.f32.mrf.mxu1  ;;  %v3778_v4 = vld [vmem:[#allocation9 + $0x16c] ss:$12 sps:$4 sm:$0xff]   ;;  %v3791_v55 = vld [vmem:[#allocation9 + $0x228] ss:$12 sps:$4 sm:$0xff]  }
 0x183   : > { %v1306_v34 = vmax.f32 %v1290_v31, 0.0  ;;  %v1291_v17 = vadd.f32 %v1279_v5, %v1253_v2  ;;  %v1219_v29 = vadd.f32 %v1201_v18, %v1038_v27  ;;  %v1256_v59 = vmul.f32 %v4427_v52, %v1218_v13  ;;  %v3788_v27 = vld [vmem:[#allocation9 + $0x108] ss:$12 sps:$4 sm:$0xff]   ;;  %v3790_v39 = vld [vmem:[#allocation9 + $0x10c] ss:$12 sps:$4 sm:$0xff]  }
 0x184   : > { %v1203_v53 = vpop.f32.mrf.mxu1  ;;  %v3793_v31 = vld [vmem:[#allocation9 + $0x22c] ss:$12 sps:$4 sm:$0xff]   ;;  %v3794_v2 = vld [vmem:[#allocation9 + $0xf0] ss:$12 sps:$4 sm:$0xff]   ;;  %v3796_v13 = vld [vmem:[#allocation9 + $0xf4] ss:$12 sps:$4 sm:$0xff]  }
 0x185   : > { %v1318_v20 = vpack.c.bf16 %v1306_v34, %v1302_v32  ;;  %v1307_v36 = vmax.f32 %v1291_v17, 0.0  ;;  %v1257_v62 = vmul.f32 %v4430_v56, %v1219_v29  ;;  %3368 = vmatmul.mubr.msk.bf16.vlgmr.msra.gmra.mxu0 %vm1335_vm5, %v4461_v16  ;;  %v1222_v10 = vadd.f32 %v1203_v53, %v1041_v49  ;;  %v3802_v18 = vld [vmem:[#allocation9 + $0xdc] ss:$12 sps:$4 sm:$0xff]   ;;  %v3806_v34 = vld [vmem:[#allocation9 + $0xc0] ss:$12 sps:$4 sm:$0xff]  }
 0x186   : > { %v1205_v45 = vpop.f32.mrf.mxu1  ;;  %1517 = vmatprep.mubr.bf16.mxu0 %v4623_v33  ;;  %2165 = vmatpush1.bf16.msra.mxu0 %v3752_v21  ;;  %v1294_v57 = vadd.f32 %v4440_v1, %v1256_v59  ;;  %v3803_v21 = vld [vmem:[#allocation9 + $0x1f8] ss:$12 sps:$4 sm:$0xff]   ;;  %v3805_v32 = vld [vmem:[#allocation9 + $0x1fc] ss:$12 sps:$4 sm:$0xff]   ;;  %v3809_v29 = vld [vmem:[#allocation9 + $0x1e0] ss:$12 sps:$4 sm:$0xff]  }
 0x187   : > { %v1223_v38 = vadd.f32 %v1205_v45, %v1042_v51  ;;  %v1319_v58 = vpack.c.bf16 %v1307_v36, %v1303_v60  ;;  %2166 = vmatprep.subr.bf16.mxu0 %v3757_v43  ;;  %v1260_v48 = vmul.f32 %v4427_v52, %v1222_v10  ;;  %v1295_v7 = vadd.f32 %v1279_v5, %v1257_v62  ;;  %v3761_v52 = vld [vmem:[#allocation9 + $0x60] ss:$12 sps:$4 sm:$0xff]   ;;  %v3808_v17 = vld [vmem:[#allocation9 + $0xc4] ss:$12 sps:$4 sm:$0xff]   ;;  %v3812_v51 = vld [vmem:[#allocation9 + $0x1c8] ss:$12 sps:$4 sm:$0xff]  }
 0x188   : > { %v1310_v26 = vmax.f32 %v1294_v57, 0.0  ;;  %v3811_v43 = vld [vmem:[#allocation9 + $0x1e4] ss:$12 sps:$4 sm:$0xff]   ;;  %v3814_v49 = vld [vmem:[#allocation9 + $0x1cc] ss:$12 sps:$4 sm:$0xff]  }
 0x189   : > { %v1261_v47 = vmul.f32 %v4430_v56, %v1223_v38  ;;  %v1298_v3 = vadd.f32 %v4440_v1, %v1260_v48  ;;  %v1311_v63 = vmax.f32 %v1295_v7, 0.0  ;;  %v3766_v56 = vld [vmem:[#allocation9 + $0x4c] ss:$12 sps:$4 sm:$0xff]   ;;  %v3818_v59 = vld [vmem:[#allocation9 + $0x1b4] ss:$12 sps:$4 sm:$0xff]  }
 0x18a   : > { %2167 = vmatpush1.bf16.msra.mxu0 %v3755_v22  ;;  %v3816_v53 = vld [vmem:[#allocation9 + $0x1b0] ss:$12 sps:$4 sm:$0xff]   ;;  %v3820_v60 = vld [vmem:[#allocation9 + $0x198] ss:$12 sps:$4 sm:$0xff]   ;;  %v3824_v36 = vld [vmem:[#allocation9 + $0x180] ss:$12 sps:$4 sm:$0xff]  }
 0x18b   : > { %v1299_v6 = vadd.f32 %v1279_v5, %v1261_v47  ;;  %2168 = vmatprep.subr.bf16.mxu0 %v3760_v61  ;;  %v1314_v42 = vmax.f32 %v1298_v3, 0.0  ;;  %v3764_v5 = vld [vmem:[#allocation9 + $0x48] ss:$12 sps:$4 sm:$0xff]   ;;  %v3826_v62 = vld [vmem:[#allocation9 + $0x184] ss:$12 sps:$4 sm:$0xff]  }
 0x18c   : > { %v3828_v10 = vld [vmem:[#allocation9 + $0x288] ss:$12 sps:$4 sm:$0xff]   ;;  %v3830_v45 = vld [vmem:[#allocation9 + $0x28c] ss:$12 sps:$4 sm:$0xff]   ;;  %v3832_v22 = vld [vmem:[#allocation9 + $0x270] ss:$12 sps:$4 sm:$0xff]  }
 0x18d   : > { %v1315_v28 = vmax.f32 %v1299_v6, 0.0  ;;  %3369 = vmatmul.mubr.msk.bf16.gmra.mxu0 %vm1335_vm5, %v3751_v40  ;;  %v1322_v44 = vpack.c.bf16 %v1314_v42, %v1310_v26  ;;  %v3834_v38 = vld [vmem:[#allocation9 + $0x274] ss:$12 sps:$4 sm:$0xff]   ;;  %v3836_v61 = vld [vmem:[#allocation9 + $0x258] ss:$12 sps:$4 sm:$0xff]  }
 0x18e   : > { %2169 = vmatpush1.bf16.msra.mxu0 %v3758_v9  ;;  %v3842_v57 = vld [vmem:[#allocation9 + $0x244] ss:$12 sps:$4 sm:$0xff]   ;;  %v3840_v48 = vld [vmem:[#allocation9 + $0x240] ss:$12 sps:$4 sm:$0xff]  }
 0x18f   : > { %v1323_v11 = vpack.c.bf16 %v1315_v28, %v1311_v63  ;;  %2170 = vmatprep.subr.bf16.mxu0 %v3763_v50  ;;  %v1350_v1 = vsel %vm1052_vm4, %v1322_v44, 0  ;;  %v3844_v7 = vld [vmem:[#allocation9 + $0x170] ss:$12 sps:$4 sm:$0xff]  }
 0x191   : > { %3362 = vmatprep.subr.msk.bf16.mxu1 %vm1052_vm4, %v1323_v11 }
 0x192   : > { %1419 = vmatpush1.bf16.msra.mxu1 %v1350_v1  ;;  %2171 = vmatpush1.bf16.msra.mxu0 %v3761_v52 }
 0x193   : > { %1420 = vmatprep.subr.bf16.mxu1 %v1319_v58  ;;  %2172 = vmatprep.subr.bf16.mxu0 %v3766_v56 }
 0x196   : > { %1421 = vmatpush1.bf16.msra.mxu1 %v1318_v20  ;;  %2173 = vmatpush1.bf16.msra.mxu0 %v3764_v5 }
 0x197   : > { %3370 = vmatprep.subr.msk.bf16.mxu1 %vm1052_vm4, %v1323_v11  ;;  %2174 = vmatprep.subr.bf16.mxu0 %v3769_v8 }
 0x199   : > { %3363 = vmatmul.mubr.msk.bf16.vlgmr.msra.gmra.mxu1 %vm1335_vm5, %v4408_v37  ;;  %v3776_v37 = vld [vmem:[#allocation9 + $0x168] ss:$12 sps:$4 sm:$0xff]  }
 0x19a   : > { %1539 = vmatpush1.bf16.msra.mxu1 %v1350_v1  ;;  %1448 = vmatprep.mubr.bf16.mxu1 %v4623_v33 }
 0x19b   : > { %1540 = vmatprep.subr.bf16.mxu1 %v1319_v58  ;;  %2175 = vmatpush1.bf16.msra.mxu0 %v3767_v54  ;;  %v3838_v58 = vld [vmem:[#allocation9 + $0x25c] ss:$12 sps:$4 sm:$0xff]  }
 0x19c   : > { %2176 = vmatprep.subr.bf16.mxu0 %v3772_v12  ;;  %v3815_v12 = vld [vmem:[#allocation9 + $0x230] ss:$12 sps:$4 sm:$0xff]  }
 0x19e   : > { %1541 = vmatpush1.bf16.msra.mxu1 %v1318_v20  ;;  %v3822_v20 = vld [vmem:[#allocation9 + $0x19c] ss:$12 sps:$4 sm:$0xff]  }
 0x19f   : > { %2177 = vmatpush1.bf16.msra.mxu0 %v3770_v14  ;;  %2215 = vmatprep.subr.bf16.mxu1 %v3793_v31  ;;  %v3831_v31 = vld [vmem:[#allocation9 + $0x1d0] ss:$12 sps:$4 sm:$0xff]  }
 0x1a0   : > { %2178 = vmatprep.subr.bf16.mxu0 %v3775_v30 }
 0x1a1   : > { %3364 = vmatmul.mubr.msk.bf16.gmra.mxu1 %vm1335_vm5, %v4435_v24  ;;  %v3785_v24 = vld [vmem:[#allocation9 + $0x120] ss:$12 sps:$4 sm:$0xff]  }
 0x1a2   : > { %1558 = vmatprep.mubr.bf16.mxu1 %v4623_v33 }
 0x1a3   : > { %2179 = vmatpush1.bf16.msra.mxu0 %v3773_v46 }
 0x1a4   : > { %2180 = vmatprep.subr.bf16.mxu0 %v3778_v4 }
 0x1a7   : > { %2181 = vmatpush2.bf16.msra.mxu0 %v3776_v37 }
 0x1a8   : > { %2182 = vmatprep.subr.bf16.mxu0 %v3781_v35  ;;  %v3819_v35 = vld [vmem:[#allocation9 + $0x218] ss:$12 sps:$4 sm:$0xff]  }
 0x1a9   : > { %3371 = vmatmul.mubr.msk.bf16.vlgmr.msra.gmra.mxu1 %vm1335_vm5, %v4461_v16  ;;  %v3797_v16 = vld [vmem:[#allocation9 + $0x210] ss:$12 sps:$4 sm:$0xff]  }
 0x1aa   : > { %1568 = vmatprep.mubr.bf16.mxu1 %v4623_v33  ;;  %2216 = vmatpush1.bf16.msra.mxu1 %v3791_v55 }
 0x1ab   : > { %2183 = vmatpush2.bf16.msra.mxu0 %v3779_v23  ;;  %2217 = vmatprep.subr.bf16.mxu1 %v3799_v15 }
 0x1ac   : > { %2184 = vmatprep.subr.bf16.mxu0 %v3784_v25  ;;  %v3823_v25 = vld [vmem:[#allocation9 + $0x200] ss:$12 sps:$4 sm:$0xff]  }
 0x1ae   : > { %2218 = vmatpush1.bf16.msra.mxu1 %v3797_v16  ;;  %v3835_v16 = vld [vmem:[#allocation9 + $0x1b8] ss:$12 sps:$4 sm:$0xff]  }
 0x1af   : > { %2185 = vmatpush2.bf16.msra.mxu0 %v3782_v0  ;;  %2219 = vmatprep.subr.bf16.mxu1 %v3805_v32 }
 0x1b0   : > { %2186 = vmatprep.subr.bf16.mxu0 %v3787_v19 }
 0x1b1   : > { %3372 = vmatmul.mubr.msk.bf16.gmra.mxu1 %vm1335_vm5, %v3751_v40 }
 0x1b2   : > { %2220 = vmatpush1.bf16.msra.mxu1 %v3803_v21 }
 0x1b3   : > { %2187 = vmatpush2.bf16.msra.mxu0 %v3785_v24  ;;  %2221 = vmatprep.subr.bf16.mxu1 %v3811_v43  ;;  %v3846_v43 = vld [vmem:[#allocation9 + $0x290] ss:$12 sps:$4 sm:$0xff]  }
 0x1b4   : > { %2188 = vmatprep.subr.bf16.mxu0 %v3790_v39 }
 0x1b6   : > { %2222 = vmatpush1.bf16.msra.mxu1 %v3809_v29 }
 0x1b7   : > { %2189 = vmatpush2.bf16.msra.mxu0 %v3788_v27  ;;  %2223 = vmatprep.subr.bf16.mxu1 %v3814_v49  ;;  %v3827_v27 = vld [vmem:[#allocation9 + $0x1e8] ss:$12 sps:$4 sm:$0xff]  }
 0x1b8   : > { %2190 = vmatprep.subr.bf16.mxu0 %v3796_v13 }
 0x1ba   : > { %2224 = vmatpush1.bf16.msra.mxu1 %v3812_v51 }
 0x1bb   : > { %2191 = vmatpush2.bf16.msra.mxu0 %v3794_v2  ;;  %2225 = vmatprep.subr.bf16.mxu1 %v3818_v59 }
 0x1bc   : > { %2192 = vmatprep.subr.bf16.mxu0 %v3802_v18  ;;  %v3839_v18 = vld [vmem:[#allocation9 + $0x1a0] ss:$12 sps:$4 sm:$0xff]  }
 0x1be   : > { %2226 = vmatpush1.bf16.msra.mxu1 %v3816_v53 }
 0x1bf   : > { %2193 = vmatpush2.bf16.msra.mxu0 %v3800_v41  ;;  %2227 = vmatprep.subr.bf16.mxu1 %v3822_v20 }
 0x1c0   : > { %2194 = vmatprep.subr.bf16.mxu0 %v3808_v17 }
 0x1c2   : > { %2228 = vmatpush1.bf16.msra.mxu1 %v3820_v60 }
 0x1c3   : > { %2195 = vmatpush2.bf16.msra.mxu0 %v3806_v34  ;;  %2229 = vmatprep.subr.bf16.mxu1 %v3826_v62  ;;  %v3843_v34 = vld [vmem:[#allocation9 + $0x188] ss:$12 sps:$4 sm:$0xff]   ;;  %v3845_v62 = vld [vmem:[#allocation9 + $0xb0] ss:$12 sps:$4 sm:$0xff]  }
 0x1c4   : > { %2314 = vmatprep.subr.bf16.mxu0 %v4623_v33 }
 0x1c6   : > { %2230 = vmatpush1.bf16.msra.mxu1 %v3824_v36 }
 0x1c7   : > { %2239 = vmatprep.subr.bf16.mxu1 %v3830_v45 }
 0x1ca   : > { %2240 = vmatpush2.bf16.msra.mxu1 %v3828_v10  ;;  %v3849_v10 = vld [vmem:[#allocation9 + $0x278] ss:$12 sps:$4 sm:$0xff]  }
 0x1cb   : > { %2241 = vmatprep.subr.bf16.mxu1 %v3834_v38  ;;  %v3847_v38 = vld [vmem:[#allocation9 + $0x158] ss:$12 sps:$4 sm:$0xff]  }
 0x1ce   : > { %2242 = vmatpush2.bf16.msra.mxu1 %v3832_v22 }
 0x1cf   : > { %2243 = vmatprep.subr.bf16.mxu1 %v3838_v58 }
 0x1d2   : > { %2244 = vmatpush2.bf16.msra.mxu1 %v3836_v61 }
 0x1d3   : > { %2245 = vmatprep.subr.bf16.mxu1 %v3842_v57 }
 0x1d6   : > { %2246 = vmatpush2.bf16.msra.mxu1 %v3840_v48  ;;  %v3848_v48 = vld [vmem:[#allocation9 + $0x98] ss:$12 sps:$4 sm:$0xff]  }
 0x1d7   : > { %3563 = vmatprep.subr.bf16.mxu1 %v3844_v7  ;;  %v3852_v7 = vld [vmem:[#allocation9 + $0x260] ss:$12 sps:$4 sm:$0xff]  }
 0x235   : > { %v1389_v47 = vpop.f32.mrf.mxu0 }
 0x237   : > { %v1391_v40 = vpop.f32.mrf.mxu0 }
 0x239   : > { %v1393_v3 = vpop.f32.mrf.mxu0 }
 0x23b   : > { %v1395_v9 = vpop.f32.mrf.mxu0 }
 0x23d   : > { %v1399_v6 = vpop.f32.mrf.mxu0 }
 0x23f   : > { %v1401_v50 = vpop.f32.mrf.mxu0 }
 0x241   : > { %v1403_v26 = vpop.f32.mrf.mxu0 }
 0x242   : > { %v3855_v26 = vld [vmem:[#allocation9 + $0x248] ss:$12 sps:$4 sm:$0xff]  }
 0x243   : > { %v1404_v42 = vpop.f32.mrf.mxu0 }
 0x244   : > { %v3859_v42 = vld [vmem:[#allocation9 + $0x4cc] ss:$12 sps:$4 sm:$0xff]  }
 0x245   : > { %v1509_v63 = vpop.f32.mrf.mxu0 }
 0x246   : > { %v1577_v52 = vmax.f32 %v1389_v47, %v1509_v63  ;;  %v3854_v63 = vld [vmem:[#allocation9 + $0x68] ss:$12 sps:$4 sm:$0xff]  }
 0x247   : > { %v1511_v28 = vpop.f32.mrf.mxu0 }
 0x248   : > { %v1578_v1 = vmax.f32 %v1391_v40, %v1511_v28  ;;  %v3850_v40 = vld [vmem:[#allocation9 + $0x140] ss:$12 sps:$4 sm:$0xff]   ;;  %v3856_v28 = vld [vmem:[#allocation9 + $0x110] ss:$12 sps:$4 sm:$0xff]  }
 0x249   : > { %v1513_v44 = vpop.f32.mrf.mxu0 }
 0x24a   : > { %v1581_v11 = vmax.f32 %v1393_v3, %v1513_v44  ;;  %v3857_v44 = vld [vmem:[#allocation9 + $0x4c8] ss:$12 sps:$4 sm:$0xff]  }
 0x24b   : > { %v1515_v56 = vpop.f32.mrf.mxu0 }
 0x24c   : > { %v1582_v5 = vmax.f32 %v1395_v9, %v1515_v56  ;;  %v4492_v14 = vpack.c.bf16 %v1581_v11, %v1577_v52  ;;  %v3851_v9 = vld [vmem:[#allocation9 + $0x80] ss:$12 sps:$4 sm:$0xff]   ;;  %v3860_v11 = vld [vmem:[#allocation9 + $0x50] ss:$12 sps:$4 sm:$0xff]   ;;  %v3861_v56 = vld [vmem:[#allocation9 + $0xf8] ss:$12 sps:$4 sm:$0xff]  }
 0x24d   : > { %v1519_v8 = vpop.f32.mrf.mxu0  ;;  %v3864_v52 = vld [vmem:[#allocation9 + $0x4b4] ss:$12 sps:$4 sm:$0xff]  }
 0x24e   : > { %v4490_v54 = vpack.c.bf16 %v1582_v5, %v1578_v1  ;;  %v1585_v23 = vmax.f32 %v1399_v6, %v1519_v8  ;;  %v3862_v1 = vld [vmem:[#allocation9 + $0x4b0] ss:$12 sps:$4 sm:$0xff]   ;;  %v3865_v8 = vld [vmem:[#allocation9 + $0x38] ss:$12 sps:$4 sm:$0xff]  }
 0x24f   : > { %v1521_v30 = vpop.f32.mrf.mxu0  ;;  %v3869_v5 = vld [vmem:[#allocation9 + $0x49c] ss:$12 sps:$4 sm:$0xff]  }
 0x250   : > { %2196 = vmatprep.mubr.bf16.mxu0 %v4490_v54  ;;  %v1586_v46 = vmax.f32 %v1401_v50, %v1521_v30  ;;  %v4500_v24 = vpack.c.bf16 %v1585_v23, %v1585_v23  ;;  %v3853_v50 = vld [vmem:[#allocation9 + $0x128] ss:$12 sps:$4 sm:$0xff]   ;;  %v3867_v30 = vld [vmem:[#allocation9 + $0x498] ss:$12 sps:$4 sm:$0xff]   ;;  %v3872_v23 = vld [vmem:[#allocation9 + $0x480] ss:$12 sps:$4 sm:$0xff]  }
 0x251   : > { %2197 = vmatmul.mubr.bf16.vlgmr.msra.gmra.mxu0 %v4492_v14  ;;  %v1523_v4 = vpop.f32.mrf.mxu0 }
 0x252   : > { %2315 = vmatpush1.bf16.msra.mxu0 %v3815_v12  ;;  %v4496_v37 = vpack.c.bf16 %v1586_v46, %v1586_v46  ;;  %v3866_v12 = vld [vmem:[#allocation9 + $0xe0] ss:$12 sps:$4 sm:$0xff]   ;;  %v3874_v46 = vld [vmem:[#allocation9 + $0x484] ss:$12 sps:$4 sm:$0xff]  }
 0x253   : > { %2316 = vmatprep.subr.bf16.mxu0 %v4623_v33  ;;  %v1524_v0 = vpop.f32.mrf.mxu0  ;;  %v3870_v4 = vld [vmem:[#allocation9 + $0x20] ss:$12 sps:$4 sm:$0xff]  }
 0x254   : > { %2206 = vmatprep.mubr.bf16.mxu0 %v4496_v37  ;;  %v3881_v0 = vld [vmem:[#allocation9 + $0x46c] ss:$12 sps:$4 sm:$0xff]  }
 0x256   : > { %2317 = vmatpush1.bf16.msra.mxu0 %v3819_v35  ;;  %v3871_v35 = vld [vmem:[#allocation9 + $0xc8] ss:$12 sps:$4 sm:$0xff]  }
 0x257   : > { %2318 = vmatprep.subr.bf16.mxu0 %v4623_v33 }
 0x259   : > { %v1440_v19 = vpop.f32.mrf.mxu1  ;;  %2207 = vmatmul.mubr.bf16.gmra.mxu0 %v4500_v24 }
 0x25a   : > { %2319 = vmatpush1.bf16.msra.mxu0 %v3823_v25  ;;  %v3875_v25 = vld [vmem:[#allocation9 + $0x8] ss:$12 sps:$4 sm:$0xff]  }
 0x25b   : > { %v1442_v39 = vpop.f32.mrf.mxu1  ;;  %2320 = vmatprep.subr.bf16.mxu0 %v4623_v33 }
 0x25d   : > { %v1444_v55 = vpop.f32.mrf.mxu1 }
 0x25e   : > { %2321 = vmatpush1.bf16.msra.mxu0 %v3827_v27  ;;  %v3879_v27 = vld [vmem:[#allocation9 + $0x468] ss:$12 sps:$4 sm:$0xff]  }
 0x25f   : > { %v1446_v2 = vpop.f32.mrf.mxu1  ;;  %2322 = vmatprep.subr.bf16.mxu0 %v4623_v33 }
 0x261   : > { %v1450_v13 = vpop.f32.mrf.mxu1 }
 0x262   : > { %2323 = vmatpush1.bf16.msra.mxu0 %v3831_v31  ;;  %v3884_v31 = vld [vmem:[#allocation9 + $0x334] ss:$12 sps:$4 sm:$0xff]  }
 0x263   : > { %v1452_v15 = vpop.f32.mrf.mxu1  ;;  %2324 = vmatprep.subr.bf16.mxu0 %v4623_v33 }
 0x265   : > { %v1454_v41 = vpop.f32.mrf.mxu1 }
 0x266   : > { %2325 = vmatpush1.bf16.msra.mxu0 %v3835_v16  ;;  %v3882_v16 = vld [vmem:[#allocation9 + $0x330] ss:$12 sps:$4 sm:$0xff]   ;;  %v3891_v41 = vld [vmem:[#allocation9 + $0x438] ss:$12 sps:$4 sm:$0xff]  }
 0x267   : > { %v1455_v21 = vpop.f32.mrf.mxu1  ;;  %2326 = vmatprep.subr.bf16.mxu0 %v4623_v33 }
 0x268   : > { %v3888_v21 = vld [vmem:[#allocation9 + $0x318] ss:$12 sps:$4 sm:$0xff]  }
 0x269   : > { %v1560_v32 = vpop.f32.mrf.mxu1 }
 0x26a   : > { %2327 = vmatpush1.bf16.msra.mxu0 %v3839_v18  ;;  %v1579_v60 = vmax.f32 %v1440_v19, %v1560_v32  ;;  %v3878_v19 = vld [vmem:[#allocation9 + $0x34c] ss:$12 sps:$4 sm:$0xff]   ;;  %v3899_v18 = vld [vmem:[#allocation9 + $0x424] ss:$12 sps:$4 sm:$0xff]  }
 0x26b   : > { %v1562_v17 = vpop.f32.mrf.mxu1  ;;  %2328 = vmatprep.subr.bf16.mxu0 %v4623_v33  ;;  %v3896_v32 = vld [vmem:[#allocation9 + $0x304] ss:$12 sps:$4 sm:$0xff]  }
 0x26c   : > { %v1580_v59 = vmax.f32 %v1442_v39, %v1562_v17  ;;  %v3887_v39 = vld [vmem:[#allocation9 + $0x454] ss:$12 sps:$4 sm:$0xff]   ;;  %v3905_v17 = vld [vmem:[#allocation9 + $0x52c] ss:$12 sps:$4 sm:$0xff]  }
 0x26d   : > { %v1564_v29 = vpop.f32.mrf.mxu1 }
 0x26e   : > { %2329 = vmatpush1.bf16.msra.mxu0 %v3843_v34  ;;  %v1583_v49 = vmax.f32 %v1444_v55, %v1564_v29  ;;  %v3876_v55 = vld [vmem:[#allocation9 + $0x348] ss:$12 sps:$4 sm:$0xff]   ;;  %v3897_v34 = vld [vmem:[#allocation9 + $0x420] ss:$12 sps:$4 sm:$0xff]  }
 0x26f   : > { %v1566_v51 = vpop.f32.mrf.mxu1  ;;  %2338 = vmatprep.subr.bf16.mxu0 %v4623_v33  ;;  %v3894_v29 = vld [vmem:[#allocation9 + $0x300] ss:$12 sps:$4 sm:$0xff]  }
 0x270   : > { %v1584_v53 = vmax.f32 %v1446_v2, %v1566_v51  ;;  %v4512_v45 = vpack.c.bf16 %v1583_v49, %v1579_v60  ;;  %v3885_v2 = vld [vmem:[#allocation9 + $0x450] ss:$12 sps:$4 sm:$0xff]   ;;  %v3903_v49 = vld [vmem:[#allocation9 + $0x528] ss:$12 sps:$4 sm:$0xff]  }
 0x271   : > { %v1570_v20 = vpop.f32.mrf.mxu1  ;;  %v3911_v51 = vld [vmem:[#allocation9 + $0x514] ss:$12 sps:$4 sm:$0xff]   ;;  %v3909_v60 = vld [vmem:[#allocation9 + $0x510] ss:$12 sps:$4 sm:$0xff]  }
 0x272   : > { %v4510_v36 = vpack.c.bf16 %v1584_v53, %v1580_v59  ;;  %2339 = vmatpush2.bf16.msra.mxu0 %v3846_v43  ;;  %v1587_v47 = vmax.f32 %v1450_v13, %v1570_v20  ;;  %v3893_v13 = vld [vmem:[#allocation9 + $0x43c] ss:$12 sps:$4 sm:$0xff]   ;;  %v3902_v43 = vld [vmem:[#allocation9 + $0x2ec] ss:$12 sps:$4 sm:$0xff]   ;;  %v3908_v53 = vld [vmem:[#allocation9 + $0x2d4] ss:$12 sps:$4 sm:$0xff]  }
 0x273   : > { %v1572_v22 = vpop.f32.mrf.mxu1  ;;  %2340 = vmatprep.subr.bf16.mxu0 %v4623_v33  ;;  %v3900_v59 = vld [vmem:[#allocation9 + $0x2e8] ss:$12 sps:$4 sm:$0xff]  }
 0x274   : > { %v1588_v58 = vmax.f32 %v1452_v15, %v1572_v22  ;;  %3457 = vmatprep.mubr.msk.bf16.mxu1 %vm2157_vm6, %v4510_v36  ;;  %3459 = vmatprep.mubr.msk.bf16.mxu0 %vm2157_vm6, %v4510_v36  ;;  %v4525_v6 = vpack.c.bf16 %v1587_v47, %v1587_v47  ;;  %v3890_v15 = vld [vmem:[#allocation9 + $0x31c] ss:$12 sps:$4 sm:$0xff]   ;;  %v3915_v22 = vld [vmem:[#allocation9 + $0x4f8] ss:$12 sps:$4 sm:$0xff]  }
 0x275   : > { %2248 = vmatmul.mubr.bf16.vlgmr.msra.gmra.mxu1 %v4512_v45  ;;  %v1574_v61 = vpop.f32.mrf.mxu1  ;;  %v3917_v20 = vld [vmem:[#allocation9 + $0x4fc] ss:$12 sps:$4 sm:$0xff]   ;;  %v3926_v47 = vld [vmem:[#allocation9 + $0x40c] ss:$12 sps:$4 sm:$0xff]  }
 0x276   : > { %v4520_v57 = vpack.c.bf16 %v1588_v58, %v1588_v58  ;;  %3564 = vmatpush3.bf16.msra.mxu1 %v3845_v62  ;;  %2341 = vmatpush2.bf16.msra.mxu0 %v3849_v10  ;;  %v3906_v62 = vld [vmem:[#allocation9 + $0x2d0] ss:$12 sps:$4 sm:$0xff]   ;;  %v3912_v58 = vld [vmem:[#allocation9 + $0x2b8] ss:$12 sps:$4 sm:$0xff]  }
 0x277   : > { %3565 = vmatprep.subr.bf16.mxu1 %v3847_v38  ;;  %2342 = vmatprep.subr.bf16.mxu0 %v4623_v33  ;;  %v1575_v3 = vpop.f32.mrf.mxu1  ;;  %v3914_v10 = vld [vmem:[#allocation9 + $0x2bc] ss:$12 sps:$4 sm:$0xff]   ;;  %v3923_v38 = vld [vmem:[#allocation9 + $0x4e4] ss:$12 sps:$4 sm:$0xff]  }
 0x278   : > { %3458 = vmatprep.mubr.msk.bf16.mxu1 %vm2157_vm6, %v4520_v57  ;;  %v3920_v61 = vld [vmem:[#allocation9 + $0x2a4] ss:$12 sps:$4 sm:$0xff]   ;;  %v3924_v3 = vld [vmem:[#allocation9 + $0x408] ss:$12 sps:$4 sm:$0xff]  }
 0x27a   : > { %3566 = vmatpush3.bf16.msra.mxu1 %v3848_v48  ;;  %2343 = vmatpush2.bf16.msra.mxu0 %v3852_v7  ;;  %v3921_v48 = vld [vmem:[#allocation9 + $0x4e0] ss:$12 sps:$4 sm:$0xff]  }
 0x27b   : > { %3567 = vmatprep.subr.bf16.mxu1 %v3850_v40  ;;  %2344 = vmatprep.subr.bf16.mxu0 %v4623_v33  ;;  %v3918_v7 = vld [vmem:[#allocation9 + $0x2a0] ss:$12 sps:$4 sm:$0xff]   ;;  %v3927_v40 = vld [vmem:[#allocation9 + $0x4d0] ss:$12 sps:$4 sm:$0xff]  }
 0x27d   : > { %2258 = vmatmul.mubr.bf16.gmra.mxu1 %v4525_v6 }
 0x27e   : > { %3568 = vmatpush3.bf16.msra.mxu1 %v3851_v9  ;;  %2298 = vmatprep.mubr.bf16.mxu1 %v4490_v54  ;;  %v3930_v9 = vld [vmem:[#allocation9 + $0x3f4] ss:$12 sps:$4 sm:$0xff]  }
 0x27f   : > { %3569 = vmatprep.subr.bf16.mxu1 %v3853_v50  ;;  %2345 = vmatpush2.bf16.msra.mxu0 %v3855_v26  ;;  %v3931_v50 = vld [vmem:[#allocation9 + $0x4b8] ss:$12 sps:$4 sm:$0xff]   ;;  %v3928_v26 = vld [vmem:[#allocation9 + $0x3f0] ss:$12 sps:$4 sm:$0xff]  }
 0x280   : > { %2974 = vmatprep.subr.bf16.mxu0 %v3859_v42  ;;  %v3934_v42 = vld [vmem:[#allocation9 + $0x3dc] ss:$12 sps:$4 sm:$0xff]  }
 0x282   : > { %3570 = vmatpush3.bf16.msra.mxu1 %v3854_v63  ;;  %2347 = vmatmul.mubr.bf16.vlgmr.msra.gmra.mxu0 %v4512_v45  ;;  %v3935_v63 = vld [vmem:[#allocation9 + $0x4a0] ss:$12 sps:$4 sm:$0xff]  }
 0x283   : > { %3571 = vmatprep.subr.bf16.mxu1 %v3856_v28  ;;  %3460 = vmatprep.mubr.msk.bf16.mxu0 %vm2157_vm6, %v4520_v57  ;;  %v3932_v28 = vld [vmem:[#allocation9 + $0x3d8] ss:$12 sps:$4 sm:$0xff]  }
 0x284   : > { %2975 = vmatpush1.bf16.msra.mxu0 %v3857_v44  ;;  %v3938_v44 = vld [vmem:[#allocation9 + $0x3c4] ss:$12 sps:$4 sm:$0xff]  }
 0x285   : > { %2976 = vmatprep.subr.bf16.mxu0 %v3864_v52  ;;  %v3939_v52 = vld [vmem:[#allocation9 + $0x488] ss:$12 sps:$4 sm:$0xff]  }
 0x286   : > { %3572 = vmatpush3.bf16.msra.mxu1 %v3860_v11  ;;  %v3936_v11 = vld [vmem:[#allocation9 + $0x3c0] ss:$12 sps:$4 sm:$0xff]  }
 0x287   : > { %3573 = vmatprep.subr.bf16.mxu1 %v3861_v56  ;;  %v3942_v56 = vld [vmem:[#allocation9 + $0x3ac] ss:$12 sps:$4 sm:$0xff]  }
 0x288   : > { %2977 = vmatpush1.bf16.msra.mxu0 %v3862_v1  ;;  %v3943_v1 = vld [vmem:[#allocation9 + $0x470] ss:$12 sps:$4 sm:$0xff]  }
 0x289   : > { %2978 = vmatprep.subr.bf16.mxu0 %v3869_v5  ;;  %v3940_v5 = vld [vmem:[#allocation9 + $0x3a8] ss:$12 sps:$4 sm:$0xff]  }
 0x28a   : > { %3574 = vmatpush3.bf16.msra.mxu1 %v3865_v8  ;;  %2355 = vmatmul.mubr.bf16.gmra.mxu0 %v4525_v6  ;;  %v3946_v8 = vld [vmem:[#allocation9 + $0x394] ss:$12 sps:$4 sm:$0xff]  }
 0x28b   : > { %3575 = vmatprep.subr.bf16.mxu1 %v3866_v12  ;;  %3545 = vmatprep.mubr.msk.bf16.mxu0 %vm2157_vm6, %v4510_v36  ;;  %v3947_v12 = vld [vmem:[#allocation9 + $0x458] ss:$12 sps:$4 sm:$0xff]  }
 0x28c   : > { %2979 = vmatpush1.bf16.msra.mxu0 %v3867_v30  ;;  %v3950_v30 = vld [vmem:[#allocation9 + $0x37c] ss:$12 sps:$4 sm:$0xff]  }
 0x28d   : > { %2980 = vmatprep.subr.bf16.mxu0 %v3874_v46  ;;  %v3951_v46 = vld [vmem:[#allocation9 + $0x440] ss:$12 sps:$4 sm:$0xff]  }
 0x28e   : > { %3576 = vmatpush3.bf16.msra.mxu1 %v3870_v4  ;;  %v3948_v4 = vld [vmem:[#allocation9 + $0x378] ss:$12 sps:$4 sm:$0xff]  }
 0x28f   : > { %3577 = vmatprep.subr.bf16.mxu1 %v3871_v35  ;;  %v3954_v35 = vld [vmem:[#allocation9 + $0x364] ss:$12 sps:$4 sm:$0xff]  }
 0x290   : > { %2981 = vmatpush1.bf16.msra.mxu0 %v3872_v23  ;;  %v3955_v23 = vld [vmem:[#allocation9 + $0x428] ss:$12 sps:$4 sm:$0xff]  }
 0x291   : > { %2982 = vmatprep.subr.bf16.mxu0 %v3881_v0  ;;  %v3952_v0 = vld [vmem:[#allocation9 + $0x360] ss:$12 sps:$4 sm:$0xff]  }
 0x292   : > { %3578 = vmatpush3.bf16.msra.mxu1 %v3875_v25  ;;  %v3956_v25 = vld [vmem:[#allocation9 + $0x410] ss:$12 sps:$4 sm:$0xff]  }
 0x293   : > { %2923 = vmatprep.subr.bf16.mxu1 %v3878_v19  ;;  %v3958_v19 = vld [vmem:[#allocation9 + $0x530] ss:$12 sps:$4 sm:$0xff]  }
 0x294   : > { %2983 = vmatpush1.bf16.msra.mxu0 %v3879_v27  ;;  %v3957_v27 = vld [vmem:[#allocation9 + $0x350] ss:$12 sps:$4 sm:$0xff]  }
 0x295   : > { %2299 = vmatmul.mubr.bf16.vlgmr.msra.gmra.mxu1 %v4492_v14  ;;  %2984 = vmatprep.subr.bf16.mxu0 %v3887_v39  ;;  %v3959_v39 = vld [vmem:[#allocation9 + $0x3f8] ss:$12 sps:$4 sm:$0xff]  }
 0x296   : > { %2306 = vmatprep.mubr.bf16.mxu1 %v4496_v37  ;;  %2924 = vmatpush1.bf16.msra.mxu1 %v3876_v55  ;;  %v3961_v55 = vld [vmem:[#allocation9 + $0x518] ss:$12 sps:$4 sm:$0xff]  }
 0x297   : > { %2925 = vmatprep.subr.bf16.mxu1 %v3884_v31  ;;  %v3960_v31 = vld [vmem:[#allocation9 + $0x338] ss:$12 sps:$4 sm:$0xff]  }
 0x298   : > { %2985 = vmatpush1.bf16.msra.mxu0 %v3885_v2  ;;  %v3962_v2 = vld [vmem:[#allocation9 + $0x3e0] ss:$12 sps:$4 sm:$0xff]  }
 0x299   : > { %2986 = vmatprep.subr.bf16.mxu0 %v3893_v13  ;;  %v3964_v13 = vld [vmem:[#allocation9 + $0x500] ss:$12 sps:$4 sm:$0xff]  }
 0x29a   : > { %2926 = vmatpush1.bf16.msra.mxu1 %v3882_v16  ;;  %v3963_v16 = vld [vmem:[#allocation9 + $0x320] ss:$12 sps:$4 sm:$0xff]  }
 0x29b   : > { %2927 = vmatprep.subr.bf16.mxu1 %v3890_v15  ;;  %v3965_v15 = vld [vmem:[#allocation9 + $0x3c8] ss:$12 sps:$4 sm:$0xff]  }
 0x29c   : > { %2987 = vmatpush1.bf16.msra.mxu0 %v3891_v41  ;;  %v3967_v41 = vld [vmem:[#allocation9 + $0x4e8] ss:$12 sps:$4 sm:$0xff]  }
 0x29d   : > { %2307 = vmatmul.mubr.bf16.gmra.mxu1 %v4500_v24  ;;  %2988 = vmatprep.subr.bf16.mxu0 %v3899_v18  ;;  %v3966_v18 = vld [vmem:[#allocation9 + $0x308] ss:$12 sps:$4 sm:$0xff]  }
 0x29e   : > { %2928 = vmatpush1.bf16.msra.mxu1 %v3888_v21  ;;  %2955 = vmatprep.mubr.bf16.mxu1 %v4490_v54  ;;  %v3968_v21 = vld [vmem:[#allocation9 + $0x3b0] ss:$12 sps:$4 sm:$0xff]  }
 0x29f   : > { %2929 = vmatprep.subr.bf16.mxu1 %v3896_v32  ;;  %v3969_v32 = vld [vmem:[#allocation9 + $0x2f0] ss:$12 sps:$4 sm:$0xff]  }
 0x2a0   : > { %2989 = vmatpush1.bf16.msra.mxu0 %v3897_v34  ;;  %v3970_v34 = vld [vmem:[#allocation9 + $0x398] ss:$12 sps:$4 sm:$0xff]  }
 0x2a1   : > { %2998 = vmatprep.subr.bf16.mxu0 %v3905_v17  ;;  %v3971_v17 = vld [vmem:[#allocation9 + $0x2d8] ss:$12 sps:$4 sm:$0xff]  }
 0x2a2   : > { %2930 = vmatpush1.bf16.msra.mxu1 %v3894_v29  ;;  %v3973_v29 = vld [vmem:[#allocation9 + $0x2c0] ss:$12 sps:$4 sm:$0xff]  }
 0x2a3   : > { %2931 = vmatprep.subr.bf16.mxu1 %v3902_v43  ;;  %v3975_v43 = vld [vmem:[#allocation9 + $0x2a8] ss:$12 sps:$4 sm:$0xff]  }
 0x2a4   : > { %2999 = vmatpush2.bf16.msra.mxu0 %v3903_v49 }
 0x2a5   : > { %3000 = vmatprep.subr.bf16.mxu0 %v3911_v51 }
 0x2a6   : > { %2932 = vmatpush1.bf16.msra.mxu1 %v3900_v59 }
 0x2a7   : > { %2933 = vmatprep.subr.bf16.mxu1 %v3908_v53 }
 0x2a8   : > { %3001 = vmatpush2.bf16.msra.mxu0 %v3909_v60 }
 0x2a9   : > { %3002 = vmatprep.subr.bf16.mxu0 %v3917_v20 }
 0x2aa   : > { %2934 = vmatpush1.bf16.msra.mxu1 %v3906_v62 }
 0x2ab   : > { %2935 = vmatprep.subr.bf16.mxu1 %v3914_v10 }
 0x2ac   : > { %3003 = vmatpush2.bf16.msra.mxu0 %v3915_v22 }
 0x2ad   : > { %3004 = vmatprep.subr.bf16.mxu0 %v3923_v38 }
 0x2ae   : > { %2936 = vmatpush1.bf16.msra.mxu1 %v3912_v58 }
 0x2af   : > { %2937 = vmatprep.subr.bf16.mxu1 %v3920_v61 }
 0x2b0   : > { %3005 = vmatpush2.bf16.msra.mxu0 %v3921_v48 }
 0x2b1   : > { %3073 = vmatprep.subr.bf16.mxu0 %v4623_v33 }
 0x2b2   : > { %2938 = vmatpush1.bf16.msra.mxu1 %v3918_v7 }
 0x2b3   : > { %2939 = vmatprep.subr.bf16.mxu1 %v3926_v47  ;;  %3007 = vmatmul.mubr.bf16.vlgmr.msra.gmra.mxu0 %v4512_v45 }
 0x2b4   : > { %3546 = vmatprep.mubr.msk.bf16.mxu0 %vm2157_vm6, %v4520_v57  ;;  %3074 = vmatpush1.bf16.msra.mxu0 %v3927_v40 }
 0x2b5   : > { %3075 = vmatprep.subr.bf16.mxu0 %v4623_v33 }
 0x2b6   : > { %2940 = vmatpush2.bf16.msra.mxu1 %v3924_v3 }
 0x2b7   : > { %2941 = vmatprep.subr.bf16.mxu1 %v3930_v9 }
 0x2b8   : > { %3076 = vmatpush1.bf16.msra.mxu0 %v3931_v50 }
 0x2b9   : > { %3077 = vmatprep.subr.bf16.mxu0 %v4623_v33 }
 0x2ba   : > { %2942 = vmatpush2.bf16.msra.mxu1 %v3928_v26 }
 0x2bb   : > { %2943 = vmatprep.subr.bf16.mxu1 %v3934_v42  ;;  %3017 = vmatmul.mubr.bf16.gmra.mxu0 %v4525_v6 }
 0x2bc   : > { %3078 = vmatpush1.bf16.msra.mxu0 %v3935_v63  ;;  %3547 = vmatprep.mubr.msk.bf16.mxu0 %vm2157_vm6, %v4510_v36  ;;  %v3944_v36 = vld [vmem:[#allocation9 + $0x390] ss:$12 sps:$4 sm:$0xff]  }
 0x2bd   : > { %3079 = vmatprep.subr.bf16.mxu0 %v4623_v33 }
 0x2be   : > { %2944 = vmatpush2.bf16.msra.mxu1 %v3932_v28 }
 0x2bf   : > { %2945 = vmatprep.subr.bf16.mxu1 %v3938_v44 }
 0x2c0   : > { %3080 = vmatpush1.bf16.msra.mxu0 %v3939_v52 }
 0x2c1   : > { %3081 = vmatprep.subr.bf16.mxu0 %v4623_v33 }
 0x2c2   : > { %2946 = vmatpush2.bf16.msra.mxu1 %v3936_v11 }
 0x2c3   : > { %2947 = vmatprep.subr.bf16.mxu1 %v3942_v56 }
 0x2c4   : > { %3082 = vmatpush1.bf16.msra.mxu0 %v3943_v1 }
 0x2c5   : > { %3083 = vmatprep.subr.bf16.mxu0 %v4623_v33 }
 0x2c6   : > { %2948 = vmatpush2.bf16.msra.mxu1 %v3940_v5 }
 0x2c7   : > { %2949 = vmatprep.subr.bf16.mxu1 %v3946_v8 }
 0x2c8   : > { %3084 = vmatpush1.bf16.msra.mxu0 %v3947_v12 }
 0x2c9   : > { %3085 = vmatprep.subr.bf16.mxu0 %v4623_v33 }
 0x2ca   : > { %2950 = vmatpush2.bf16.msra.mxu1 %v3944_v36 }
 0x2cb   : > { %2951 = vmatprep.subr.bf16.mxu1 %v3950_v30 }
 0x2cc   : > { %3086 = vmatpush1.bf16.msra.mxu0 %v3951_v46 }
 0x2cd   : > { %3087 = vmatprep.subr.bf16.mxu0 %v4623_v33 }
 0x2ce   : > { %2952 = vmatpush2.bf16.msra.mxu1 %v3948_v4 }
 0x2cf   : > { %2953 = vmatprep.subr.bf16.mxu1 %v3954_v35 }
 0x2d0   : > { %3088 = vmatpush1.bf16.msra.mxu0 %v3955_v23 }
 0x2d1   : > { %3097 = vmatprep.subr.bf16.mxu0 %v4623_v33 }
 0x2d2   : > { %2954 = vmatpush2.bf16.msra.mxu1 %v3952_v0 }
 0x2d3   : > { %3591 = vmatprep.subr.bf16.mxu1 %v3956_v25 }
 0x2d4   : > { %3098 = vmatpush2.bf16.msra.mxu0 %v3958_v19 }
 0x2d5   : > { %2956 = vmatmul.mubr.bf16.vlgmr.msra.gmra.mxu1 %v4492_v14  ;;  %3099 = vmatprep.subr.bf16.mxu0 %v4623_v33 }
 0x2d6   : > { %2965 = vmatprep.mubr.bf16.mxu1 %v4496_v37  ;;  %3592 = vmatpush3.bf16.msra.mxu1 %v3957_v27 }
 0x2d7   : > { %3593 = vmatprep.subr.bf16.mxu1 %v3959_v39 }
 0x2d8   : > { %3100 = vmatpush2.bf16.msra.mxu0 %v3961_v55 }
 0x2d9   : > { %3101 = vmatprep.subr.bf16.mxu0 %v4623_v33 }
 0x2da   : > { %3594 = vmatpush3.bf16.msra.mxu1 %v3960_v31 }
 0x2db   : > { %3595 = vmatprep.subr.bf16.mxu1 %v3962_v2 }
 0x2dc   : > { %3102 = vmatpush2.bf16.msra.mxu0 %v3964_v13 }
 0x2dd   : > { %2966 = vmatmul.mubr.bf16.gmra.mxu1 %v4500_v24  ;;  %3103 = vmatprep.subr.bf16.mxu0 %v4623_v33  ;;  %v3972_v33 = vld [vmem:[#allocation9 + $0x380] ss:$12 sps:$4 sm:$0xff]  }
 0x2de   : > { %3596 = vmatpush3.bf16.msra.mxu1 %v3963_v16  ;;  %3057 = vmatprep.mubr.bf16.mxu1 %v4490_v54  ;;  %v3974_v54 = vld [vmem:[#allocation9 + $0x368] ss:$12 sps:$4 sm:$0xff]  }
 0x2df   : > { %3597 = vmatprep.subr.bf16.mxu1 %v3965_v15 }
 0x2e0   : > { %3104 = vmatpush2.bf16.msra.mxu0 %v3967_v41 }
 0x2e2   : > { %3598 = vmatpush3.bf16.msra.mxu1 %v3966_v18 }
 0x2e3   : > { %3599 = vmatprep.subr.bf16.mxu1 %v3968_v21  ;;  %3106 = vmatmul.mubr.bf16.vlgmr.msra.gmra.mxu0 %v4512_v45 }
 0x2e4   : > { %3548 = vmatprep.mubr.msk.bf16.mxu0 %vm2157_vm6, %v4520_v57 }
 0x2e6   : > { %3600 = vmatpush3.bf16.msra.mxu1 %v3969_v32 }
 0x2e7   : > { %3601 = vmatprep.subr.bf16.mxu1 %v3970_v34 }
 0x2ea   : > { %3602 = vmatpush3.bf16.msra.mxu1 %v3971_v17 }
 0x2eb   : > { %3603 = vmatprep.subr.bf16.mxu1 %v3972_v33  ;;  %3114 = vmatmul.mubr.bf16.gmra.mxu0 %v4525_v6 }
 0x2ee   : > { %3604 = vmatpush3.bf16.msra.mxu1 %v3973_v29 }
 0x2ef   : > { %3605 = vmatprep.subr.bf16.mxu1 %v3974_v54 }
 0x2f2   : > { %3606 = vmatpush3.bf16.msra.mxu1 %v3975_v43 }
 0x2f5   : > { %3058 = vmatmul.mubr.bf16.vlgmr.msra.gmra.mxu1 %v4492_v14 }
 0x2f6   : > { %3065 = vmatprep.mubr.bf16.mxu1 %v4496_v37 }
 0x2fd   : > { %3066 = vmatmul.mubr.bf16.gmra.mxu1 %v4500_v24 }
 0x311   : > { %v2198_v45 = vpop.f32.mrf.mxu0 }
 0x313   : > { %v2200_v57 = vpop.f32.mrf.mxu0 }
 0x315   : > { %v2202_v49 = vpop.f32.mrf.mxu0 }
 0x317   : > { %v2204_v51 = vpop.f32.mrf.mxu0 }
 0x319   : > { %v2208_v59 = vpop.f32.mrf.mxu0 }
 0x31b   : > { %v2210_v53 = vpop.f32.mrf.mxu0 }
 0x31d   : > { %v2212_v60 = vpop.f32.mrf.mxu0 }
 0x31f   : > { %v2213_v20 = vpop.f32.mrf.mxu0 }
 0x335   : > { %v2249_v6 = vpop.f32.mrf.mxu1 }
 0x336   : > { %v2250_v62 = vadd.f32 %v2249_v6, %v2198_v45 }
 0x337   : > { %v2251_v10 = vpop.f32.mrf.mxu1 }
 0x338   : > { %v2252_v22 = vadd.f32 %v2251_v10, %v2200_v57 }
 0x339   : > { %v2253_v38 = vpop.f32.mrf.mxu1 }
 0x33a   : > { %v2254_v58 = vadd.f32 %v2253_v38, %v2202_v49 }
 0x33b   : > { %v2255_v61 = vpop.f32.mrf.mxu1 }
 0x33c   : > { %v2256_v14 = vadd.f32 %v2255_v61, %v2204_v51 }
 0x33d   : > { %v2259_v48 = vpop.f32.mrf.mxu1 }
 0x33e   : > { %v4569_v37 = vadd.f32 %v2259_v48, %v2208_v59 }
 0x33f   : > { %v2261_v24 = vpop.f32.mrf.mxu1 }
 0x340   : > { %v4571_v7 = vadd.f32 %v2261_v24, %v2210_v53 }
 0x341   : > { %v2263_v47 = vpop.f32.mrf.mxu1 }
 0x342   : > { %v2348_v40 = vpop.f32.mrf.mxu0 }
 0x343   : > { %v2264_v3 = vpop.f32.mrf.mxu1 }
 0x344   : > { %v2350_v9 = vpop.f32.mrf.mxu0 }
 0x346   : > { %v2351_v50 = vpop.f32.mrf.mxu0 }
 0x348   : > { %v2353_v26 = vpop.f32.mrf.mxu0 }
 0x34a   : > { %v2356_v42 = vpop.f32.mrf.mxu0 }
 0x34c   : > { %v2358_v63 = vpop.f32.mrf.mxu0 }
 0x34e   : > { %v2359_v28 = vpop.f32.mrf.mxu0 }
 0x350   : > { %v2360_v44 = vpop.f32.mrf.mxu0 }
 0x355   : > { %v3579_v52 = vpop.f32.mrf.mxu1 }
 0x357   : > { %v3580_v11 = vpop.f32.mrf.mxu1 }
 0x358   : > { %v3581_v56 = vadd.f32 %v3580_v11, %v3579_v52 }
 0x359   : > { %v3582_v1 = vpop.f32.mrf.mxu1 }
 0x35a   : > { %v4573_v5 = vadd.f32 %v3581_v56, %v2348_v40 }
 0x35b   : > { %v3583_v8 = vpop.f32.mrf.mxu1 }
 0x35c   : > { %v3584_v12 = vadd.f32 %v3583_v8, %v3582_v1 }
 0x35d   : > { %v3585_v36 = vpop.f32.mrf.mxu1 }
 0x35e   : > { %v4575_v30 = vadd.f32 %v3584_v12, %v2351_v50 }
 0x35f   : > { %v3586_v46 = vpop.f32.mrf.mxu1 }
 0x360   : > { %v3587_v4 = vadd.f32 %v3586_v46, %v3585_v36 }
 0x361   : > { %v3588_v35 = vpop.f32.mrf.mxu1 }
 0x362   : > { %v4577_v23 = vadd.f32 %v3587_v4, %v2356_v42 }
 0x363   : > { %v3589_v0 = vpop.f32.mrf.mxu1 }
 0x373   : > { %v3008_v25 = vpop.f32.mrf.mxu0 }
 0x375   : > { %v3010_v19 = vpop.f32.mrf.mxu0 }
 0x377   : > { %v3012_v27 = vpop.f32.mrf.mxu0 }
 0x379   : > { %v3014_v39 = vpop.f32.mrf.mxu0 }
 0x37b   : > { %v3018_v55 = vpop.f32.mrf.mxu0 }
 0x37d   : > { %v3020_v31 = vpop.f32.mrf.mxu0 }
 0x37f   : > { %v3022_v2 = vpop.f32.mrf.mxu0 }
 0x381   : > { %v3023_v13 = vpop.f32.mrf.mxu0 }
 0x395   : > { %v2957_v16 = vpop.f32.mrf.mxu1 }
 0x396   : > { %v3009_v15 = vadd.f32 %v3008_v25, %v2957_v16 }
 0x397   : > { %v2959_v41 = vpop.f32.mrf.mxu1 }
 0x398   : > { %v3011_v18 = vadd.f32 %v3010_v19, %v2959_v41  ;;  %v3121_v32 = vmax.f32 %v2250_v62, %v3009_v15 }
 0x399   : > { %v2961_v21 = vpop.f32.mrf.mxu1 }
 0x39a   : > { %v3122_v34 = vmax.f32 %v2252_v22, %v3011_v18  ;;  %v3013_v17 = vadd.f32 %v3012_v27, %v2961_v21 }
 0x39b   : > { %v2963_v33 = vpop.f32.mrf.mxu1 }
 0x39c   : > { %v3557_v29 = vpack.c.bf16 %v3122_v34, %v3121_v32  ;;  %v3015_v54 = vadd.f32 %v3014_v39, %v2963_v33  ;;  %v3124_v45 = vmax.f32 %v2254_v58, %v3013_v17 }
 0x39d   : > { %v2967_v43 = vpop.f32.mrf.mxu1 }
 0x39e   : > { %3163 = vst [vmem:[%s4583_s20] sm:$0xff] %v3557_v29  ;;  %v3125_v57 = vmax.f32 %v2256_v14, %v3015_v54  ;;  %v3019_v49 = vadd.f32 %v3018_v55, %v2967_v43 }
 0x39f   : > { %v2969_v51 = vpop.f32.mrf.mxu1 }
 0x3a0   : > { %v3559_v59 = vpack.c.bf16 %v3125_v57, %v3124_v45  ;;  %v3021_v53 = vadd.f32 %v3020_v31, %v2969_v51  ;;  %v3127_v20 = vmax.f32 %v4569_v37, %v3019_v49 }
 0x3a1   : > { %v2971_v60 = vpop.f32.mrf.mxu1 }
 0x3a2   : > { %3165 = vst [vmem:[%s4583_s20 + $0xc] sm:$0xff] %v3559_v59  ;;  %v3128_v6 = vmax.f32 %v4571_v7, %v3021_v53 }
 0x3a3   : > { %v2972_v62 = vpop.f32.mrf.mxu1  ;;  %v3107_v10 = vpop.f32.mrf.mxu0 }
 0x3a4   : > { %v3561_v22 = vpack.c.bf16 %v3128_v6, %v3127_v20 }
 0x3a5   : > { %v3109_v38 = vpop.f32.mrf.mxu0 }
 0x3a6   : > { %3167 = vst [vmem:[%s4583_s20 + $0x18] sm:$0xff] %v3561_v22 }
 0x3a7   : > { %v3110_v61 = vpop.f32.mrf.mxu0 }
 0x3a9   : > { %v3112_v48 = vpop.f32.mrf.mxu0 }
 0x3ab   : > { %v3115_v24 = vpop.f32.mrf.mxu0 }
 0x3ad   : > { %v3117_v58 = vpop.f32.mrf.mxu0 }
 0x3af   : > { %v3118_v14 = vpop.f32.mrf.mxu0 }
 0x3b1   : > { %v3119_v47 = vpop.f32.mrf.mxu0 }
 0x3b5   : > { %v3607_v40 = vpop.f32.mrf.mxu1 }
 0x3b7   : > { %v3608_v3 = vpop.f32.mrf.mxu1 }
 0x3b8   : > { %v3609_v9 = vadd.f32 %v3608_v3, %v3607_v40 }
 0x3b9   : > { %v3610_v50 = vpop.f32.mrf.mxu1 }
 0x3ba   : > { %v3108_v37 = vadd.f32 %v3609_v9, %v3107_v10 }
 0x3bb   : > { %v3611_v26 = vpop.f32.mrf.mxu1 }
 0x3bc   : > { %v3123_v7 = vmax.f32 %v4573_v5, %v3108_v37  ;;  %v3612_v42 = vadd.f32 %v3611_v26, %v3610_v50 }
 0x3bd   : > { %v3613_v63 = vpop.f32.mrf.mxu1 }
 0x3be   : > { %v3558_v28 = vpack.c.bf16 %v3123_v7, %v3123_v7  ;;  %v3111_v44 = vadd.f32 %v3612_v42, %v3110_v61 }
 0x3bf   : > { %v3614_v52 = vpop.f32.mrf.mxu1 }
 0x3c0   : > { %3164 = vst [vmem:[%s4583_s20 + $0x8] sm:$0xf] %v3558_v28  ;;  %v3126_v11 = vmax.f32 %v4575_v30, %v3111_v44  ;;  %v3615_v56 = vadd.f32 %v3614_v52, %v3613_v63 }
 0x3c1   : > { %v3616_v1 = vpop.f32.mrf.mxu1 }
 0x3c2   : > { %v3560_v8 = vpack.c.bf16 %v3126_v11, %v3126_v11  ;;  %v3116_v12 = vadd.f32 %v3615_v56, %v3115_v24 }
 0x3c3   : > { %v3617_v36 = vpop.f32.mrf.mxu1 }
 0x3c4   : > { %3166 = vst [vmem:[%s4583_s20 + $0x14] sm:$0xf] %v3560_v8  ;;  %v3129_v46 = vmax.f32 %v4577_v23, %v3116_v12 }
 0x3c6   : > { %v3562_v4 = vpack.c.bf16 %v3129_v46, %v3129_v46 }
 0x3c8   : > { %3168 = vst [vmem:[%s4583_s20 + $0x20] sm:$0xf] %v3562_v4 }
 0x3c9 PF: > { %s19_s21 = sadd.s32 1, %s4124_s21  }
 0x3ca   : > { %p16_p1 = scmp.ge.s32.totalorder %s19_s21, 4  }
 0x3cc   :  { %18 = sbr.rel (!%p16_p1) target bundleno = 3 (0x3), region = 101 }
 0x3d1   :  { %3193 = vsyncpa [#allocation3], 1 }
 0x3d2   :  { %3195 = vsyncpa [#allocation3 + $0x1], 1 }
 0x3d3   :  { %3196 = vsyncpa [#allocation5], 1 }
 0x3d4   :  { %3197 = vsyncpa [#allocation8], 1 }

// kernel: convnet_forward.3
= control target key start
LH: loop header
LB: loop body
LE: loop exit
PB: predicated region body
PF: predicated region fallthrough
CT: control target
= control target key end

     0   :  { %13 = vsyncpa [#allocation3], 0  ;;  %s12033_s0 = inlined_call_operand.vmem [shape: bf16[48,384], index: 0, kind: input, shape index: {}]   ;;  %s12034_s1 = inlined_call_operand.vmem [shape: bf16[5,384,448], index: 1, kind: input, shape index: {}]   ;;  %s12035_s2 = inlined_call_operand.vmem [shape: f32[1,448], index: 2, kind: input, shape index: {}]   ;;  %s12036_s3 = inlined_call_operand.vmem [shape: f32[1,448], index: 3, kind: input, shape index: {}]   ;;  %s12037_s4 = inlined_call_operand.vmem [shape: bf16[2,7,20], index: 4, kind: input, shape index: {}]   ;;  %s12038_s5 = inlined_call_operand.vmem [shape: bf16[2,448,224], index: 5, kind: input, shape index: {}]   ;;  %s12039_s6 = inlined_call_operand.vmem [shape: bf16[7,224,128], index: 6, kind: input, shape index: {}]   ;;  %s12040_s7 = inlined_call_operand.vmem [shape: f32[1,128], index: 7, kind: input, shape index: {}]   ;;  %s12041_s8 = inlined_call_operand.hbm [shape: f32[2,1,128], index: 8, kind: output, shape index: {}]  }
   0x1   :  { %15 = vsyncpa [#allocation3 + $0x1], 0  ;;  %s9193_s27 = smov 0   ;;  %s9195_s28 = smov 0  }
   0x2   :  { %s9197_s29 = smov 0   ;;  %s9199_s30 = smov 0  }
   0x3 LB: > { %s9214_s9 = sadd.s32 4294967295, %s9144_s30   ;;  %s6713_s10 = sadd.s32 4294967294, %s9144_s30   ;;  %s9144_s30 = sphi %s9199_s30, %s12047_s30   ;;  %s9140_s29 = sphi %s9197_s29, %s12046_s29   ;;  %s9136_s28 = sphi %s9195_s28, %s12045_s28   ;;  %s9132_s27 = sphi %s9193_s27, %s12044_s27  }
   0x4   : > { %s9218_s11 = sadd.s32 1, %s9144_s30   ;;  %s201_s12 = sadd.s32 1, %s9140_s29 }
   0x5   : > { %s198_s13 = ssub.s32 %s9144_s30, %s9218_s11  ;;  %p211_p0 = scmp.ne.s32.totalorder %s9140_s29, %s9136_s28 }
   0x6   : > { %p199_p1 = scmp.eq.s32.totalorder %s198_s13, 0  ;;  %p212_p2 = scmp.eq.s32.totalorder %s9214_s9, 1 }
   0x7   : > { %p217_p3 = scmp.ne.s32.totalorder %s9136_s28, %s9132_s27  ;;  %p218_p4 = scmp.eq.s32.totalorder %s6713_s10, 1 }
   0x8   : > { %s9229_s14 = scalar_select %p199_p1, %s9140_s29, %s201_s12  }
   0x9   : > { %p9231_p5 = por %p212_p2, %p211_p0  ;;  %p9235_p6 = por %p218_p4, %p217_p3 }
   0xa   : > { %p6716_p7 = scmp.ge.s32.totalorder %s9144_s30, 1  ;;  %p267_p8 = scmp.lt.s32.totalorder %s9144_s30, 3 }
   0xc   : > { %p268_p9 = pnand %p6716_p7, %p267_p8 }
   0xd   : > { %s301_s18 = smul.u32 (!%p268_p9), 3, %s9214_s9  ;;  %s299_s10 = sand.u32 (!%p268_p9), 1, %s9136_s28  }
   0xe   : > { %271 = sbr.rel (%p268_p9) target bundleno = 1611 (0x64b), region = 52  ;;  %s8040_s13 = sshll.u32 (!%p268_p9), %s9214_s9, 4 }
   0xf   : > { %p302_p10 = scmp.lt.s32.totalorder (!%p268_p9), %s301_s18, 5  ;;  %s300_s17 = scalar_lea.vmem (!%p268_p9), [#allocation2], %s299_s10 }
  0x10   : > { %s6658_s19 = sshll.u32 (!%p268_p9), %s300_s17, 4  ;;  %s11992_s20 = scalar_lea.hbm (!%p268_p9), %s12041_s8, %s8040_s13  ;;  %s11994_s19 = int_to_ptr.vmem [resolvable:$true] %s6658_s19 }
  0x11   : > { %s6646_s22 = scalar_lea.sflag (!%p268_p9), [#allocation3], %s299_s10  ;;  %s9084_s9 = scalar_lea.vmem (!%p268_p9), %s11994_s19, 16 }
  0x12   : > { %p9085_p11 = scmp.ne.s32.totalorder (!%p268_p9), %s11994_s19, %s9084_s9  ;;  %s9147_s24 = smov (!%p268_p9), [#allocation2]  }
  0x13   : > { %v8084_v0 = vld [vmem:[%s12034_s1 + $0x3e4] ss:$16 sps:$4 sm:$0xff]   ;;  %v9146_v2 = vmov 0   ;;  %v8088_v3 = vld [vmem:[%s12034_s1 + $0x3e0] ss:$16 sps:$4 sm:$0xff]   ;;  %s12049_s18 = smov (!%p302_p10, %s301_s18), 5 }
  0x14   : > { %v8086_v1 = vld [vmem:[%s12034_s1 + $0x5e4] ss:$16 sps:$4 sm:$0xff]   ;;  %1144 = vmatprep.mubr.bf16.mxu1 %v9146_v2  ;;  %1061 = vmatprep.subr.bf16.mxu0 %v8084_v0  ;;  %v8089_v4 = vld [vmem:[%s12034_s1 + $0x5e0] ss:$16 sps:$4 sm:$0xff]   ;;  %s8043_s23 = smul.u32 12, %s12049_s18  ;;  %vm2052_vm1 = vcmask 1046528   ;;  %p9086_p12 = pnand %p9085_p11, %p9231_p5 }
  0x15   : > { %1112 = vmatprep.subr.bf16.mxu1 %v8086_v1  ;;  %v8090_v5 = vld [vmem:[%s12034_s1 + $0x3c4] ss:$16 sps:$4 sm:$0xff]   ;;  %1062 = vmatpush1.bf16.msra.mxu0 %v8088_v3  ;;  %v8094_v7 = vld [vmem:[%s12034_s1 + $0x3c0] ss:$16 sps:$4 sm:$0xff]   ;;  %vm529_vm0 = vsmask.f32 7424 }
  0x16   : > { %1113 = vmatpush1.bf16.msra.mxu1 %v8089_v4  ;;  %v8092_v6 = vld [vmem:[%s12034_s1 + $0x5c4] ss:$16 sps:$4 sm:$0xff]   ;;  %1063 = vmatprep.subr.bf16.mxu0 %v8090_v5  ;;  %v8095_v8 = vld [vmem:[%s12034_s1 + $0x5c0] ss:$16 sps:$4 sm:$0xff]   ;;  %s9321_s21 = scalar_lea.vmem %s12033_s0, %s8043_s23  ;;  %v8138_v44 = vld [vmem:[%s12034_s1 + $0x3ec] ss:$16 sps:$4 sm:$0xff]   ;;  %p9087_p13 = pneg %p9086_p12 }
  0x17   : > { %1114 = vmatprep.subr.bf16.mxu1 %v8092_v6  ;;  %v8096_v9 = vld [vmem:[%s12034_s1 + $0x3a4] ss:$16 sps:$4 sm:$0xff]   ;;  %v8100_v11 = vld [vmem:[%s12034_s1 + $0x3a0] ss:$16 sps:$4 sm:$0xff]   ;;  %v8136_v46 = vld [vmem:[%s12034_s1 + $0x3e8] ss:$16 sps:$4 sm:$0xff]  }
  0x18   : > { %v8098_v10 = vld [vmem:[%s12034_s1 + $0x5a4] ss:$16 sps:$4 sm:$0xff]   ;;  %v8101_v12 = vld [vmem:[%s12034_s1 + $0x5a0] ss:$16 sps:$4 sm:$0xff]   ;;  %v8144_v51 = vld [vmem:[%s12034_s1 + $0x3cc] ss:$16 sps:$4 sm:$0xff]  }
  0x19   : > { %1064 = vmatpush1.bf16.msra.mxu0 %v8094_v7  ;;  %v8102_v13 = vld [vmem:[%s12034_s1 + $0x384] ss:$16 sps:$4 sm:$0xff]   ;;  %v8106_v15 = vld [vmem:[%s12034_s1 + $0x380] ss:$16 sps:$4 sm:$0xff]   ;;  %v8142_v52 = vld [vmem:[%s12034_s1 + $0x3c8] ss:$16 sps:$4 sm:$0xff]  }
  0x1a   : > { %1115 = vmatpush1.bf16.msra.mxu1 %v8095_v8  ;;  %1065 = vmatprep.subr.bf16.mxu0 %v8096_v9  ;;  %v8104_v14 = vld [vmem:[%s12034_s1 + $0x584] ss:$16 sps:$4 sm:$0xff]   ;;  %v8107_v16 = vld [vmem:[%s12034_s1 + $0x580] ss:$16 sps:$4 sm:$0xff]   ;;  %v8150_v55 = vld [vmem:[%s12034_s1 + $0x3ac] ss:$16 sps:$4 sm:$0xff]  }
  0x1b   : > { %1116 = vmatprep.subr.bf16.mxu1 %v8098_v10  ;;  %v8108_v17 = vld [vmem:[%s12034_s1 + $0x364] ss:$16 sps:$4 sm:$0xff]   ;;  %v8112_v19 = vld [vmem:[%s12034_s1 + $0x360] ss:$16 sps:$4 sm:$0xff]   ;;  %v8148_v56 = vld [vmem:[%s12034_s1 + $0x3a8] ss:$16 sps:$4 sm:$0xff]  }
  0x1c   : > { %v8110_v18 = vld [vmem:[%s12034_s1 + $0x564] ss:$16 sps:$4 sm:$0xff]   ;;  %v8113_v20 = vld [vmem:[%s12034_s1 + $0x560] ss:$16 sps:$4 sm:$0xff]   ;;  %v8156_v60 = vld [vmem:[%s12034_s1 + $0x38c] ss:$16 sps:$4 sm:$0xff]  }
  0x1d   : > { %1066 = vmatpush1.bf16.msra.mxu0 %v8100_v11  ;;  %v8114_v21 = vld [vmem:[%s12034_s1 + $0x344] ss:$16 sps:$4 sm:$0xff]   ;;  %v8118_v23 = vld [vmem:[%s12034_s1 + $0x340] ss:$16 sps:$4 sm:$0xff]   ;;  %v8154_v61 = vld [vmem:[%s12034_s1 + $0x388] ss:$16 sps:$4 sm:$0xff]  }
  0x1e   : > { %1117 = vmatpush1.bf16.msra.mxu1 %v8101_v12  ;;  %1067 = vmatprep.subr.bf16.mxu0 %v8102_v13  ;;  %v8116_v22 = vld [vmem:[%s12034_s1 + $0x544] ss:$16 sps:$4 sm:$0xff]   ;;  %v8119_v24 = vld [vmem:[%s12034_s1 + $0x540] ss:$16 sps:$4 sm:$0xff]   ;;  %v8162_v0 = vld [vmem:[%s12034_s1 + $0x36c] ss:$16 sps:$4 sm:$0xff]  }
  0x1f   : > { %1118 = vmatprep.subr.bf16.mxu1 %v8104_v14  ;;  %v8120_v25 = vld [vmem:[%s12034_s1 + $0x324] ss:$16 sps:$4 sm:$0xff]   ;;  %v8124_v27 = vld [vmem:[%s12034_s1 + $0x320] ss:$16 sps:$4 sm:$0xff]   ;;  %v313_v1 = vld [vmem:[%s9321_s21 + $0x18] sm:$0xff]  ;;  %vm3682_vm3 = vcmask 1045504  }
  0x20   : > { %v8122_v26 = vld [vmem:[%s12034_s1 + $0x524] ss:$16 sps:$4 sm:$0xff]   ;;  %v8125_v28 = vld [vmem:[%s12034_s1 + $0x520] ss:$16 sps:$4 sm:$0xff]   ;;  %v8160_v3 = vld [vmem:[%s12034_s1 + $0x368] ss:$16 sps:$4 sm:$0xff]   ;;  %v9425_v5 = vcombine.high %v313_v1, %v313_v1  ;;  %v9436_v11 = vcombine.low %v313_v1, %v313_v1 }
  0x21   : > { %1068 = vmatpush1.bf16.msra.mxu0 %v8106_v15  ;;  %v9333_v29 = vld [vmem:[%s9321_s21 + $0x8] ss:$12 sps:$4 sm:$0xff]   ;;  %v8135_v30 = vld [vmem:[%s9321_s21 + $0x20] ss:$0 sps:$4 sm:$0xff]   ;;  %v9423_v4 = vld [vmem:[%s9321_s21 + $0x4] ss:$12 sps:$4 sm:$0xff]  }
  0x22   : > { %1119 = vmatpush1.bf16.msra.mxu1 %v8107_v16  ;;  %1069 = vmatprep.subr.bf16.mxu0 %v8108_v17  ;;  %v8126_v31 = vld [vmem:[%s12034_s1 + $0x304] ss:$16 sps:$4 sm:$0xff]   ;;  %v555_v33 = vshrl.u32 %v9333_v29, 16  ;;  %v557_v34 = vshll.u32 %v9333_v29, 16  ;;  %v562_v35 = vshll.u32 %v8135_v30, 16  ;;  %v572_v39 = vshrl.u32 %v8135_v30, 16 }
  0x23   : > { %1120 = vmatprep.subr.bf16.mxu1 %v8110_v18  ;;  %v8128_v32 = vld [vmem:[%s12034_s1 + $0x504] ss:$16 sps:$4 sm:$0xff]   ;;  %v8130_v36 = vld [vmem:[%s12034_s1 + $0x300] ss:$16 sps:$4 sm:$0xff]   ;;  %v543_v8 = vshrl.u32 %v9423_v4, 16  ;;  %v545_v9 = vshll.u32 %v9423_v4, 16 }
  0x24   : > { %v559_v37 = vrot.slane %v557_v34, 1  ;;  %v2880_v38 = vrot.slane %v562_v35, 2  ;;  %v8131_v40 = vld [vmem:[%s12034_s1 + $0x500] ss:$16 sps:$4 sm:$0xff]   ;;  %v8132_v41 = vld [vmem:[%s12034_s1 + $0x4e4] ss:$16 sps:$4 sm:$0xff]  }
  0x25   : > { %1070 = vmatpush1.bf16.msra.mxu0 %v8112_v19  ;;  %v564_v42 = vrot.slane %v562_v35, 1  ;;  %v2879_v45 = vrot.slane %v572_v39, 1  ;;  %v8139_v49 = vld [vmem:[%s12034_s1 + $0x4e0] ss:$16 sps:$4 sm:$0xff]   ;;  %v8140_v50 = vld [vmem:[%s12034_s1 + $0x4c4] ss:$16 sps:$4 sm:$0xff]  }
  0x26   : > { %1121 = vmatpush1.bf16.msra.mxu1 %v8113_v20  ;;  %1071 = vmatprep.subr.bf16.mxu0 %v8114_v21  ;;  %v560_v43 = vor.u32 %v559_v37, %v555_v33  ;;  %v8145_v53 = vld [vmem:[%s12034_s1 + $0x4c0] ss:$16 sps:$4 sm:$0xff]   ;;  %v8146_v54 = vld [vmem:[%s12034_s1 + $0x4a4] ss:$16 sps:$4 sm:$0xff]   ;;  %v550_v10 = vshll.u32 %v9425_v5, 16  ;;  %v547_v14 = vrot.slane %v545_v9, 1 }
  0x27   : > { %1122 = vmatprep.subr.bf16.mxu1 %v8116_v22  ;;  %v9363_v47 = vor.u32 %v2880_v38, %v2879_v45  ;;  %v9394_v57 = vor.u32 %v572_v39, %v564_v42  ;;  %v8151_v58 = vld [vmem:[%s12034_s1 + $0x4a0] ss:$16 sps:$4 sm:$0xff]   ;;  %v8152_v59 = vld [vmem:[%s12034_s1 + $0x484] ss:$16 sps:$4 sm:$0xff]   ;;  %v8168_v13 = vld [vmem:[%s12034_s1 + $0x34c] ss:$16 sps:$4 sm:$0xff]  }
  0x28   : > { %v9366_v48 = vsel %vm529_vm0, %v560_v43, %v564_v42  ;;  %v8157_v62 = vld [vmem:[%s12034_s1 + $0x480] ss:$16 sps:$4 sm:$0xff]   ;;  %v8158_v63 = vld [vmem:[%s12034_s1 + $0x464] ss:$16 sps:$4 sm:$0xff]   ;;  %v552_v15 = vrot.slane %v550_v10, 1  ;;  %v548_v19 = vor.u32 %v547_v14, %v543_v8  ;;  %v538_v21 = vshll.u32 %v9436_v11, 16 }
  0x29   : > { %1072 = vmatpush1.bf16.msra.mxu0 %v8118_v23  ;;  %v8163_v6 = vld [vmem:[%s12034_s1 + $0x460] ss:$16 sps:$4 sm:$0xff]   ;;  %v8164_v12 = vld [vmem:[%s12034_s1 + $0x444] ss:$16 sps:$4 sm:$0xff]   ;;  %v8166_v16 = vld [vmem:[%s12034_s1 + $0x348] ss:$16 sps:$4 sm:$0xff]  }
  0x2a   : > { %1123 = vmatpush1.bf16.msra.mxu1 %v8119_v24  ;;  %1073 = vmatprep.subr.bf16.mxu0 %v8120_v25  ;;  %v9431_v7 = vld [vmem:[%s9321_s21] ss:$12 sps:$4 sm:$0xff]   ;;  %v8170_v18 = vld [vmem:[%s12034_s1 + $0x424] ss:$16 sps:$4 sm:$0xff]   ;;  %v553_v23 = vsel %vm529_vm0, %v548_v19, %v552_v15  ;;  %v2866_v24 = vrot.slane %v538_v21, 2  ;;  %v566_v25 = vshrl.u32 %v9436_v11, 16 }
  0x2b   : > { %1124 = vmatprep.subr.bf16.mxu1 %v8122_v26  ;;  %v8169_v17 = vld [vmem:[%s12034_s1 + $0x440] ss:$16 sps:$4 sm:$0xff]   ;;  %v533_v20 = vshll.u32 %v9431_v7, 16  ;;  %v8174_v22 = vld [vmem:[%s12034_s1 + $0x32c] ss:$16 sps:$4 sm:$0xff]   ;;  %1093 = vmatprep.mubr.bf16.mxu0 %v553_v23  ;;  %v531_v30 = vshrl.u32 %v9431_v7, 16 }
  0x2c   : > { %v8172_v26 = vld [vmem:[%s12034_s1 + $0x328] ss:$16 sps:$4 sm:$0xff]   ;;  %v8180_v35 = vld [vmem:[%s12034_s1 + $0x30c] ss:$16 sps:$4 sm:$0xff]   ;;  %v8181_v38 = vld [vmem:[%s12034_s1 + $0x400] ss:$16 sps:$4 sm:$0xff]  }
  0x2d   : > { %1074 = vmatpush1.bf16.msra.mxu0 %v8124_v27  ;;  %v8175_v27 = vld [vmem:[%s12034_s1 + $0x420] ss:$16 sps:$4 sm:$0xff]   ;;  %v8178_v37 = vld [vmem:[%s12034_s1 + $0x308] ss:$16 sps:$4 sm:$0xff]   ;;  %v8192_v42 = vld [vmem:[%s12034_s1 + $0xe4] ss:$16 sps:$4 sm:$0xff]  }
  0x2e   : > { %1125 = vmatpush1.bf16.msra.mxu1 %v8125_v28  ;;  %1075 = vmatprep.subr.bf16.mxu0 %v8126_v31  ;;  %v8176_v28 = vld [vmem:[%s12034_s1 + $0x404] ss:$16 sps:$4 sm:$0xff]   ;;  %v535_v31 = vrot.slane %v533_v20, 1  ;;  %v569_v43 = vshrl.u32 %v9425_v5, 16  ;;  %v8217_v14 = vld [vmem:[%s12034_s1 + $0x448] ss:$16 sps:$4 sm:$0xff]  }
  0x2f   : > { %1126 = vmatprep.subr.bf16.mxu1 %v8128_v32  ;;  %v2865_v32 = vrot.slane %v566_v25, 1  ;;  %v8216_v1 = vld [vmem:[%s12034_s1 + $0x64] ss:$16 sps:$4 sm:$0xff]   ;;  %v8226_v19 = vld [vmem:[%s12034_s1 + $0x20] ss:$16 sps:$4 sm:$0xff]   ;;  %vm4487_vm4 = vcmask 1041408  }
  0x30   : > { %v536_v39 = vor.u32 %v535_v31, %v531_v30  ;;  %v8243_v31 = vld [vmem:[%s12034_s1 + $0x5cc] ss:$16 sps:$4 sm:$0xff]   ;;  %vm2861_vm2 = vsmask.f32 6400  ;;  %v8454_v29 = vld [vmem:[%s12034_s1 + $0x8e8] ss:$16 sps:$4 sm:$0xff]  }
  0x31   : > { %1076 = vmatpush1.bf16.msra.mxu0 %v8130_v36  ;;  %v9481_v36 = vor.u32 %v2866_v24, %v2865_v32  ;;  %v8232_v24 = vld [vmem:[%s12034_s1] ss:$16 sps:$4 sm:$0xff]   ;;  %v8246_v32 = vld [vmem:[%s12034_s1 + $0x1c4] ss:$16 sps:$4 sm:$0xff]   ;;  %vm4483_vm5 = vcmask 162816   ;;  %vm5013_vm6 = vcmask 523264  }
  0x32   : > { %1127 = vmatpush1.bf16.msra.mxu1 %v8131_v40  ;;  %1077 = vmatprep.subr.bf16.mxu0 %v8132_v41  ;;  %v540_v40 = vrot.slane %v538_v21, 1  ;;  %v8189_v41 = vld [vmem:[%s12034_s1 + $0x4ec] ss:$16 sps:$4 sm:$0xff]   ;;  %vm5670_vm7 = vcmask 785408   ;;  %s9088_s25 = sshll.u32 %s9147_s24, 4  ;;  %s9089_s25 = int_to_ptr.vmem [resolvable:$false] %s9088_s25 }
  0x33   : > { %1163 = vmatprep.subr.bf16.mxu1 %v8138_v44  ;;  %v8187_v44 = vld [vmem:[%s12034_s1 + $0x4e8] ss:$16 sps:$4 sm:$0xff]   ;;  %v8231_v21 = vld [vmem:[%s12034_s1 + $0x40c] ss:$16 sps:$4 sm:$0xff]   ;;  %s9090_s26 = scalar_lea.vmem %s9089_s25, 32  ;;  %p9091_p0 = scmp.lt.s32.totalorder %s11994_s19, %s9089_s25 }
  0x34   : > { %v9502_v45 = vsel %vm529_vm0, %v536_v39, %v540_v40  ;;  %v8252_v39 = vld [vmem:[%s12034_s1 + $0x1a4] ss:$16 sps:$4 sm:$0xff]   ;;  %p9092_p1 = scmp.lt.s32.totalorder %s9090_s26, %s9084_s9 }
  0x35   : > { %1145 = vmatmul.mubr.bf16.vlgmr.msra.gmra.mxu1 %v9366_v48  ;;  %1078 = vmatpush2.bf16.msra.mxu0 %v8139_v49  ;;  %v8195_v49 = vld [vmem:[%s12034_s1 + $0x4cc] ss:$16 sps:$4 sm:$0xff]  }
  0x36   : > { %1164 = vmatpush1.bf16.msra.mxu1 %v8136_v46  ;;  %1079 = vmatprep.subr.bf16.mxu0 %v8140_v50  ;;  %v8190_v46 = vld [vmem:[%s12034_s1 + $0xe0] ss:$16 sps:$4 sm:$0xff]   ;;  %v8198_v50 = vld [vmem:[%s12034_s1 + $0xc4] ss:$16 sps:$4 sm:$0xff]   ;;  %p9093_p2 = por %p9092_p1, %p9091_p0 }
  0x37   : > { %1165 = vmatprep.subr.bf16.mxu1 %v8144_v51  ;;  %1154 = vmatprep.mubr.bf16.mxu1 %v9146_v2  ;;  %v9515_v51 = vor.u32 %v569_v43, %v552_v15  ;;  %v8220_v15 = vld [vmem:[%s12034_s1 + $0x40] ss:$16 sps:$4 sm:$0xff]  }
  0x38   : > { %p9094_p3 = pnand %p9093_p2, %p9087_p13 }
  0x39   : > { %1080 = vmatpush2.bf16.msra.mxu0 %v8145_v53  ;;  %v8196_v53 = vld [vmem:[%s12034_s1 + $0xc0] ss:$16 sps:$4 sm:$0xff]  }
  0x3a   : > { %1166 = vmatpush1.bf16.msra.mxu1 %v8142_v52  ;;  %1081 = vmatprep.subr.bf16.mxu0 %v8146_v54  ;;  %v8193_v52 = vld [vmem:[%s12034_s1 + $0x4c8] ss:$16 sps:$4 sm:$0xff]   ;;  %v8201_v54 = vld [vmem:[%s12034_s1 + $0x4ac] ss:$16 sps:$4 sm:$0xff]  }
  0x3b   : > { %1167 = vmatprep.subr.bf16.mxu1 %v8150_v55  ;;  %v8204_v55 = vld [vmem:[%s12034_s1 + $0xa4] ss:$16 sps:$4 sm:$0xff]  }
  0x3d   : > { %1155 = vmatmul.mubr.bf16.gmra.mxu1 %v9394_v57  ;;  %1082 = vmatpush2.bf16.msra.mxu0 %v8151_v58  ;;  %v9534_v58 = vor.u32 %v566_v25, %v540_v40  ;;  %v8237_v25 = vld [vmem:[%s12034_s1 + $0x5ec] ss:$16 sps:$4 sm:$0xff]   ;;  %v8247_v40 = vld [vmem:[%s12034_s1 + $0x5a8] ss:$16 sps:$4 sm:$0xff]  }
  0x3e   : > { %1168 = vmatpush1.bf16.msra.mxu1 %v8148_v56  ;;  %1083 = vmatprep.subr.bf16.mxu0 %v8152_v59  ;;  %v8199_v56 = vld [vmem:[%s12034_s1 + $0x4a8] ss:$16 sps:$4 sm:$0xff]   ;;  %v8202_v59 = vld [vmem:[%s12034_s1 + $0xa0] ss:$16 sps:$4 sm:$0xff]  }
  0x3f   : > { %1169 = vmatprep.subr.bf16.mxu1 %v8156_v60  ;;  %1195 = vmatprep.mubr.bf16.mxu1 %v553_v23  ;;  %v8207_v60 = vld [vmem:[%s12034_s1 + $0x48c] ss:$16 sps:$4 sm:$0xff]   ;;  %v8229_v23 = vld [vmem:[%s12034_s1 + $0x408] ss:$16 sps:$4 sm:$0xff]  }
  0x41   : > { %1084 = vmatpush2.bf16.msra.mxu0 %v8157_v62  ;;  %v8205_v62 = vld [vmem:[%s12034_s1 + $0x488] ss:$16 sps:$4 sm:$0xff]  }
  0x42   : > { %1170 = vmatpush1.bf16.msra.mxu1 %v8154_v61  ;;  %1085 = vmatprep.subr.bf16.mxu0 %v8158_v63  ;;  %v8210_v61 = vld [vmem:[%s12034_s1 + $0x84] ss:$16 sps:$4 sm:$0xff]   ;;  %v8208_v63 = vld [vmem:[%s12034_s1 + $0x80] ss:$16 sps:$4 sm:$0xff]  }
  0x43   : > { %1171 = vmatprep.subr.bf16.mxu1 %v8162_v0  ;;  %v8213_v0 = vld [vmem:[%s12034_s1 + $0x46c] ss:$16 sps:$4 sm:$0xff]  }
  0x45   : > { %1086 = vmatpush2.bf16.msra.mxu0 %v8163_v6  ;;  %v8214_v6 = vld [vmem:[%s12034_s1 + $0x60] ss:$16 sps:$4 sm:$0xff]  }
  0x46   : > { %1172 = vmatpush1.bf16.msra.mxu1 %v8160_v3  ;;  %1087 = vmatprep.subr.bf16.mxu0 %v8164_v12  ;;  %v8211_v3 = vld [vmem:[%s12034_s1 + $0x468] ss:$16 sps:$4 sm:$0xff]   ;;  %v8219_v12 = vld [vmem:[%s12034_s1 + $0x44c] ss:$16 sps:$4 sm:$0xff]  }
  0x47   : > { %1173 = vmatprep.subr.bf16.mxu1 %v8168_v13  ;;  %v8222_v13 = vld [vmem:[%s12034_s1 + $0x44] ss:$16 sps:$4 sm:$0xff]  }
  0x49   : > { %1088 = vmatpush2.bf16.msra.mxu0 %v8169_v17  ;;  %v8228_v17 = vld [vmem:[%s12034_s1 + $0x24] ss:$16 sps:$4 sm:$0xff]  }
  0x4a   : > { %1174 = vmatpush1.bf16.msra.mxu1 %v8166_v16  ;;  %1089 = vmatprep.subr.bf16.mxu0 %v8170_v18  ;;  %v8225_v16 = vld [vmem:[%s12034_s1 + $0x42c] ss:$16 sps:$4 sm:$0xff]   ;;  %v8223_v18 = vld [vmem:[%s12034_s1 + $0x428] ss:$16 sps:$4 sm:$0xff]  }
  0x4b   : > { %1175 = vmatprep.subr.bf16.mxu1 %v8174_v22  ;;  %v8234_v22 = vld [vmem:[%s12034_s1 + $0x4] ss:$16 sps:$4 sm:$0xff]  }
  0x4d   : > { %1090 = vmatpush2.bf16.msra.mxu0 %v8175_v27  ;;  %v8235_v27 = vld [vmem:[%s12034_s1 + $0x5e8] ss:$16 sps:$4 sm:$0xff]  }
  0x4e   : > { %1176 = vmatpush1.bf16.msra.mxu1 %v8172_v26  ;;  %1091 = vmatprep.subr.bf16.mxu0 %v8176_v28  ;;  %v8240_v26 = vld [vmem:[%s12034_s1 + $0x1e4] ss:$16 sps:$4 sm:$0xff]   ;;  %v8238_v28 = vld [vmem:[%s12034_s1 + $0x1e0] ss:$16 sps:$4 sm:$0xff]  }
  0x4f   : > { %1177 = vmatprep.subr.bf16.mxu1 %v8180_v35  ;;  %v8241_v35 = vld [vmem:[%s12034_s1 + $0x5c8] ss:$16 sps:$4 sm:$0xff]  }
  0x51   : > { %1092 = vmatpush2.bf16.msra.mxu0 %v8181_v38  ;;  %v8249_v38 = vld [vmem:[%s12034_s1 + $0x5ac] ss:$16 sps:$4 sm:$0xff]  }
  0x52   : > { %1178 = vmatpush1.bf16.msra.mxu1 %v8178_v37  ;;  %1751 = vmatprep.subr.bf16.mxu0 %v8192_v42  ;;  %v8244_v37 = vld [vmem:[%s12034_s1 + $0x1c0] ss:$16 sps:$4 sm:$0xff]   ;;  %v8255_v42 = vld [vmem:[%s12034_s1 + $0x58c] ss:$16 sps:$4 sm:$0xff]  }
  0x53   : > { %1179 = vmatprep.subr.bf16.mxu1 %v8189_v41  ;;  %v8250_v41 = vld [vmem:[%s12034_s1 + $0x1a0] ss:$16 sps:$4 sm:$0xff]  }
  0x54   : > { %1094 = vmatmul.mubr.bf16.vlgmr.msra.gmra.mxu0 %v9502_v45 }
  0x55   : > { %1752 = vmatpush1.bf16.msra.mxu0 %v8190_v46  ;;  %1103 = vmatprep.mubr.bf16.mxu0 %v9515_v51  ;;  %v8256_v46 = vld [vmem:[%s12034_s1 + $0x180] ss:$16 sps:$4 sm:$0xff]  }
  0x56   : > { %1180 = vmatpush2.bf16.msra.mxu1 %v8187_v44  ;;  %1753 = vmatprep.subr.bf16.mxu0 %v8198_v50  ;;  %v8258_v44 = vld [vmem:[%s12034_s1 + $0x184] ss:$16 sps:$4 sm:$0xff]  }
  0x57   : > { %1181 = vmatprep.subr.bf16.mxu1 %v8195_v49  ;;  %v8261_v49 = vld [vmem:[%s12034_s1 + $0x56c] ss:$16 sps:$4 sm:$0xff]   ;;  %v8264_v50 = vld [vmem:[%s12034_s1 + $0x164] ss:$16 sps:$4 sm:$0xff]  }
  0x59   : > { %1754 = vmatpush1.bf16.msra.mxu0 %v8196_v53  ;;  %v8267_v53 = vld [vmem:[%s12034_s1 + $0x54c] ss:$16 sps:$4 sm:$0xff]  }
  0x5a   : > { %1182 = vmatpush2.bf16.msra.mxu1 %v8193_v52  ;;  %1755 = vmatprep.subr.bf16.mxu0 %v8204_v55  ;;  %v8262_v52 = vld [vmem:[%s12034_s1 + $0x160] ss:$16 sps:$4 sm:$0xff]   ;;  %v8265_v55 = vld [vmem:[%s12034_s1 + $0x548] ss:$16 sps:$4 sm:$0xff]  }
  0x5b   : > { %1183 = vmatprep.subr.bf16.mxu1 %v8201_v54  ;;  %v8270_v54 = vld [vmem:[%s12034_s1 + $0x144] ss:$16 sps:$4 sm:$0xff]  }
  0x5c   : > { %1104 = vmatmul.mubr.bf16.gmra.mxu0 %v9534_v58 }
  0x5d   : > { %1756 = vmatpush1.bf16.msra.mxu0 %v8202_v59  ;;  %1783 = vmatprep.mubr.bf16.mxu0 %v9423_v4  ;;  %v8276_v59 = vld [vmem:[%s12034_s1 + $0x124] ss:$16 sps:$4 sm:$0xff]  }
  0x5e   : > { %1184 = vmatpush2.bf16.msra.mxu1 %v8199_v56  ;;  %1757 = vmatprep.subr.bf16.mxu0 %v8210_v61  ;;  %v8268_v56 = vld [vmem:[%s12034_s1 + $0x140] ss:$16 sps:$4 sm:$0xff]  }
  0x5f   : > { %1185 = vmatprep.subr.bf16.mxu1 %v8207_v60  ;;  %v8271_v60 = vld [vmem:[%s12034_s1 + $0x528] ss:$16 sps:$4 sm:$0xff]   ;;  %v8274_v61 = vld [vmem:[%s12034_s1 + $0x120] ss:$16 sps:$4 sm:$0xff]  }
  0x61   : > { %1758 = vmatpush1.bf16.msra.mxu0 %v8208_v63  ;;  %v8282_v63 = vld [vmem:[%s12034_s1 + $0x104] ss:$16 sps:$4 sm:$0xff]  }
  0x62   : > { %1186 = vmatpush2.bf16.msra.mxu1 %v8205_v62  ;;  %1759 = vmatprep.subr.bf16.mxu0 %v8216_v1  ;;  %v8279_v62 = vld [vmem:[%s12034_s1 + $0x50c] ss:$16 sps:$4 sm:$0xff]   ;;  %v8280_v1 = vld [vmem:[%s12034_s1 + $0x100] ss:$16 sps:$4 sm:$0xff]  }
  0x63   : > { %1187 = vmatprep.subr.bf16.mxu1 %v8213_v0  ;;  %v8277_v0 = vld [vmem:[%s12034_s1 + $0x508] ss:$16 sps:$4 sm:$0xff]  }
  0x65   : > { %1760 = vmatpush1.bf16.msra.mxu0 %v8214_v6  ;;  %v8312_v6 = vld [vmem:[%s12034_s1 + $0x2ec] ss:$16 sps:$4 sm:$0xff]  }
  0x66   : > { %1188 = vmatpush2.bf16.msra.mxu1 %v8211_v3  ;;  %1761 = vmatprep.subr.bf16.mxu0 %v8222_v13  ;;  %v8285_v3 = vld [vmem:[%s12034_s1 + $0x2e4] ss:$16 sps:$4 sm:$0xff]  }
  0x67   : > { %1189 = vmatprep.subr.bf16.mxu1 %v8219_v12  ;;  %v8283_v12 = vld [vmem:[%s12034_s1 + $0x2e0] ss:$16 sps:$4 sm:$0xff]   ;;  %v8288_v13 = vld [vmem:[%s12034_s1 + $0x2c4] ss:$16 sps:$4 sm:$0xff]  }
  0x69   : > { %1762 = vmatpush1.bf16.msra.mxu0 %v8220_v15  ;;  %v8318_v15 = vld [vmem:[%s12034_s1 + $0x2cc] ss:$16 sps:$4 sm:$0xff]  }
  0x6a   : > { %1190 = vmatpush2.bf16.msra.mxu1 %v8217_v14  ;;  %1763 = vmatprep.subr.bf16.mxu0 %v8228_v17  ;;  %v8310_v14 = vld [vmem:[%s12034_s1 + $0x2e8] ss:$16 sps:$4 sm:$0xff]  }
  0x6b   : > { %1191 = vmatprep.subr.bf16.mxu1 %v8225_v16  ;;  %v8286_v16 = vld [vmem:[%s12034_s1 + $0x2c0] ss:$16 sps:$4 sm:$0xff]   ;;  %v8316_v17 = vld [vmem:[%s12034_s1 + $0x2c8] ss:$16 sps:$4 sm:$0xff]  }
  0x6d   : > { %1764 = vmatpush1.bf16.msra.mxu0 %v8226_v19  ;;  %v8294_v19 = vld [vmem:[%s12034_s1 + $0x284] ss:$16 sps:$4 sm:$0xff]  }
  0x6e   : > { %1192 = vmatpush2.bf16.msra.mxu1 %v8223_v18  ;;  %1765 = vmatprep.subr.bf16.mxu0 %v8234_v22  ;;  %v8289_v18 = vld [vmem:[%s12034_s1 + $0x2a0] ss:$16 sps:$4 sm:$0xff]   ;;  %v8322_v22 = vld [vmem:[%s12034_s1 + $0x2a8] ss:$16 sps:$4 sm:$0xff]  }
  0x6f   : > { %1193 = vmatprep.subr.bf16.mxu1 %v8231_v21  ;;  %v8324_v21 = vld [vmem:[%s12034_s1 + $0x2ac] ss:$16 sps:$4 sm:$0xff]  }
  0x71   : > { %1766 = vmatpush1.bf16.msra.mxu0 %v8232_v24  ;;  %v8292_v24 = vld [vmem:[%s12034_s1 + $0x280] ss:$16 sps:$4 sm:$0xff]  }
  0x72   : > { %1194 = vmatpush2.bf16.msra.mxu1 %v8229_v23  ;;  %1767 = vmatprep.subr.bf16.mxu0 %v8240_v26  ;;  %v8330_v23 = vld [vmem:[%s12034_s1 + $0x28c] ss:$16 sps:$4 sm:$0xff]  }
  0x73   : > { %1214 = vmatprep.subr.bf16.mxu1 %v8237_v25  ;;  %v8297_v25 = vld [vmem:[%s12034_s1 + $0x264] ss:$16 sps:$4 sm:$0xff]   ;;  %v8336_v26 = vld [vmem:[%s12034_s1 + $0x26c] ss:$16 sps:$4 sm:$0xff]  }
  0x75   : > { %1196 = vmatmul.mubr.bf16.vlgmr.msra.gmra.mxu1 %v9502_v45  ;;  %1768 = vmatpush2.bf16.msra.mxu0 %v8238_v28  ;;  %v8253_v45 = vld [vmem:[%s12034_s1 + $0x588] ss:$16 sps:$4 sm:$0xff]   ;;  %v8300_v28 = vld [vmem:[%s12034_s1 + $0x244] ss:$16 sps:$4 sm:$0xff]  }
  0x76   : > { %1215 = vmatpush1.bf16.msra.mxu1 %v8235_v27  ;;  %1769 = vmatprep.subr.bf16.mxu0 %v8246_v32  ;;  %v8295_v27 = vld [vmem:[%s12034_s1 + $0x260] ss:$16 sps:$4 sm:$0xff]   ;;  %v8342_v32 = vld [vmem:[%s12034_s1 + $0x24c] ss:$16 sps:$4 sm:$0xff]  }
  0x77   : > { %1216 = vmatprep.subr.bf16.mxu1 %v8243_v31  ;;  %1205 = vmatprep.mubr.bf16.mxu1 %v9515_v51  ;;  %v8259_v51 = vld [vmem:[%s12034_s1 + $0x568] ss:$16 sps:$4 sm:$0xff]  }
  0x78   : > { %v8334_v31 = vld [vmem:[%s12034_s1 + $0x268] ss:$16 sps:$4 sm:$0xff]  }
  0x79   : > { %1770 = vmatpush2.bf16.msra.mxu0 %v8244_v37  ;;  %v8303_v37 = vld [vmem:[%s12034_s1 + $0x224] ss:$16 sps:$4 sm:$0xff]  }
  0x7a   : > { %1217 = vmatpush1.bf16.msra.mxu1 %v8241_v35  ;;  %1771 = vmatprep.subr.bf16.mxu0 %v8252_v39  ;;  %v8298_v35 = vld [vmem:[%s12034_s1 + $0x240] ss:$16 sps:$4 sm:$0xff]   ;;  %v8348_v39 = vld [vmem:[%s12034_s1 + $0x22c] ss:$16 sps:$4 sm:$0xff]  }
  0x7b   : > { %1218 = vmatprep.subr.bf16.mxu1 %v8249_v38  ;;  %v8340_v38 = vld [vmem:[%s12034_s1 + $0x248] ss:$16 sps:$4 sm:$0xff]  }
  0x7d   : > { %1206 = vmatmul.mubr.bf16.gmra.mxu1 %v9534_v58  ;;  %1772 = vmatpush2.bf16.msra.mxu0 %v8250_v41  ;;  %v8273_v58 = vld [vmem:[%s12034_s1 + $0x52c] ss:$16 sps:$4 sm:$0xff]   ;;  %v8306_v41 = vld [vmem:[%s12034_s1 + $0x204] ss:$16 sps:$4 sm:$0xff]  }
  0x7e   : > { %1219 = vmatpush1.bf16.msra.mxu1 %v8247_v40  ;;  %1773 = vmatprep.subr.bf16.mxu0 %v8258_v44  ;;  %v8301_v40 = vld [vmem:[%s12034_s1 + $0x220] ss:$16 sps:$4 sm:$0xff]   ;;  %v8354_v44 = vld [vmem:[%s12034_s1 + $0x20c] ss:$16 sps:$4 sm:$0xff]  }
  0x7f   : > { %1220 = vmatprep.subr.bf16.mxu1 %v8255_v42  ;;  %1246 = vmatprep.mubr.bf16.mxu1 %v9146_v2  ;;  %v8346_v42 = vld [vmem:[%s12034_s1 + $0x228] ss:$16 sps:$4 sm:$0xff]  }
  0x81   : > { %1774 = vmatpush2.bf16.msra.mxu0 %v8256_v46  ;;  %v8309_v46 = vld [vmem:[%s12034_s1 + $0xec] ss:$16 sps:$4 sm:$0xff]  }
  0x82   : > { %1221 = vmatpush1.bf16.msra.mxu1 %v8253_v45  ;;  %1775 = vmatprep.subr.bf16.mxu0 %v8264_v50  ;;  %v8304_v45 = vld [vmem:[%s12034_s1 + $0x200] ss:$16 sps:$4 sm:$0xff]   ;;  %v8360_v50 = vld [vmem:[%s12034_s1 + $0x6e4] ss:$16 sps:$4 sm:$0xff]  }
  0x83   : > { %1222 = vmatprep.subr.bf16.mxu1 %v8261_v49  ;;  %v8352_v49 = vld [vmem:[%s12034_s1 + $0x208] ss:$16 sps:$4 sm:$0xff]  }
  0x85   : > { %1776 = vmatpush2.bf16.msra.mxu0 %v8262_v52  ;;  %v8315_v52 = vld [vmem:[%s12034_s1 + $0xcc] ss:$16 sps:$4 sm:$0xff]  }
  0x86   : > { %1223 = vmatpush1.bf16.msra.mxu1 %v8259_v51  ;;  %1777 = vmatprep.subr.bf16.mxu0 %v8270_v54  ;;  %v8307_v51 = vld [vmem:[%s12034_s1 + $0xe8] ss:$16 sps:$4 sm:$0xff]  }
  0x87   : > { %1224 = vmatprep.subr.bf16.mxu1 %v8267_v53  ;;  %v8358_v53 = vld [vmem:[%s12034_s1 + $0x6e0] ss:$16 sps:$4 sm:$0xff]   ;;  %v9821_v54 = vld [vmem:[%s9321_s21 + $0x8] ss:$12 sps:$4 sm:$0xff]  }
  0x89   : > { %1778 = vmatpush2.bf16.msra.mxu0 %v8268_v56  ;;  %v8313_v56 = vld [vmem:[%s12034_s1 + $0xc8] ss:$16 sps:$4 sm:$0xff]  }
  0x8a   : > { %1225 = vmatpush1.bf16.msra.mxu1 %v8265_v55  ;;  %1779 = vmatprep.subr.bf16.mxu0 %v8276_v59  ;;  %v8366_v55 = vld [vmem:[%s12034_s1 + $0x6c4] ss:$16 sps:$4 sm:$0xff]   ;;  %v8364_v59 = vld [vmem:[%s12034_s1 + $0x6c0] ss:$16 sps:$4 sm:$0xff]  }
  0x8b   : > { %1226 = vmatprep.subr.bf16.mxu1 %v8273_v58  ;;  %v8321_v58 = vld [vmem:[%s12034_s1 + $0xac] ss:$16 sps:$4 sm:$0xff]  }
  0x8d   : > { %1780 = vmatpush2.bf16.msra.mxu0 %v8274_v61  ;;  %v2056_v61 = vrot.slane %v9423_v4, 1 }
  0x8e   : > { %1227 = vmatpush1.bf16.msra.mxu1 %v8271_v60  ;;  %1781 = vmatprep.subr.bf16.mxu0 %v8282_v63  ;;  %v8372_v60 = vld [vmem:[%s12034_s1 + $0x6a4] ss:$16 sps:$4 sm:$0xff]   ;;  %v8319_v63 = vld [vmem:[%s12034_s1 + $0xa8] ss:$16 sps:$4 sm:$0xff]  }
  0x8f   : > { %1228 = vmatprep.subr.bf16.mxu1 %v8279_v62  ;;  %v9844_v62 = vrot.slane %v9425_v5, 1 }
  0x91   : > { %1782 = vmatpush2.bf16.msra.mxu0 %v8280_v1  ;;  %v8370_v1 = vld [vmem:[%s12034_s1 + $0x6a0] ss:$16 sps:$4 sm:$0xff]  }
  0x92   : > { %1229 = vmatpush1.bf16.msra.mxu1 %v8277_v0  ;;  %1904 = vmatprep.subr.bf16.mxu0 %v8312_v6  ;;  %v8327_v0 = vld [vmem:[%s12034_s1 + $0x8c] ss:$16 sps:$4 sm:$0xff]   ;;  %v8378_v6 = vld [vmem:[%s12034_s1 + $0x684] ss:$16 sps:$4 sm:$0xff]  }
  0x93   : > { %1802 = vmatprep.subr.bf16.mxu1 %v8285_v3  ;;  %v9856_v3 = vld [vmem:[%s9321_s21 + $0x20] ss:$0 sps:$4 sm:$0xff]  }
  0x94   : > { %1784 = vmatmul.mubr.bf16.vlgmr.msra.gmra.mxu0 %v9431_v7  ;;  %v8600_v7 = vld [vmem:[%s12034_s1 + $0xbec] ss:$16 sps:$4 sm:$0xff]  }
  0x95   : > { %1247 = vmatmul.mubr.bf16.vlgmr.msra.gmra.mxu1 %v9366_v48  ;;  %1793 = vmatprep.mubr.bf16.mxu0 %v9425_v5  ;;  %v8291_v48 = vld [vmem:[%s12034_s1 + $0x2a4] ss:$16 sps:$4 sm:$0xff]  }
  0x96   : > { %1803 = vmatpush1.bf16.msra.mxu1 %v8283_v12  ;;  %1256 = vmatprep.mubr.bf16.mxu1 %v9146_v2  ;;  %v9864_v12 = vsel %vm2052_vm1, %v2056_v61, %v9844_v62  ;;  %v8435_v61 = vld [vmem:[%s12034_s1 + $0x744] ss:$16 sps:$4 sm:$0xff]  }
  0x97   : > { %1804 = vmatprep.subr.bf16.mxu1 %v8288_v13  ;;  %1905 = vmatpush1.bf16.msra.mxu0 %v8310_v14  ;;  %v8325_v13 = vld [vmem:[%s12034_s1 + $0x88] ss:$16 sps:$4 sm:$0xff]   ;;  %v8333_v14 = vld [vmem:[%s12034_s1 + $0x6c] ss:$16 sps:$4 sm:$0xff]  }
  0x98   : > { %1906 = vmatprep.subr.bf16.mxu0 %v8318_v15  ;;  %v8376_v15 = vld [vmem:[%s12034_s1 + $0x680] ss:$16 sps:$4 sm:$0xff]  }
  0x9a   : > { %1805 = vmatpush1.bf16.msra.mxu1 %v8286_v16  ;;  %v8384_v16 = vld [vmem:[%s12034_s1 + $0x664] ss:$16 sps:$4 sm:$0xff]  }
  0x9b   : > { %1806 = vmatprep.subr.bf16.mxu1 %v8291_v48  ;;  %1907 = vmatpush1.bf16.msra.mxu0 %v8316_v17  ;;  %v8331_v48 = vld [vmem:[%s12034_s1 + $0x68] ss:$16 sps:$4 sm:$0xff]   ;;  %v8339_v17 = vld [vmem:[%s12034_s1 + $0x4c] ss:$16 sps:$4 sm:$0xff]  }
  0x9c   : > { %1794 = vmatmul.mubr.bf16.gmra.mxu0 %v9436_v11  ;;  %1908 = vmatprep.subr.bf16.mxu0 %v8324_v21  ;;  %v8337_v21 = vld [vmem:[%s12034_s1 + $0x48] ss:$16 sps:$4 sm:$0xff]  }
  0x9d   : > { %1257 = vmatmul.mubr.bf16.gmra.mxu1 %v9394_v57  ;;  %v8328_v57 = vld [vmem:[%s12034_s1 + $0x288] ss:$16 sps:$4 sm:$0xff]   ;;  %1936 = vmatprep.mubr.bf16.mxu0 %v9146_v2 }
  0x9e   : > { %1807 = vmatpush1.bf16.msra.mxu1 %v8289_v18  ;;  %1834 = vmatprep.mubr.bf16.mxu1 %v9146_v2  ;;  %v8382_v18 = vld [vmem:[%s12034_s1 + $0x660] ss:$16 sps:$4 sm:$0xff]  }
  0x9f   : > { %1808 = vmatprep.subr.bf16.mxu1 %v8294_v19  ;;  %1909 = vmatpush1.bf16.msra.mxu0 %v8322_v22  ;;  %v8390_v19 = vld [vmem:[%s12034_s1 + $0x644] ss:$16 sps:$4 sm:$0xff]   ;;  %v8345_v22 = vld [vmem:[%s12034_s1 + $0x2c] ss:$16 sps:$4 sm:$0xff]  }
  0xa0   : > { %1910 = vmatprep.subr.bf16.mxu0 %v8330_v23  ;;  %v8388_v23 = vld [vmem:[%s12034_s1 + $0x640] ss:$16 sps:$4 sm:$0xff]  }
  0xa2   : > { %1809 = vmatpush1.bf16.msra.mxu1 %v8292_v24  ;;  %v8396_v24 = vld [vmem:[%s12034_s1 + $0x624] ss:$16 sps:$4 sm:$0xff]  }
  0xa3   : > { %1810 = vmatprep.subr.bf16.mxu1 %v8297_v25  ;;  %1911 = vmatpush1.bf16.msra.mxu0 %v8328_v57  ;;  %v8343_v25 = vld [vmem:[%s12034_s1 + $0x28] ss:$16 sps:$4 sm:$0xff]   ;;  %v8351_v57 = vld [vmem:[%s12034_s1 + $0xc] ss:$16 sps:$4 sm:$0xff]  }
  0xa4   : > { %1912 = vmatprep.subr.bf16.mxu0 %v8336_v26  ;;  %v8394_v26 = vld [vmem:[%s12034_s1 + $0x620] ss:$16 sps:$4 sm:$0xff]  }
  0xa6   : > { %1811 = vmatpush1.bf16.msra.mxu1 %v8295_v27  ;;  %v8402_v27 = vld [vmem:[%s12034_s1 + $0x604] ss:$16 sps:$4 sm:$0xff]  }
  0xa7   : > { %1812 = vmatprep.subr.bf16.mxu1 %v8300_v28  ;;  %1913 = vmatpush1.bf16.msra.mxu0 %v8334_v31  ;;  %v8349_v28 = vld [vmem:[%s12034_s1 + $0x8] ss:$16 sps:$4 sm:$0xff]   ;;  %v8357_v31 = vld [vmem:[%s12034_s1 + $0x1ec] ss:$16 sps:$4 sm:$0xff]  }
  0xa8   : > { %1914 = vmatprep.subr.bf16.mxu0 %v8342_v32  ;;  %v8400_v32 = vld [vmem:[%s12034_s1 + $0x600] ss:$16 sps:$4 sm:$0xff]  }
  0xaa   : > { %1813 = vmatpush1.bf16.msra.mxu1 %v8298_v35  ;;  %v8405_v35 = vld [vmem:[%s12034_s1 + $0x7e4] ss:$16 sps:$4 sm:$0xff]  }
  0xab   : > { %1814 = vmatprep.subr.bf16.mxu1 %v8303_v37  ;;  %1915 = vmatpush1.bf16.msra.mxu0 %v8340_v38  ;;  %v8355_v37 = vld [vmem:[%s12034_s1 + $0x1e8] ss:$16 sps:$4 sm:$0xff]   ;;  %v8363_v38 = vld [vmem:[%s12034_s1 + $0x1cc] ss:$16 sps:$4 sm:$0xff]  }
  0xac   : > { %1916 = vmatprep.subr.bf16.mxu0 %v8348_v39  ;;  %v8403_v39 = vld [vmem:[%s12034_s1 + $0x7e0] ss:$16 sps:$4 sm:$0xff]  }
  0xae   : > { %1815 = vmatpush1.bf16.msra.mxu1 %v8301_v40  ;;  %v8411_v40 = vld [vmem:[%s12034_s1 + $0x7c4] ss:$16 sps:$4 sm:$0xff]  }
  0xaf   : > { %1816 = vmatprep.subr.bf16.mxu1 %v8306_v41  ;;  %1917 = vmatpush1.bf16.msra.mxu0 %v8346_v42  ;;  %v8361_v41 = vld [vmem:[%s12034_s1 + $0x1c8] ss:$16 sps:$4 sm:$0xff]   ;;  %v8369_v42 = vld [vmem:[%s12034_s1 + $0x1ac] ss:$16 sps:$4 sm:$0xff]  }
  0xb0   : > { %1918 = vmatprep.subr.bf16.mxu0 %v8354_v44  ;;  %v8409_v44 = vld [vmem:[%s12034_s1 + $0x7c0] ss:$16 sps:$4 sm:$0xff]  }
  0xb2   : > { %1817 = vmatpush1.bf16.msra.mxu1 %v8304_v45  ;;  %v8417_v45 = vld [vmem:[%s12034_s1 + $0x7a4] ss:$16 sps:$4 sm:$0xff]  }
  0xb3   : > { %1853 = vmatprep.subr.bf16.mxu1 %v8309_v46  ;;  %1919 = vmatpush1.bf16.msra.mxu0 %v8352_v49  ;;  %v8367_v46 = vld [vmem:[%s12034_s1 + $0x1a8] ss:$16 sps:$4 sm:$0xff]   ;;  %v8375_v49 = vld [vmem:[%s12034_s1 + $0x18c] ss:$16 sps:$4 sm:$0xff]  }
  0xb4   : > { %2548 = vmatprep.subr.bf16.mxu0 %v8360_v50  ;;  %v8415_v50 = vld [vmem:[%s12034_s1 + $0x7a0] ss:$16 sps:$4 sm:$0xff]  }
  0xb5   : > { %1835 = vmatmul.mubr.bf16.vlgmr.msra.gmra.mxu1 %v9821_v54 }
  0xb6   : > { %1854 = vmatpush1.bf16.msra.mxu1 %v8307_v51  ;;  %1844 = vmatprep.mubr.bf16.mxu1 %v9146_v2  ;;  %v8423_v51 = vld [vmem:[%s12034_s1 + $0x784] ss:$16 sps:$4 sm:$0xff]  }
  0xb7   : > { %1855 = vmatprep.subr.bf16.mxu1 %v8315_v52  ;;  %1937 = vmatmul.mubr.bf16.vlgmr.msra.gmra.mxu0 %v9821_v54  ;;  %v8373_v52 = vld [vmem:[%s12034_s1 + $0x188] ss:$16 sps:$4 sm:$0xff]  }
  0xb8   : > { %2549 = vmatpush1.bf16.msra.mxu0 %v8358_v53  ;;  %1946 = vmatprep.mubr.bf16.mxu0 %v9146_v2  ;;  %v8381_v53 = vld [vmem:[%s12034_s1 + $0x16c] ss:$16 sps:$4 sm:$0xff]  }
  0xb9   : > { %2550 = vmatprep.subr.bf16.mxu0 %v8366_v55  ;;  %v8421_v55 = vld [vmem:[%s12034_s1 + $0x780] ss:$16 sps:$4 sm:$0xff]  }
  0xba   : > { %1856 = vmatpush1.bf16.msra.mxu1 %v8313_v56  ;;  %v8429_v56 = vld [vmem:[%s12034_s1 + $0x764] ss:$16 sps:$4 sm:$0xff]  }
  0xbb   : > { %1857 = vmatprep.subr.bf16.mxu1 %v8321_v58  ;;  %v8379_v58 = vld [vmem:[%s12034_s1 + $0x168] ss:$16 sps:$4 sm:$0xff]  }
  0xbc   : > { %2551 = vmatpush1.bf16.msra.mxu0 %v8364_v59  ;;  %v8387_v59 = vld [vmem:[%s12034_s1 + $0x14c] ss:$16 sps:$4 sm:$0xff]  }
  0xbd   : > { %1845 = vmatmul.mubr.bf16.gmra.mxu1 %v9856_v3  ;;  %2552 = vmatprep.subr.bf16.mxu0 %v8372_v60  ;;  %v8427_v60 = vld [vmem:[%s12034_s1 + $0x760] ss:$16 sps:$4 sm:$0xff]  }
  0xbe   : > { %1858 = vmatpush1.bf16.msra.mxu1 %v8319_v63  ;;  %1885 = vmatprep.mubr.bf16.mxu1 %v9423_v4  ;;  %v8385_v63 = vld [vmem:[%s12034_s1 + $0x148] ss:$16 sps:$4 sm:$0xff]   ;;  %v8508_v4 = vld [vmem:[%s12034_s1 + $0x9c0] ss:$16 sps:$4 sm:$0xff]  }
  0xbf   : > { %1859 = vmatprep.subr.bf16.mxu1 %v8327_v0  ;;  %1947 = vmatmul.mubr.bf16.gmra.mxu0 %v9856_v3  ;;  %v8393_v0 = vld [vmem:[%s12034_s1 + $0x12c] ss:$16 sps:$4 sm:$0xff]  }
  0xc0   : > { %2553 = vmatpush1.bf16.msra.mxu0 %v8370_v1  ;;  %2580 = vmatprep.mubr.bf16.mxu0 %v9864_v12  ;;  %v8433_v1 = vld [vmem:[%s12034_s1 + $0x740] ss:$16 sps:$4 sm:$0xff]  }
  0xc1   : > { %2554 = vmatprep.subr.bf16.mxu0 %v8378_v6  ;;  %v8441_v6 = vld [vmem:[%s12034_s1 + $0x724] ss:$16 sps:$4 sm:$0xff]  }
  0xc2   : > { %1860 = vmatpush1.bf16.msra.mxu1 %v8325_v13  ;;  %v8391_v13 = vld [vmem:[%s12034_s1 + $0x128] ss:$16 sps:$4 sm:$0xff]  }
  0xc3   : > { %1861 = vmatprep.subr.bf16.mxu1 %v8333_v14  ;;  %v8399_v14 = vld [vmem:[%s12034_s1 + $0x10c] ss:$16 sps:$4 sm:$0xff]  }
  0xc4   : > { %2555 = vmatpush1.bf16.msra.mxu0 %v8376_v15  ;;  %v8439_v15 = vld [vmem:[%s12034_s1 + $0x720] ss:$16 sps:$4 sm:$0xff]  }
  0xc5   : > { %2556 = vmatprep.subr.bf16.mxu0 %v8384_v16  ;;  %v8447_v16 = vld [vmem:[%s12034_s1 + $0x704] ss:$16 sps:$4 sm:$0xff]  }
  0xc6   : > { %1862 = vmatpush1.bf16.msra.mxu1 %v8331_v48  ;;  %v8397_v48 = vld [vmem:[%s12034_s1 + $0x108] ss:$16 sps:$4 sm:$0xff]  }
  0xc7   : > { %1863 = vmatprep.subr.bf16.mxu1 %v8339_v17  ;;  %v2876_v17 = vrot.slane %v555_v33, 1  ;;  %v8456_v33 = vld [vmem:[%s12034_s1 + $0x8ec] ss:$16 sps:$4 sm:$0xff]  }
  0xc8   : > { %2557 = vmatpush1.bf16.msra.mxu0 %v8382_v18  ;;  %v8408_v18 = vld [vmem:[%s12034_s1 + $0x8e4] ss:$16 sps:$4 sm:$0xff]  }
  0xc9   : > { %2558 = vmatprep.subr.bf16.mxu0 %v8390_v19  ;;  %v8445_v19 = vld [vmem:[%s12034_s1 + $0x700] ss:$16 sps:$4 sm:$0xff]  }
  0xca   : > { %1864 = vmatpush1.bf16.msra.mxu1 %v8337_v21  ;;  %v9079_v21 = vld [vmem:[%s9321_s21] ss:$12 sps:$4 sm:$0xff]  }
  0xcb   : > { %1865 = vmatprep.subr.bf16.mxu1 %v8345_v22  ;;  %v2053_v22 = vrot.slane %v9079_v21, 1 }
  0xcc   : > { %2559 = vmatpush1.bf16.msra.mxu0 %v8388_v23  ;;  %v10026_v23 = vrot.slane %v9436_v11, 1 }
  0xcd   : > { %2560 = vmatprep.subr.bf16.mxu0 %v8396_v24  ;;  %v2877_v24 = vrot.slane %v557_v34, 2 }
  0xce   : > { %1866 = vmatpush1.bf16.msra.mxu1 %v8343_v25  ;;  %v8406_v25 = vld [vmem:[%s12034_s1 + $0x8e0] ss:$16 sps:$4 sm:$0xff]  }
  0xcf   : > { %1867 = vmatprep.subr.bf16.mxu1 %v8351_v57  ;;  %v8414_v57 = vld [vmem:[%s12034_s1 + $0x8c4] ss:$16 sps:$4 sm:$0xff]  }
  0xd0   : > { %2561 = vmatpush1.bf16.msra.mxu0 %v8394_v26  ;;  %v2878_v26 = vor.u32 %v2877_v24, %v2876_v17  ;;  %v2059_v17 = vrot.slane %v9821_v54, 1  ;;  %v8504_v54 = vld [vmem:[%s12034_s1 + $0x9e4] ss:$16 sps:$4 sm:$0xff]   ;;  %v8459_v24 = vld [vmem:[%s12034_s1 + $0x6cc] ss:$16 sps:$4 sm:$0xff]  }
  0xd1   : > { %2562 = vmatprep.subr.bf16.mxu0 %v8402_v27  ;;  %v10041_v27 = vsel %vm2052_vm1, %v2053_v22, %v10026_v23  ;;  %v8496_v22 = vld [vmem:[%s12034_s1 + $0x808] ss:$16 sps:$4 sm:$0xff]  }
  0xd2   : > { %1868 = vmatpush1.bf16.msra.mxu1 %v8349_v28  ;;  %v8462_v28 = vld [vmem:[%s12034_s1 + $0x8cc] ss:$16 sps:$4 sm:$0xff]  }
  0xd3   : > { %1869 = vmatprep.subr.bf16.mxu1 %v8357_v31  ;;  %v10053_v31 = vsel %vm2861_vm2, %v2878_v26, %v9363_v47  ;;  %v2872_v26 = vrot.slane %v569_v43, 1  ;;  %v8457_v43 = vld [vmem:[%s12034_s1 + $0x6c8] ss:$16 sps:$4 sm:$0xff]  }
  0xd4   : > { %2563 = vmatpush1.bf16.msra.mxu0 %v8400_v32  ;;  %v8412_v32 = vld [vmem:[%s12034_s1 + $0x8c0] ss:$16 sps:$4 sm:$0xff]  }
  0xd5   : > { %2564 = vmatprep.subr.bf16.mxu0 %v8405_v35 }
  0xd6   : > { %1870 = vmatpush2.bf16.msra.mxu1 %v8355_v37  ;;  %v8420_v37 = vld [vmem:[%s12034_s1 + $0x8a4] ss:$16 sps:$4 sm:$0xff]  }
  0xd7   : > { %1871 = vmatprep.subr.bf16.mxu1 %v8363_v38  ;;  %v8460_v38 = vld [vmem:[%s12034_s1 + $0x8c8] ss:$16 sps:$4 sm:$0xff]  }
  0xd8   : > { %2565 = vmatpush2.bf16.msra.mxu0 %v8403_v39 }
  0xd9   : > { %2566 = vmatprep.subr.bf16.mxu0 %v8411_v40  ;;  %v8468_v40 = vld [vmem:[%s12034_s1 + $0x8ac] ss:$16 sps:$4 sm:$0xff]  }
  0xda   : > { %1872 = vmatpush2.bf16.msra.mxu1 %v8361_v41  ;;  %v8418_v41 = vld [vmem:[%s12034_s1 + $0x8a0] ss:$16 sps:$4 sm:$0xff]  }
  0xdb   : > { %1873 = vmatprep.subr.bf16.mxu1 %v8369_v42 }
  0xdc   : > { %2567 = vmatpush2.bf16.msra.mxu0 %v8409_v44  ;;  %v8426_v44 = vld [vmem:[%s12034_s1 + $0x884] ss:$16 sps:$4 sm:$0xff]  }
  0xdd   : > { %2568 = vmatprep.subr.bf16.mxu0 %v8417_v45  ;;  %v8466_v45 = vld [vmem:[%s12034_s1 + $0x8a8] ss:$16 sps:$4 sm:$0xff]  }
  0xde   : > { %1874 = vmatpush2.bf16.msra.mxu1 %v8367_v46  ;;  %v8474_v46 = vld [vmem:[%s12034_s1 + $0x88c] ss:$16 sps:$4 sm:$0xff]  }
  0xdf   : > { %1875 = vmatprep.subr.bf16.mxu1 %v8375_v49 }
  0xe0   : > { %2569 = vmatpush2.bf16.msra.mxu0 %v8415_v50  ;;  %v8424_v50 = vld [vmem:[%s12034_s1 + $0x880] ss:$16 sps:$4 sm:$0xff]  }
  0xe1   : > { %2570 = vmatprep.subr.bf16.mxu0 %v8423_v51  ;;  %v8432_v51 = vld [vmem:[%s12034_s1 + $0x864] ss:$16 sps:$4 sm:$0xff]  }
  0xe2   : > { %1876 = vmatpush2.bf16.msra.mxu1 %v8373_v52 }
  0xe3   : > { %1877 = vmatprep.subr.bf16.mxu1 %v8381_v53  ;;  %v8472_v53 = vld [vmem:[%s12034_s1 + $0x888] ss:$16 sps:$4 sm:$0xff]  }
  0xe4   : > { %2571 = vmatpush2.bf16.msra.mxu0 %v8421_v55  ;;  %v8480_v55 = vld [vmem:[%s12034_s1 + $0x86c] ss:$16 sps:$4 sm:$0xff]  }
  0xe5   : > { %2572 = vmatprep.subr.bf16.mxu0 %v8429_v56 }
  0xe6   : > { %1878 = vmatpush2.bf16.msra.mxu1 %v8379_v58  ;;  %v8430_v58 = vld [vmem:[%s12034_s1 + $0x860] ss:$16 sps:$4 sm:$0xff]  }
  0xe7   : > { %1879 = vmatprep.subr.bf16.mxu1 %v8387_v59  ;;  %v8438_v59 = vld [vmem:[%s12034_s1 + $0x844] ss:$16 sps:$4 sm:$0xff]  }
  0xe8   : > { %2573 = vmatpush2.bf16.msra.mxu0 %v8427_v60  ;;  %v8478_v60 = vld [vmem:[%s12034_s1 + $0x868] ss:$16 sps:$4 sm:$0xff]  }
  0xe9   : > { %2574 = vmatprep.subr.bf16.mxu0 %v8435_v61 }
  0xea   : > { %1880 = vmatpush2.bf16.msra.mxu1 %v8385_v63  ;;  %v8486_v63 = vld [vmem:[%s12034_s1 + $0x84c] ss:$16 sps:$4 sm:$0xff]  }
  0xeb   : > { %1881 = vmatprep.subr.bf16.mxu1 %v8393_v0  ;;  %v8436_v0 = vld [vmem:[%s12034_s1 + $0x840] ss:$16 sps:$4 sm:$0xff]  }
  0xec   : > { %2575 = vmatpush2.bf16.msra.mxu0 %v8433_v1  ;;  %v8444_v1 = vld [vmem:[%s12034_s1 + $0x824] ss:$16 sps:$4 sm:$0xff]  }
  0xed   : > { %2576 = vmatprep.subr.bf16.mxu0 %v8441_v6  ;;  %v8484_v6 = vld [vmem:[%s12034_s1 + $0x848] ss:$16 sps:$4 sm:$0xff]  }
  0xee   : > { %1882 = vmatpush2.bf16.msra.mxu1 %v8391_v13  ;;  %v8492_v13 = vld [vmem:[%s12034_s1 + $0x82c] ss:$16 sps:$4 sm:$0xff]  }
  0xef   : > { %1883 = vmatprep.subr.bf16.mxu1 %v8399_v14  ;;  %v8442_v14 = vld [vmem:[%s12034_s1 + $0x820] ss:$16 sps:$4 sm:$0xff]  }
  0xf0   : > { %2577 = vmatpush2.bf16.msra.mxu0 %v8439_v15  ;;  %v8450_v15 = vld [vmem:[%s12034_s1 + $0x804] ss:$16 sps:$4 sm:$0xff]  }
  0xf1   : > { %2578 = vmatprep.subr.bf16.mxu0 %v8447_v16  ;;  %v8490_v16 = vld [vmem:[%s12034_s1 + $0x828] ss:$16 sps:$4 sm:$0xff]  }
  0xf2   : > { %1884 = vmatpush2.bf16.msra.mxu1 %v8397_v48  ;;  %v8498_v48 = vld [vmem:[%s12034_s1 + $0x80c] ss:$16 sps:$4 sm:$0xff]  }
  0xf3   : > { %2599 = vmatprep.subr.bf16.mxu1 %v8408_v18  ;;  %v8448_v18 = vld [vmem:[%s12034_s1 + $0x800] ss:$16 sps:$4 sm:$0xff]  }
  0xf4   : > { %2579 = vmatpush2.bf16.msra.mxu0 %v8445_v19  ;;  %v2060_v19 = vrot.slane %v9856_v3, 1  ;;  %v8451_v3 = vld [vmem:[%s12034_s1 + $0x6e8] ss:$16 sps:$4 sm:$0xff]  }
  0xf5   : > { %v10046_v34 = vpop.f32.mrf.mxu1  ;;  %1886 = vmatmul.mubr.bf16.vlgmr.msra.gmra.mxu1 %v9079_v21  ;;  %2701 = vmatprep.subr.bf16.mxu0 %v8456_v33  ;;  %v8453_v21 = vld [vmem:[%s12034_s1 + $0x6ec] ss:$16 sps:$4 sm:$0xff]  }
  0xf6   : > { %2600 = vmatpush1.bf16.msra.mxu1 %v8406_v25  ;;  %1895 = vmatprep.mubr.bf16.mxu1 %v9425_v5  ;;  %v2061_v33 = vsel %vm2052_vm1, %v2059_v17, %v2060_v19  ;;  %v8502_v25 = vld [vmem:[%s12034_s1 + $0x9e0] ss:$16 sps:$4 sm:$0xff]   ;;  %v8487_v17 = vld [vmem:[%s12034_s1 + $0x628] ss:$16 sps:$4 sm:$0xff]  }
  0xf7   : > { %v10059_v35 = vpop.f32.mrf.mxu1  ;;  %2601 = vmatprep.subr.bf16.mxu1 %v8414_v57  ;;  %2581 = vmatmul.mubr.bf16.vlgmr.msra.gmra.mxu0 %v10041_v27  ;;  %v8510_v57 = vld [vmem:[%s12034_s1 + $0x9c4] ss:$16 sps:$4 sm:$0xff]  }
  0xf8   : > { %2702 = vmatpush1.bf16.msra.mxu0 %v8454_v29  ;;  %2590 = vmatprep.mubr.bf16.mxu0 %v9844_v62 }
  0xf9   : > { %v10069_v39 = vpop.f32.mrf.mxu1  ;;  %2703 = vmatprep.subr.bf16.mxu0 %v8462_v28  ;;  %v2869_v28 = vrot.slane %v543_v8, 1  ;;  %v8465_v8 = vld [vmem:[%s12034_s1 + $0x6ac] ss:$16 sps:$4 sm:$0xff]  }
  0xfa   : > { %2602 = vmatpush1.bf16.msra.mxu1 %v8412_v32  ;;  %v2870_v32 = vrot.slane %v545_v9, 2  ;;  %v8516_v9 = vld [vmem:[%s12034_s1 + $0x9a4] ss:$16 sps:$4 sm:$0xff]  }
  0xfb   : > { %v10077_v42 = vpop.f32.mrf.mxu1  ;;  %2603 = vmatprep.subr.bf16.mxu1 %v8420_v37  ;;  %v2873_v37 = vrot.slane %v550_v10, 2 }
  0xfc   : > { %2704 = vmatpush1.bf16.msra.mxu0 %v8460_v38 }
  0xfd   : > { %1896 = vmatmul.mubr.bf16.gmra.mxu1 %v9436_v11  ;;  %2705 = vmatprep.subr.bf16.mxu0 %v8468_v40  ;;  %v10089_v49 = vpop.f32.mrf.mxu1 }
  0xfe   : > { %2604 = vmatpush1.bf16.msra.mxu1 %v8418_v41  ;;  %2631 = vmatprep.mubr.bf16.mxu1 %v9146_v2  ;;  %v2871_v41 = vor.u32 %v2870_v32, %v2869_v28 }
  0xff   : > { %2605 = vmatprep.subr.bf16.mxu1 %v8426_v44  ;;  %2591 = vmatmul.mubr.bf16.gmra.mxu0 %v10026_v23  ;;  %v10099_v52 = vpop.f32.mrf.mxu1  ;;  %v10199_v44 = vor.u32 %v2873_v37, %v2872_v26  ;;  %v8547_v26 = vld [vmem:[%s12034_s1 + $0xae0] ss:$16 sps:$4 sm:$0xff]   ;;  %v8513_v37 = vld [vmem:[%s12034_s1 + $0x7ac] ss:$16 sps:$4 sm:$0xff]  }
 0x100   : > { %2706 = vmatpush1.bf16.msra.mxu0 %v8466_v45  ;;  %2733 = vmatprep.mubr.bf16.mxu0 %v9146_v2 }
 0x101   : > { %2707 = vmatprep.subr.bf16.mxu0 %v8474_v46  ;;  %v1160_v56 = vpop.f32.mrf.mxu1  ;;  %v8463_v46 = vld [vmem:[%s12034_s1 + $0x6a8] ss:$16 sps:$4 sm:$0xff]  }
 0x102   : > { %2606 = vmatpush1.bf16.msra.mxu1 %v8424_v50  ;;  %v8469_v56 = vld [vmem:[%s12034_s1 + $0x688] ss:$16 sps:$4 sm:$0xff]  }
 0x103   : > { %2607 = vmatprep.subr.bf16.mxu1 %v8432_v51  ;;  %v1161_v61 = vpop.f32.mrf.mxu1  ;;  %v8514_v51 = vld [vmem:[%s12034_s1 + $0x9a0] ss:$16 sps:$4 sm:$0xff]  }
 0x104   : > { %2708 = vmatpush1.bf16.msra.mxu0 %v8472_v53  ;;  %v8520_v61 = vld [vmem:[%s12034_s1 + $0x980] ss:$16 sps:$4 sm:$0xff]  }
 0x105   : > { %2709 = vmatprep.subr.bf16.mxu0 %v8480_v55  ;;  %v10220_v55 = vsel %vm2861_vm2, %v2871_v41, %v10199_v44  ;;  %v8517_v41 = vld [vmem:[%s12034_s1 + $0x788] ss:$16 sps:$4 sm:$0xff]  }
 0x106   : > { %2608 = vmatpush1.bf16.msra.mxu1 %v8430_v58  ;;  %v8477_v58 = vld [vmem:[%s12034_s1 + $0x66c] ss:$16 sps:$4 sm:$0xff]  }
 0x107   : > { %2609 = vmatprep.subr.bf16.mxu1 %v8438_v59 }
 0x108   : > { %2710 = vmatpush1.bf16.msra.mxu0 %v8478_v60 }
 0x109   : > { %2711 = vmatprep.subr.bf16.mxu0 %v8486_v63  ;;  %v8528_v63 = vld [vmem:[%s12034_s1 + $0x964] ss:$16 sps:$4 sm:$0xff]  }
 0x10a   : > { %2610 = vmatpush1.bf16.msra.mxu1 %v8436_v0 }
 0x10b   : > { %2611 = vmatprep.subr.bf16.mxu1 %v8444_v1  ;;  %v8483_v1 = vld [vmem:[%s12034_s1 + $0x64c] ss:$16 sps:$4 sm:$0xff]  }
 0x10c   : > { %2712 = vmatpush1.bf16.msra.mxu0 %v8484_v6  ;;  %v8534_v6 = vld [vmem:[%s12034_s1 + $0x944] ss:$16 sps:$4 sm:$0xff]  }
 0x10d   : > { %2713 = vmatprep.subr.bf16.mxu0 %v8492_v13 }
 0x10e   : > { %2612 = vmatpush1.bf16.msra.mxu1 %v8442_v14  ;;  %v8481_v14 = vld [vmem:[%s12034_s1 + $0x648] ss:$16 sps:$4 sm:$0xff]  }
 0x10f   : > { %2613 = vmatprep.subr.bf16.mxu1 %v8450_v15  ;;  %v8489_v15 = vld [vmem:[%s12034_s1 + $0x62c] ss:$16 sps:$4 sm:$0xff]  }
 0x110   : > { %2714 = vmatpush1.bf16.msra.mxu0 %v8490_v16  ;;  %v8532_v16 = vld [vmem:[%s12034_s1 + $0x940] ss:$16 sps:$4 sm:$0xff]  }
 0x111   : > { %2715 = vmatprep.subr.bf16.mxu0 %v8498_v48  ;;  %v8540_v48 = vld [vmem:[%s12034_s1 + $0x924] ss:$16 sps:$4 sm:$0xff]  }
 0x112   : > { %2614 = vmatpush1.bf16.msra.mxu1 %v8448_v18  ;;  %v8495_v18 = vld [vmem:[%s12034_s1 + $0x60c] ss:$16 sps:$4 sm:$0xff]  }
 0x113   : > { %2650 = vmatprep.subr.bf16.mxu1 %v8453_v21  ;;  %v8546_v21 = vld [vmem:[%s12034_s1 + $0x904] ss:$16 sps:$4 sm:$0xff]  }
 0x114   : > { %2716 = vmatpush1.bf16.msra.mxu0 %v8496_v22  ;;  %v1095_v29 = vpop.f32.mrf.mxu0  ;;  %v8493_v22 = vld [vmem:[%s12034_s1 + $0x608] ss:$16 sps:$4 sm:$0xff]  }
 0x115   : > { %2632 = vmatmul.mubr.bf16.vlgmr.msra.gmra.mxu1 %v2061_v33  ;;  %3369 = vmatprep.subr.bf16.mxu0 %v8504_v54  ;;  %v10180_v38 = vadd.f32 %v10046_v34, %v1095_v29  ;;  %v8501_v54 = vld [vmem:[%s12034_s1 + $0x7ec] ss:$16 sps:$4 sm:$0xff]   ;;  %v8555_v29 = vld [vmem:[%s12034_s1 + $0xac4] ss:$16 sps:$4 sm:$0xff]  }
 0x116   : > { %2651 = vmatpush1.bf16.msra.mxu1 %v8451_v3  ;;  %2641 = vmatprep.mubr.bf16.mxu1 %v9146_v2  ;;  %v1097_v40 = vpop.f32.mrf.mxu0  ;;  %v8549_v3 = vld [vmem:[%s12034_s1 + $0xae4] ss:$16 sps:$4 sm:$0xff]  }
 0x117   : > { %2652 = vmatprep.subr.bf16.mxu1 %v8459_v24  ;;  %2734 = vmatmul.mubr.bf16.vlgmr.msra.gmra.mxu0 %v2061_v33  ;;  %v10196_v10 = vadd.f32 %v10059_v35, %v1097_v40  ;;  %v8471_v35 = vld [vmem:[%s12034_s1 + $0x68c] ss:$16 sps:$4 sm:$0xff]   ;;  %v8544_v33 = vld [vmem:[%s12034_s1 + $0x900] ss:$16 sps:$4 sm:$0xff]   ;;  %v8499_v24 = vld [vmem:[%s12034_s1 + $0x7e8] ss:$16 sps:$4 sm:$0xff]  }
 0x118   : > { %3370 = vmatpush1.bf16.msra.mxu0 %v8502_v25  ;;  %2743 = vmatprep.mubr.bf16.mxu0 %v9146_v2  ;;  %v1099_v34 = vpop.f32.mrf.mxu0  ;;  %v8507_v25 = vld [vmem:[%s12034_s1 + $0x7cc] ss:$16 sps:$4 sm:$0xff]   ;;  %v8561_v40 = vld [vmem:[%s12034_s1 + $0xaa4] ss:$16 sps:$4 sm:$0xff]  }
 0x119   : > { %3371 = vmatprep.subr.bf16.mxu0 %v8510_v57  ;;  %v10202_v45 = vadd.f32 %v10069_v39, %v1099_v34  ;;  %v8522_v39 = vld [vmem:[%s12034_s1 + $0x984] ss:$16 sps:$4 sm:$0xff]   ;;  %v8505_v57 = vld [vmem:[%s12034_s1 + $0x7c8] ss:$16 sps:$4 sm:$0xff]   ;;  %v8519_v34 = vld [vmem:[%s12034_s1 + $0x78c] ss:$16 sps:$4 sm:$0xff]  }
 0x11a   : > { %2653 = vmatpush1.bf16.msra.mxu1 %v8457_v43  ;;  %v10210_v50 = vpop.f32.mrf.mxu0  ;;  %v8511_v43 = vld [vmem:[%s12034_s1 + $0x7a8] ss:$16 sps:$4 sm:$0xff]  }
 0x11b   : > { %2654 = vmatprep.subr.bf16.mxu1 %v8465_v8  ;;  %v8553_v8 = vld [vmem:[%s12034_s1 + $0xac0] ss:$16 sps:$4 sm:$0xff]  }
 0x11c   : > { %3372 = vmatpush1.bf16.msra.mxu0 %v8508_v4  ;;  %v1105_v53 = vpop.f32.mrf.mxu0 }
 0x11d   : > { %2642 = vmatmul.mubr.bf16.gmra.mxu1 %v2060_v19  ;;  %3373 = vmatprep.subr.bf16.mxu0 %v8516_v9  ;;  %v10229_v59 = vadd.f32 %v10089_v49, %v1105_v53 }
 0x11e   : > { %2655 = vmatpush1.bf16.msra.mxu1 %v8463_v46  ;;  %2682 = vmatprep.mubr.bf16.mxu1 %v9864_v12  ;;  %v1107_v60 = vpop.f32.mrf.mxu0  ;;  %v8475_v12 = vld [vmem:[%s12034_s1 + $0x668] ss:$16 sps:$4 sm:$0xff]   ;;  %v8559_v46 = vld [vmem:[%s12034_s1 + $0xaa0] ss:$16 sps:$4 sm:$0xff]  }
 0x11f   : > { %2656 = vmatprep.subr.bf16.mxu1 %v8471_v35  ;;  %2744 = vmatmul.mubr.bf16.gmra.mxu0 %v2060_v19  ;;  %v10239_v0 = vadd.f32 %v10099_v52, %v1107_v60  ;;  %v8526_v52 = vld [vmem:[%s12034_s1 + $0x960] ss:$16 sps:$4 sm:$0xff]   ;;  %v8567_v35 = vld [vmem:[%s12034_s1 + $0xa84] ss:$16 sps:$4 sm:$0xff]  }
 0x120   : > { %3374 = vmatpush1.bf16.msra.mxu0 %v8514_v51  ;;  %3401 = vmatprep.mubr.bf16.mxu0 %v10220_v55  ;;  %v1109_v49 = vpop.f32.mrf.mxu0  ;;  %v8538_v19 = vld [vmem:[%s12034_s1 + $0x920] ss:$16 sps:$4 sm:$0xff]  }
 0x121   : > { %3375 = vmatprep.subr.bf16.mxu0 %v8522_v39  ;;  %v8525_v39 = vld [vmem:[%s12034_s1 + $0x76c] ss:$16 sps:$4 sm:$0xff]   ;;  %v8571_v49 = vld [vmem:[%s12034_s1 + $0xa60] ss:$16 sps:$4 sm:$0xff]  }
 0x122   : > { %2657 = vmatpush1.bf16.msra.mxu1 %v8469_v56  ;;  %v1110_v13 = vpop.f32.mrf.mxu0  ;;  %v8565_v56 = vld [vmem:[%s12034_s1 + $0xa80] ss:$16 sps:$4 sm:$0xff]  }
 0x123   : > { %2658 = vmatprep.subr.bf16.mxu1 %v8477_v58  ;;  %v8573_v58 = vld [vmem:[%s12034_s1 + $0xa64] ss:$16 sps:$4 sm:$0xff]   ;;  %v8577_v13 = vld [vmem:[%s12034_s1 + $0xa40] ss:$16 sps:$4 sm:$0xff]  }
 0x124   : > { %3376 = vmatpush1.bf16.msra.mxu0 %v8520_v61  ;;  %v8523_v61 = vld [vmem:[%s12034_s1 + $0x768] ss:$16 sps:$4 sm:$0xff]  }
 0x125   : > { %3377 = vmatprep.subr.bf16.mxu0 %v8528_v63  ;;  %v8531_v63 = vld [vmem:[%s12034_s1 + $0x74c] ss:$16 sps:$4 sm:$0xff]  }
 0x126   : > { %2659 = vmatpush1.bf16.msra.mxu1 %v8475_v12 }
 0x127   : > { %2660 = vmatprep.subr.bf16.mxu1 %v8483_v1  ;;  %v8579_v1 = vld [vmem:[%s12034_s1 + $0xa44] ss:$16 sps:$4 sm:$0xff]  }
 0x128   : > { %3378 = vmatpush1.bf16.msra.mxu0 %v8526_v52  ;;  %v8529_v52 = vld [vmem:[%s12034_s1 + $0x748] ss:$16 sps:$4 sm:$0xff]  }
 0x129   : > { %3379 = vmatprep.subr.bf16.mxu0 %v8534_v6  ;;  %v8537_v6 = vld [vmem:[%s12034_s1 + $0x72c] ss:$16 sps:$4 sm:$0xff]  }
 0x12a   : > { %2661 = vmatpush1.bf16.msra.mxu1 %v8481_v14  ;;  %v8585_v14 = vld [vmem:[%s12034_s1 + $0xa24] ss:$16 sps:$4 sm:$0xff]  }
 0x12b   : > { %2662 = vmatprep.subr.bf16.mxu1 %v8489_v15  ;;  %v8535_v15 = vld [vmem:[%s12034_s1 + $0x728] ss:$16 sps:$4 sm:$0xff]  }
 0x12c   : > { %3380 = vmatpush1.bf16.msra.mxu0 %v8532_v16  ;;  %v8543_v16 = vld [vmem:[%s12034_s1 + $0x70c] ss:$16 sps:$4 sm:$0xff]  }
 0x12d   : > { %3381 = vmatprep.subr.bf16.mxu0 %v8540_v48  ;;  %v8583_v48 = vld [vmem:[%s12034_s1 + $0xa20] ss:$16 sps:$4 sm:$0xff]  }
 0x12e   : > { %2663 = vmatpush1.bf16.msra.mxu1 %v8487_v17  ;;  %v8591_v17 = vld [vmem:[%s12034_s1 + $0xa04] ss:$16 sps:$4 sm:$0xff]  }
 0x12f   : > { %2664 = vmatprep.subr.bf16.mxu1 %v8495_v18  ;;  %v2862_v18 = vrot.slane %v531_v30, 1 }
 0x130   : > { %3382 = vmatpush1.bf16.msra.mxu0 %v8538_v19  ;;  %v2863_v19 = vrot.slane %v533_v20, 2  ;;  %v8550_v20 = vld [vmem:[%s12034_s1 + $0xbe0] ss:$16 sps:$4 sm:$0xff]  }
 0x131   : > { %3383 = vmatprep.subr.bf16.mxu0 %v8546_v21  ;;  %v8541_v21 = vld [vmem:[%s12034_s1 + $0x708] ss:$16 sps:$4 sm:$0xff]  }
 0x132   : > { %2665 = vmatpush1.bf16.msra.mxu1 %v8493_v22  ;;  %v8552_v22 = vld [vmem:[%s12034_s1 + $0xbe4] ss:$16 sps:$4 sm:$0xff]   ;;  %v2864_v30 = vor.u32 %v2863_v19, %v2862_v18  ;;  %v8580_v19 = vld [vmem:[%s12034_s1 + $0xb40] ss:$16 sps:$4 sm:$0xff]  }
 0x133   : > { %2666 = vmatprep.subr.bf16.mxu1 %v8501_v54  ;;  %v8589_v54 = vld [vmem:[%s12034_s1 + $0xa00] ss:$16 sps:$4 sm:$0xff]  }
 0x134   : > { %3384 = vmatpush1.bf16.msra.mxu0 %v8544_v33  ;;  %v8558_v33 = vld [vmem:[%s12034_s1 + $0xbc4] ss:$16 sps:$4 sm:$0xff]  }
 0x135   : > { %v10305_v28 = vpop.f32.mrf.mxu1  ;;  %3385 = vmatprep.subr.bf16.mxu0 %v8549_v3  ;;  %v8598_v3 = vld [vmem:[%s12034_s1 + $0xbe8] ss:$16 sps:$4 sm:$0xff]  }
 0x136   : > { %2667 = vmatpush2.bf16.msra.mxu1 %v8499_v24  ;;  %v8556_v24 = vld [vmem:[%s12034_s1 + $0xbc0] ss:$16 sps:$4 sm:$0xff]  }
 0x137   : > { %v10307_v32 = vpop.f32.mrf.mxu1  ;;  %2668 = vmatprep.subr.bf16.mxu1 %v8507_v25  ;;  %v10416_v25 = vsel %vm2861_vm2, %v2864_v30, %v9481_v36  ;;  %v8634_v30 = vld [vmem:[%s12034_s1 + $0xb28] ss:$16 sps:$4 sm:$0xff]  }
 0x138   : > { %3386 = vmatpush2.bf16.msra.mxu0 %v8547_v26 }
 0x139   : > { %v10321_v4 = vpop.f32.mrf.mxu1  ;;  %3387 = vmatprep.subr.bf16.mxu0 %v8555_v29 }
 0x13a   : > { %2669 = vmatpush2.bf16.msra.mxu1 %v8505_v57  ;;  %v8606_v57 = vld [vmem:[%s12034_s1 + $0xbcc] ss:$16 sps:$4 sm:$0xff]  }
 0x13b   : > { %v10323_v9 = vpop.f32.mrf.mxu1  ;;  %2670 = vmatprep.subr.bf16.mxu1 %v8513_v37  ;;  %v8564_v37 = vld [vmem:[%s12034_s1 + $0xba4] ss:$16 sps:$4 sm:$0xff]  }
 0x13c   : > { %3388 = vmatpush2.bf16.msra.mxu0 %v8553_v8 }
 0x13d   : > { %v10337_v51 = vpop.f32.mrf.mxu1  ;;  %3389 = vmatprep.subr.bf16.mxu0 %v8561_v40 }
 0x13e   : > { %2671 = vmatpush2.bf16.msra.mxu1 %v8511_v43 }
 0x13f   : > { %2672 = vmatprep.subr.bf16.mxu1 %v8519_v34  ;;  %v10342_v53 = vpop.f32.mrf.mxu1 }
 0x140   : > { %3390 = vmatpush2.bf16.msra.mxu0 %v8559_v46 }
 0x141   : > { %v1211_v60 = vpop.f32.mrf.mxu1  ;;  %3391 = vmatprep.subr.bf16.mxu0 %v8567_v35 }
 0x142   : > { %2673 = vmatpush2.bf16.msra.mxu1 %v8517_v41 }
 0x143   : > { %2674 = vmatprep.subr.bf16.mxu1 %v8525_v39  ;;  %v1212_v12 = vpop.f32.mrf.mxu1 }
 0x144   : > { %3392 = vmatpush2.bf16.msra.mxu0 %v8565_v56 }
 0x145   : > { %3393 = vmatprep.subr.bf16.mxu0 %v8573_v58 }
 0x146   : > { %2675 = vmatpush2.bf16.msra.mxu1 %v8523_v61  ;;  %v8610_v61 = vld [vmem:[%s12034_s1 + $0xba8] ss:$16 sps:$4 sm:$0xff]  }
 0x147   : > { %2676 = vmatprep.subr.bf16.mxu1 %v8531_v63 }
 0x148   : > { %3394 = vmatpush2.bf16.msra.mxu0 %v8571_v49 }
 0x149   : > { %3395 = vmatprep.subr.bf16.mxu0 %v8579_v1 }
 0x14a   : > { %2677 = vmatpush2.bf16.msra.mxu1 %v8529_v52 }
 0x14b   : > { %2678 = vmatprep.subr.bf16.mxu1 %v8537_v6 }
 0x14c   : > { %3396 = vmatpush2.bf16.msra.mxu0 %v8577_v13 }
 0x14d   : > { %3397 = vmatprep.subr.bf16.mxu0 %v8585_v14  ;;  %v8624_v14 = vld [vmem:[%s12034_s1 + $0xb6c] ss:$16 sps:$4 sm:$0xff]  }
 0x14e   : > { %2679 = vmatpush2.bf16.msra.mxu1 %v8535_v15 }
 0x14f   : > { %2680 = vmatprep.subr.bf16.mxu1 %v8543_v16 }
 0x150   : > { %3398 = vmatpush2.bf16.msra.mxu0 %v8583_v48 }
 0x151   : > { %3399 = vmatprep.subr.bf16.mxu0 %v8591_v17  ;;  %v8630_v17 = vld [vmem:[%s12034_s1 + $0xb4c] ss:$16 sps:$4 sm:$0xff]  }
 0x152   : > { %2681 = vmatpush2.bf16.msra.mxu1 %v8541_v21  ;;  %v8588_v21 = vld [vmem:[%s12034_s1 + $0xb24] ss:$16 sps:$4 sm:$0xff]  }
 0x153   : > { %3420 = vmatprep.subr.bf16.mxu1 %v8552_v22  ;;  %v8628_v22 = vld [vmem:[%s12034_s1 + $0xb48] ss:$16 sps:$4 sm:$0xff]  }
 0x154   : > { %3400 = vmatpush2.bf16.msra.mxu0 %v8589_v54  ;;  %v1785_v29 = vpop.f32.mrf.mxu0  ;;  %v8636_v54 = vld [vmem:[%s12034_s1 + $0xb2c] ss:$16 sps:$4 sm:$0xff]  }
 0x155   : > { %v1248_v26 = vpop.f32.mrf.mxu1  ;;  %2683 = vmatmul.mubr.bf16.vlgmr.msra.gmra.mxu1 %v10041_v27  ;;  %3522 = vmatprep.subr.bf16.mxu0 %v8600_v7  ;;  %v10429_v8 = vadd.f32 %v1785_v29, %v10180_v38  ;;  %v8604_v27 = vld [vmem:[%s12034_s1 + $0xbc8] ss:$16 sps:$4 sm:$0xff]   ;;  %v8562_v38 = vld [vmem:[%s12034_s1 + $0xba0] ss:$16 sps:$4 sm:$0xff]  }
 0x156   : > { %v10426_v43 = vadd.f32 %v1248_v26, %v10305_v28  ;;  %3421 = vmatpush1.bf16.msra.mxu1 %v8550_v20  ;;  %2692 = vmatprep.mubr.bf16.mxu1 %v9844_v62  ;;  %v1787_v34 = vpop.f32.mrf.mxu0  ;;  %v8612_v62 = vld [vmem:[%s12034_s1 + $0xbac] ss:$16 sps:$4 sm:$0xff]   ;;  %v8586_v7 = vld [vmem:[%s12034_s1 + $0xb20] ss:$16 sps:$4 sm:$0xff]   ;;  %v8594_v20 = vld [vmem:[%s12034_s1 + $0xb04] ss:$16 sps:$4 sm:$0xff]  }
 0x157   : > { %v1250_v40 = vpop.f32.mrf.mxu1  ;;  %3422 = vmatprep.subr.bf16.mxu1 %v8558_v33  ;;  %3402 = vmatmul.mubr.bf16.vlgmr.msra.gmra.mxu0 %v10416_v25  ;;  %v10440_v28 = vadd.f32 %v1787_v34, %v10196_v10  ;;  %v1153_v10 = vadd.f32 %v10077_v42, %v10210_v50  ;;  %v8568_v42 = vld [vmem:[%s12034_s1 + $0xb80] ss:$16 sps:$4 sm:$0xff]   ;;  %v8642_v33 = vld [vmem:[%s12034_s1 + $0xb0c] ss:$16 sps:$4 sm:$0xff]   ;;  %v8648_v26 = vld [vmem:[%s12034_s1 + $0xce4] ss:$16 sps:$4 sm:$0xff]  }
 0x158   : > { %v10437_v41 = vadd.f32 %v1250_v40, %v10307_v32  ;;  %3523 = vmatpush1.bf16.msra.mxu0 %v8598_v3  ;;  %3411 = vmatprep.mubr.bf16.mxu0 %v10199_v44  ;;  %v1789_v35 = vpop.f32.mrf.mxu0  ;;  %v8570_v32 = vld [vmem:[%s12034_s1 + $0xb84] ss:$16 sps:$4 sm:$0xff]   ;;  %v8592_v3 = vld [vmem:[%s12034_s1 + $0xb00] ss:$16 sps:$4 sm:$0xff]   ;;  %v8595_v29 = vld [vmem:[%s12034_s1 + $0x9e8] ss:$16 sps:$4 sm:$0xff]  }
 0x159   : > { %v1252_v46 = vpop.f32.mrf.mxu1  ;;  %3524 = vmatprep.subr.bf16.mxu0 %v8606_v57  ;;  %v10458_v56 = vadd.f32 %v1789_v35, %v10202_v45  ;;  %v8618_v45 = vld [vmem:[%s12034_s1 + $0xb8c] ss:$16 sps:$4 sm:$0xff]   ;;  %v8640_v57 = vld [vmem:[%s12034_s1 + $0xb08] ss:$16 sps:$4 sm:$0xff]   ;;  %v8646_v40 = vld [vmem:[%s12034_s1 + $0xce0] ss:$16 sps:$4 sm:$0xff]  }
 0x15a   : > { %v10455_v39 = vadd.f32 %v1252_v46, %v10321_v4  ;;  %3423 = vmatpush1.bf16.msra.mxu1 %v8556_v24  ;;  %v1791_v60 = vpop.f32.mrf.mxu0  ;;  %v8597_v24 = vld [vmem:[%s12034_s1 + $0x9ec] ss:$16 sps:$4 sm:$0xff]   ;;  %v8652_v35 = vld [vmem:[%s12034_s1 + $0xcc0] ss:$16 sps:$4 sm:$0xff]  }
 0x15b   : > { %v1254_v58 = vpop.f32.mrf.mxu1  ;;  %3424 = vmatprep.subr.bf16.mxu1 %v8564_v37  ;;  %v10466_v49 = vadd.f32 %v1791_v60, %v1153_v10  ;;  %v8603_v37 = vld [vmem:[%s12034_s1 + $0x9cc] ss:$16 sps:$4 sm:$0xff]   ;;  %v8607_v60 = vld [vmem:[%s12034_s1 + $0x9a8] ss:$16 sps:$4 sm:$0xff]  }
 0x15c   : > { %v10464_v63 = vadd.f32 %v1254_v58, %v10323_v9  ;;  %3525 = vmatpush1.bf16.msra.mxu0 %v8604_v27  ;;  %v1795_v4 = vpop.f32.mrf.mxu0  ;;  %v8576_v9 = vld [vmem:[%s12034_s1 + $0xb64] ss:$16 sps:$4 sm:$0xff]   ;;  %v8609_v46 = vld [vmem:[%s12034_s1 + $0x9ac] ss:$16 sps:$4 sm:$0xff]  }
 0x15d   : > { %v1258_v50 = vpop.f32.mrf.mxu1  ;;  %2693 = vmatmul.mubr.bf16.gmra.mxu1 %v10026_v23  ;;  %3526 = vmatprep.subr.bf16.mxu0 %v8612_v62  ;;  %v10482_v1 = vadd.f32 %v1795_v4, %v10229_v59  ;;  %v8616_v23 = vld [vmem:[%s12034_s1 + $0xb88] ss:$16 sps:$4 sm:$0xff]   ;;  %v8574_v59 = vld [vmem:[%s12034_s1 + $0xb60] ss:$16 sps:$4 sm:$0xff]   ;;  %v8654_v27 = vld [vmem:[%s12034_s1 + $0xcc4] ss:$16 sps:$4 sm:$0xff]  }
 0x15e   : > { %v10479_v12 = vadd.f32 %v1258_v50, %v10337_v51  ;;  %3425 = vmatpush1.bf16.msra.mxu1 %v8562_v38  ;;  %3452 = vmatprep.mubr.bf16.mxu1 %v9146_v2  ;;  %v1797_v6 = vpop.f32.mrf.mxu0  ;;  %v8601_v62 = vld [vmem:[%s12034_s1 + $0x9c8] ss:$16 sps:$4 sm:$0xff]   ;;  %v10590_v50 = vrot.slane %v9425_v5, 2 }
 0x15f   : > { %v1260_v52 = vpop.f32.mrf.mxu1  ;;  %3426 = vmatprep.subr.bf16.mxu1 %v8570_v32  ;;  %3412 = vmatmul.mubr.bf16.gmra.mxu0 %v9481_v36  ;;  %v10493_v51 = vadd.f32 %v1797_v6, %v10239_v0  ;;  %v8582_v0 = vld [vmem:[%s12034_s1 + $0xb44] ss:$16 sps:$4 sm:$0xff]  }
 0x160   : > { %v10490_v13 = vadd.f32 %v1260_v52, %v10342_v53  ;;  %3527 = vmatpush1.bf16.msra.mxu0 %v8610_v61  ;;  %3554 = vmatprep.mubr.bf16.mxu0 %v9146_v2  ;;  %v1799_v16 = vpop.f32.mrf.mxu0  ;;  %v8622_v53 = vld [vmem:[%s12034_s1 + $0xb68] ss:$16 sps:$4 sm:$0xff]  }
 0x161   : > { %v1262_v15 = vpop.f32.mrf.mxu1  ;;  %3528 = vmatprep.subr.bf16.mxu0 %v8618_v45  ;;  %v8621_v16 = vld [vmem:[%s12034_s1 + $0x96c] ss:$16 sps:$4 sm:$0xff]  }
 0x162   : > { %3427 = vmatpush1.bf16.msra.mxu1 %v8568_v42  ;;  %v1800_v18 = vpop.f32.mrf.mxu0 }
 0x163   : > { %3428 = vmatprep.subr.bf16.mxu1 %v8576_v9  ;;  %v1263_v48 = vpop.f32.mrf.mxu1  ;;  %v8658_v9 = vld [vmem:[%s12034_s1 + $0xca0] ss:$16 sps:$4 sm:$0xff]  }
 0x164   : > { %3529 = vmatpush1.bf16.msra.mxu0 %v8616_v23  ;;  %v8666_v23 = vld [vmem:[%s12034_s1 + $0xc84] ss:$16 sps:$4 sm:$0xff]  }
 0x165   : > { %3530 = vmatprep.subr.bf16.mxu0 %v8624_v14 }
 0x166   : > { %3429 = vmatpush1.bf16.msra.mxu1 %v8574_v59 }
 0x167   : > { %3430 = vmatprep.subr.bf16.mxu1 %v8582_v0  ;;  %v8664_v0 = vld [vmem:[%s12034_s1 + $0xc80] ss:$16 sps:$4 sm:$0xff]  }
 0x168   : > { %3531 = vmatpush1.bf16.msra.mxu0 %v8622_v53 }
 0x169   : > { %3532 = vmatprep.subr.bf16.mxu0 %v8630_v17  ;;  %v8672_v17 = vld [vmem:[%s12034_s1 + $0xc64] ss:$16 sps:$4 sm:$0xff]  }
 0x16a   : > { %3431 = vmatpush1.bf16.msra.mxu1 %v8580_v19 }
 0x16b   : > { %3432 = vmatprep.subr.bf16.mxu1 %v8588_v21 }
 0x16c   : > { %3533 = vmatpush1.bf16.msra.mxu0 %v8628_v22 }
 0x16d   : > { %3534 = vmatprep.subr.bf16.mxu0 %v8636_v54  ;;  %v8678_v54 = vld [vmem:[%s12034_s1 + $0xc44] ss:$16 sps:$4 sm:$0xff]  }
 0x16e   : > { %3433 = vmatpush1.bf16.msra.mxu1 %v8586_v7 }
 0x16f   : > { %3434 = vmatprep.subr.bf16.mxu1 %v8594_v20  ;;  %v8625_v20 = vld [vmem:[%s12034_s1 + $0x948] ss:$16 sps:$4 sm:$0xff]  }
 0x170   : > { %3535 = vmatpush1.bf16.msra.mxu0 %v8634_v30  ;;  %v8633_v30 = vld [vmem:[%s12034_s1 + $0x92c] ss:$16 sps:$4 sm:$0xff]  }
 0x171   : > { %3536 = vmatprep.subr.bf16.mxu0 %v8642_v33  ;;  %v8676_v33 = vld [vmem:[%s12034_s1 + $0xc40] ss:$16 sps:$4 sm:$0xff]  }
 0x172   : > { %3435 = vmatpush1.bf16.msra.mxu1 %v8592_v3  ;;  %v8684_v3 = vld [vmem:[%s12034_s1 + $0xc24] ss:$16 sps:$4 sm:$0xff]  }
 0x173   : > { %3471 = vmatprep.subr.bf16.mxu1 %v8597_v24  ;;  %v8631_v24 = vld [vmem:[%s12034_s1 + $0x928] ss:$16 sps:$4 sm:$0xff]  }
 0x174   : > { %3537 = vmatpush1.bf16.msra.mxu0 %v8640_v57  ;;  %v8639_v57 = vld [vmem:[%s12034_s1 + $0x90c] ss:$16 sps:$4 sm:$0xff]  }
 0x175   : > { %v1836_v34 = vpop.f32.mrf.mxu1  ;;  %3453 = vmatmul.mubr.bf16.vlgmr.msra.gmra.mxu1 %v10053_v31  ;;  %4178 = vmatprep.subr.bf16.mxu0 %v8648_v26  ;;  %v8682_v26 = vld [vmem:[%s12034_s1 + $0xc20] ss:$16 sps:$4 sm:$0xff]  }
 0x176   : > { %v10561_v38 = vadd.f32 %v1836_v34, %v10429_v8  ;;  %3472 = vmatpush1.bf16.msra.mxu1 %v8595_v29  ;;  %3462 = vmatprep.mubr.bf16.mxu1 %v9146_v2  ;;  %v8660_v8 = vld [vmem:[%s12034_s1 + $0xca4] ss:$16 sps:$4 sm:$0xff]   ;;  %v8688_v34 = vld [vmem:[%s12034_s1 + $0xc00] ss:$16 sps:$4 sm:$0xff]  }
 0x177   : > { %v1838_v32 = vpop.f32.mrf.mxu1  ;;  %3473 = vmatprep.subr.bf16.mxu1 %v8603_v37  ;;  %3555 = vmatmul.mubr.bf16.vlgmr.msra.gmra.mxu0 %v10053_v31  ;;  %v10577_v10 = vpop.f32.mrf.mxu0  ;;  %v9080_v31 = vld [vmem:[%s9321_s21 + $0x4] ss:$12 sps:$4 sm:$0xff]   ;;  %v8637_v37 = vld [vmem:[%s12034_s1 + $0x908] ss:$16 sps:$4 sm:$0xff]  }
 0x178   : > { %v10580_v58 = vadd.f32 %v1838_v32, %v10440_v28  ;;  %4179 = vmatpush1.bf16.msra.mxu0 %v8646_v40  ;;  %3564 = vmatprep.mubr.bf16.mxu0 %v9146_v2  ;;  %v3686_v45 = vrot.slane %v9080_v31, 2  ;;  %v8615_v28 = vld [vmem:[%s12034_s1 + $0x98c] ss:$16 sps:$4 sm:$0xff]   ;;  %v8690_v29 = vld [vmem:[%s12034_s1 + $0xc04] ss:$16 sps:$4 sm:$0xff]  }
 0x179   : > { %v1840_v61 = vpop.f32.mrf.mxu1  ;;  %4180 = vmatprep.subr.bf16.mxu0 %v8654_v27  ;;  %v10586_v42 = vpop.f32.mrf.mxu0  ;;  %v8645_v40 = vld [vmem:[%s12034_s1 + $0xaec] ss:$16 sps:$4 sm:$0xff]   ;;  %v8643_v32 = vld [vmem:[%s12034_s1 + $0xae8] ss:$16 sps:$4 sm:$0xff]  }
 0x17a   : > { %v10593_v4 = vadd.f32 %v1840_v61, %v10458_v56  ;;  %3474 = vmatpush1.bf16.msra.mxu1 %v8601_v62  ;;  %v10614_v14 = vsel %vm3682_vm3, %v3686_v45, %v10590_v50  ;;  %v10687_v27 = vld [vmem:[%s9321_s21] ss:$12 sps:$4 sm:$0xff]   ;;  %v8649_v61 = vld [vmem:[%s12034_s1 + $0xac8] ss:$16 sps:$4 sm:$0xff]  }
 0x17b   : > { %v1842_v52 = vpop.f32.mrf.mxu1  ;;  %3475 = vmatprep.subr.bf16.mxu1 %v8609_v46  ;;  %v10601_v6 = vpop.f32.mrf.mxu0  ;;  %v3683_v62 = vrot.slane %v10687_v27, 2  ;;  %v10691_v46 = vrot.slane %v9436_v11, 2  ;;  %v8691_v11 = vld [vmem:[%s12034_s1 + $0xde0] ss:$16 sps:$4 sm:$0xff]   ;;  %v8657_v31 = vld [vmem:[%s12034_s1 + $0xaac] ss:$16 sps:$4 sm:$0xff]  }
 0x17c   : > { %v10604_v5 = vadd.f32 %v1842_v52, %v10466_v49  ;;  %4181 = vmatpush1.bf16.msra.mxu0 %v8652_v35  ;;  %v8613_v49 = vld [vmem:[%s12034_s1 + $0x988] ss:$16 sps:$4 sm:$0xff]   ;;  %v8693_v35 = vld [vmem:[%s12034_s1 + $0xde4] ss:$16 sps:$4 sm:$0xff]   ;;  %v8697_v45 = vld [vmem:[%s12034_s1 + $0xdc0] ss:$16 sps:$4 sm:$0xff]  }
 0x17d   : > { %v1846_v56 = vpop.f32.mrf.mxu1  ;;  %3463 = vmatmul.mubr.bf16.gmra.mxu1 %v9363_v47  ;;  %4182 = vmatprep.subr.bf16.mxu0 %v8660_v8  ;;  %v10610_v59 = vpop.f32.mrf.mxu0  ;;  %v8651_v8 = vld [vmem:[%s12034_s1 + $0xacc] ss:$16 sps:$4 sm:$0xff]   ;;  %v8766_v27 = vld [vmem:[%s12034_s1 + $0xec8] ss:$16 sps:$4 sm:$0xff]  }
 0x17e   : > { %v10617_v15 = vadd.f32 %v1846_v56, %v10482_v1  ;;  %3476 = vmatpush1.bf16.msra.mxu1 %v8607_v60  ;;  %3503 = vmatprep.mubr.bf16.mxu1 %v10220_v55  ;;  %v8627_v55 = vld [vmem:[%s12034_s1 + $0x94c] ss:$16 sps:$4 sm:$0xff]   ;;  %v8699_v60 = vld [vmem:[%s12034_s1 + $0xdc4] ss:$16 sps:$4 sm:$0xff]   ;;  %v8703_v56 = vld [vmem:[%s12034_s1 + $0xda0] ss:$16 sps:$4 sm:$0xff]  }
 0x17f   : > { %v1848_v53 = vpop.f32.mrf.mxu1  ;;  %3477 = vmatprep.subr.bf16.mxu1 %v8615_v28  ;;  %3565 = vmatmul.mubr.bf16.gmra.mxu0 %v9363_v47  ;;  %v10630_v1 = vpop.f32.mrf.mxu0  ;;  %v8619_v47 = vld [vmem:[%s12034_s1 + $0x968] ss:$16 sps:$4 sm:$0xff]   ;;  %v8705_v28 = vld [vmem:[%s12034_s1 + $0xda4] ss:$16 sps:$4 sm:$0xff]   ;;  %v8663_v52 = vld [vmem:[%s12034_s1 + $0xa8c] ss:$16 sps:$4 sm:$0xff]  }
 0x180   : > { %v10633_v48 = vadd.f32 %v1848_v53, %v10493_v51  ;;  %4183 = vmatpush1.bf16.msra.mxu0 %v8658_v9  ;;  %4210 = vmatprep.mubr.bf16.mxu0 %v10614_v14  ;;  %v8670_v51 = vld [vmem:[%s12034_s1 + $0xc60] ss:$16 sps:$4 sm:$0xff]   ;;  %v8655_v9 = vld [vmem:[%s12034_s1 + $0xaa8] ss:$16 sps:$4 sm:$0xff]   ;;  %v8717_v53 = vld [vmem:[%s12034_s1 + $0xd64] ss:$16 sps:$4 sm:$0xff]  }
 0x181   : > { %4184 = vmatprep.subr.bf16.mxu0 %v8666_v23  ;;  %v1850_v18 = vpop.f32.mrf.mxu1  ;;  %v10639_v19 = vpop.f32.mrf.mxu0  ;;  %v8711_v23 = vld [vmem:[%s12034_s1 + $0xd84] ss:$16 sps:$4 sm:$0xff]  }
 0x182   : > { %3478 = vmatpush1.bf16.msra.mxu1 %v8613_v49  ;;  %v8661_v49 = vld [vmem:[%s12034_s1 + $0xa88] ss:$16 sps:$4 sm:$0xff]   ;;  %v8675_v18 = vld [vmem:[%s12034_s1 + $0xa4c] ss:$16 sps:$4 sm:$0xff]  }
 0x183   : > { %3479 = vmatprep.subr.bf16.mxu1 %v8621_v16  ;;  %v1851_v21 = vpop.f32.mrf.mxu1  ;;  %v1952_v22 = vpop.f32.mrf.mxu0  ;;  %v8669_v16 = vld [vmem:[%s12034_s1 + $0xa6c] ss:$16 sps:$4 sm:$0xff]  }
 0x184   : > { %4185 = vmatpush1.bf16.msra.mxu0 %v8664_v0  ;;  %v8709_v0 = vld [vmem:[%s12034_s1 + $0xd80] ss:$16 sps:$4 sm:$0xff]   ;;  %v8681_v21 = vld [vmem:[%s12034_s1 + $0xa2c] ss:$16 sps:$4 sm:$0xff]  }
 0x185   : > { %4186 = vmatprep.subr.bf16.mxu0 %v8672_v17  ;;  %v1953_v7 = vpop.f32.mrf.mxu0  ;;  %v8667_v17 = vld [vmem:[%s12034_s1 + $0xa68] ss:$16 sps:$4 sm:$0xff]   ;;  %v8721_v22 = vld [vmem:[%s12034_s1 + $0xd40] ss:$16 sps:$4 sm:$0xff]  }
 0x186   : > { %3480 = vmatpush1.bf16.msra.mxu1 %v8619_v47  ;;  %v8715_v47 = vld [vmem:[%s12034_s1 + $0xd60] ss:$16 sps:$4 sm:$0xff]   ;;  %v8679_v7 = vld [vmem:[%s12034_s1 + $0xa28] ss:$16 sps:$4 sm:$0xff]  }
 0x187   : > { %3481 = vmatprep.subr.bf16.mxu1 %v8627_v55  ;;  %v8723_v55 = vld [vmem:[%s12034_s1 + $0xd44] ss:$16 sps:$4 sm:$0xff]  }
 0x188   : > { %4187 = vmatpush1.bf16.msra.mxu0 %v8670_v51  ;;  %v8673_v51 = vld [vmem:[%s12034_s1 + $0xa48] ss:$16 sps:$4 sm:$0xff]  }
 0x189   : > { %4188 = vmatprep.subr.bf16.mxu0 %v8678_v54  ;;  %v8729_v54 = vld [vmem:[%s12034_s1 + $0xd24] ss:$16 sps:$4 sm:$0xff]  }
 0x18a   : > { %3482 = vmatpush1.bf16.msra.mxu1 %v8625_v20  ;;  %v8687_v20 = vld [vmem:[%s12034_s1 + $0xa0c] ss:$16 sps:$4 sm:$0xff]  }
 0x18b   : > { %3483 = vmatprep.subr.bf16.mxu1 %v8633_v30  ;;  %v8727_v30 = vld [vmem:[%s12034_s1 + $0xd20] ss:$16 sps:$4 sm:$0xff]  }
 0x18c   : > { %4189 = vmatpush1.bf16.msra.mxu0 %v8676_v33  ;;  %v8735_v33 = vld [vmem:[%s12034_s1 + $0xd04] ss:$16 sps:$4 sm:$0xff]  }
 0x18d   : > { %4190 = vmatprep.subr.bf16.mxu0 %v8684_v3  ;;  %v8685_v3 = vld [vmem:[%s12034_s1 + $0xa08] ss:$16 sps:$4 sm:$0xff]  }
 0x18e   : > { %3484 = vmatpush1.bf16.msra.mxu1 %v8631_v24  ;;  %v8696_v24 = vld [vmem:[%s12034_s1 + $0xee4] ss:$16 sps:$4 sm:$0xff]  }
 0x18f   : > { %3485 = vmatprep.subr.bf16.mxu1 %v8639_v57  ;;  %v8733_v57 = vld [vmem:[%s12034_s1 + $0xd00] ss:$16 sps:$4 sm:$0xff]  }
 0x190   : > { %4191 = vmatpush1.bf16.msra.mxu0 %v8682_v26  ;;  %v8762_v26 = vld [vmem:[%s12034_s1 + $0xeec] ss:$16 sps:$4 sm:$0xff]  }
 0x191   : > { %4192 = vmatprep.subr.bf16.mxu0 %v8690_v29  ;;  %v8694_v29 = vld [vmem:[%s12034_s1 + $0xee0] ss:$16 sps:$4 sm:$0xff]  }
 0x192   : > { %3486 = vmatpush1.bf16.msra.mxu1 %v8637_v37  ;;  %v8702_v37 = vld [vmem:[%s12034_s1 + $0xec4] ss:$16 sps:$4 sm:$0xff]  }
 0x193   : > { %3487 = vmatprep.subr.bf16.mxu1 %v8645_v40  ;;  %v8760_v40 = vld [vmem:[%s12034_s1 + $0xee8] ss:$16 sps:$4 sm:$0xff]  }
 0x194   : > { %4193 = vmatpush1.bf16.msra.mxu0 %v8688_v34  ;;  %v8768_v34 = vld [vmem:[%s12034_s1 + $0xecc] ss:$16 sps:$4 sm:$0xff]  }
 0x195   : > { %4194 = vmatprep.subr.bf16.mxu0 %v8693_v35  ;;  %v8700_v35 = vld [vmem:[%s12034_s1 + $0xec0] ss:$16 sps:$4 sm:$0xff]  }
 0x196   : > { %3488 = vmatpush2.bf16.msra.mxu1 %v8643_v32  ;;  %v10811_v32 = vsel %vm3682_vm3, %v3683_v62, %v10691_v46 }
 0x197   : > { %3489 = vmatprep.subr.bf16.mxu1 %v8651_v8 }
 0x198   : > { %4195 = vmatpush2.bf16.msra.mxu0 %v8691_v11  ;;  %v8708_v11 = vld [vmem:[%s12034_s1 + $0xea4] ss:$16 sps:$4 sm:$0xff]  }
 0x199   : > { %4196 = vmatprep.subr.bf16.mxu0 %v8699_v60 }
 0x19a   : > { %3490 = vmatpush2.bf16.msra.mxu1 %v8649_v61 }
 0x19b   : > { %3491 = vmatprep.subr.bf16.mxu1 %v8657_v31 }
 0x19c   : > { %4197 = vmatpush2.bf16.msra.mxu0 %v8697_v45 }
 0x19d   : > { %4198 = vmatprep.subr.bf16.mxu0 %v8705_v28  ;;  %v8714_v28 = vld [vmem:[%s12034_s1 + $0xe84] ss:$16 sps:$4 sm:$0xff]  }
 0x19e   : > { %3492 = vmatpush2.bf16.msra.mxu1 %v8655_v9 }
 0x19f   : > { %3493 = vmatprep.subr.bf16.mxu1 %v8663_v52  ;;  %v8772_v52 = vld [vmem:[%s12034_s1 + $0xea8] ss:$16 sps:$4 sm:$0xff]  }
 0x1a0   : > { %4199 = vmatpush2.bf16.msra.mxu0 %v8703_v56 }
 0x1a1   : > { %4200 = vmatprep.subr.bf16.mxu0 %v8711_v23 }
 0x1a2   : > { %3494 = vmatpush2.bf16.msra.mxu1 %v8661_v49  ;;  %v8780_v49 = vld [vmem:[%s12034_s1 + $0xe8c] ss:$16 sps:$4 sm:$0xff]  }
 0x1a3   : > { %3495 = vmatprep.subr.bf16.mxu1 %v8669_v16 }
 0x1a4   : > { %4201 = vmatpush2.bf16.msra.mxu0 %v8709_v0 }
 0x1a5   : > { %4202 = vmatprep.subr.bf16.mxu0 %v8717_v53 }
 0x1a6   : > { %3496 = vmatpush2.bf16.msra.mxu1 %v8667_v17 }
 0x1a7   : > { %3497 = vmatprep.subr.bf16.mxu1 %v8675_v18 }
 0x1a8   : > { %4203 = vmatpush2.bf16.msra.mxu0 %v8715_v47  ;;  %v8778_v47 = vld [vmem:[%s12034_s1 + $0xe88] ss:$16 sps:$4 sm:$0xff]  }
 0x1a9   : > { %4204 = vmatprep.subr.bf16.mxu0 %v8723_v55 }
 0x1aa   : > { %3498 = vmatpush2.bf16.msra.mxu1 %v8673_v51 }
 0x1ab   : > { %3499 = vmatprep.subr.bf16.mxu1 %v8681_v21  ;;  %v8786_v21 = vld [vmem:[%s12034_s1 + $0xe6c] ss:$16 sps:$4 sm:$0xff]  }
 0x1ac   : > { %4205 = vmatpush2.bf16.msra.mxu0 %v8721_v22  ;;  %v8726_v22 = vld [vmem:[%s12034_s1 + $0xe44] ss:$16 sps:$4 sm:$0xff]  }
 0x1ad   : > { %4206 = vmatprep.subr.bf16.mxu0 %v8729_v54 }
 0x1ae   : > { %3500 = vmatpush2.bf16.msra.mxu1 %v8679_v7 }
 0x1af   : > { %3501 = vmatprep.subr.bf16.mxu1 %v8687_v20  ;;  %v8784_v20 = vld [vmem:[%s12034_s1 + $0xe68] ss:$16 sps:$4 sm:$0xff]  }
 0x1b0   : > { %4207 = vmatpush2.bf16.msra.mxu0 %v8727_v30 }
 0x1b1   : > { %4208 = vmatprep.subr.bf16.mxu0 %v8735_v33  ;;  %v8724_v33 = vld [vmem:[%s12034_s1 + $0xe40] ss:$16 sps:$4 sm:$0xff]  }
 0x1b2   : > { %3502 = vmatpush2.bf16.msra.mxu1 %v8685_v3  ;;  %v8732_v3 = vld [vmem:[%s12034_s1 + $0xe24] ss:$16 sps:$4 sm:$0xff]  }
 0x1b3   : > { %4229 = vmatprep.subr.bf16.mxu1 %v8696_v24  ;;  %v8790_v24 = vld [vmem:[%s12034_s1 + $0xe48] ss:$16 sps:$4 sm:$0xff]  }
 0x1b4   : > { %4209 = vmatpush2.bf16.msra.mxu0 %v8733_v57  ;;  %v8798_v57 = vld [vmem:[%s12034_s1 + $0xe2c] ss:$16 sps:$4 sm:$0xff]  }
 0x1b5   : > { %v1887_v8 = vpop.f32.mrf.mxu1  ;;  %3504 = vmatmul.mubr.bf16.vlgmr.msra.gmra.mxu1 %v10416_v25  ;;  %4331 = vmatprep.subr.bf16.mxu0 %v8762_v26  ;;  %v8774_v25 = vld [vmem:[%s12034_s1 + $0xeac] ss:$16 sps:$4 sm:$0xff]   ;;  %v8730_v26 = vld [vmem:[%s12034_s1 + $0xe20] ss:$16 sps:$4 sm:$0xff]  }
 0x1b6   : > { %v1888_v60 = vadd.f32 %v1887_v8, %v10426_v43  ;;  %4230 = vmatpush1.bf16.msra.mxu1 %v8694_v29  ;;  %3513 = vmatprep.mubr.bf16.mxu1 %v10199_v44  ;;  %v8706_v44 = vld [vmem:[%s12034_s1 + $0xea0] ss:$16 sps:$4 sm:$0xff]   ;;  %v8738_v29 = vld [vmem:[%s12034_s1 + $0xe04] ss:$16 sps:$4 sm:$0xff]  }
 0x1b7   : > { %v1889_v61 = vpop.f32.mrf.mxu1  ;;  %4231 = vmatprep.subr.bf16.mxu1 %v8702_v37  ;;  %v10822_v62 = vpop.f32.mrf.mxu0  ;;  %4211 = vmatmul.mubr.bf16.vlgmr.msra.gmra.mxu0 %v10811_v32  ;;  %v8796_v37 = vld [vmem:[%s12034_s1 + $0xe28] ss:$16 sps:$4 sm:$0xff]  }
 0x1b8   : > { %v10829_v31 = vadd.f32 %v10577_v10, %v1888_v60  ;;  %v1890_v43 = vadd.f32 %v1889_v61, %v10437_v41  ;;  %4220 = vmatprep.mubr.bf16.mxu0 %v10590_v50  ;;  %4332 = vmatpush1.bf16.msra.mxu0 %v8760_v40  ;;  %v8804_v40 = vld [vmem:[%s12034_s1 + $0xe0c] ss:$16 sps:$4 sm:$0xff]   ;;  %v8802_v61 = vld [vmem:[%s12034_s1 + $0xe08] ss:$16 sps:$4 sm:$0xff]  }
 0x1b9   : > { %v1891_v45 = vpop.f32.mrf.mxu1  ;;  %v10839_v9 = vpop.f32.mrf.mxu0  ;;  %4333 = vmatprep.subr.bf16.mxu0 %v8768_v34  ;;  %v8736_v34 = vld [vmem:[%s12034_s1 + $0xe00] ss:$16 sps:$4 sm:$0xff]  }
 0x1ba   : > { %v10842_v10 = vadd.f32 %v10586_v42, %v1890_v43  ;;  %v1892_v41 = vadd.f32 %v1891_v45, %v10455_v39  ;;  %4232 = vmatpush1.bf16.msra.mxu1 %v8700_v35  ;;  %v9082_v35 = vld [vmem:[%s9321_s21 + $0x8] ss:$12 sps:$4 sm:$0xff]  }
 0x1bb   : > { %v1893_v56 = vpop.f32.mrf.mxu1  ;;  %4233 = vmatprep.subr.bf16.mxu1 %v8708_v11  ;;  %v10848_v23 = vpop.f32.mrf.mxu0  ;;  %v3689_v8 = vrot.slane %v9082_v35, 2  ;;  %v9083_v11 = vld [vmem:[%s9321_s21 + $0x20] ss:$0 sps:$4 sm:$0xff]   ;;  %v8739_v43 = vld [vmem:[%s12034_s1 + $0xce8] ss:$16 sps:$4 sm:$0xff]  }
 0x1bc   : > { %v10854_v16 = vadd.f32 %v10601_v6, %v1892_v41  ;;  %v1894_v42 = vadd.f32 %v1893_v56, %v10464_v63  ;;  %4334 = vmatpush1.bf16.msra.mxu0 %v8766_v27  ;;  %v8712_v6 = vld [vmem:[%s12034_s1 + $0xe80] ss:$16 sps:$4 sm:$0xff]   ;;  %v3690_v60 = vrot.slane %v9083_v11, 2  ;;  %v8741_v27 = vld [vmem:[%s12034_s1 + $0xcec] ss:$16 sps:$4 sm:$0xff]  }
 0x1bd   : > { %v1897_v39 = vpop.f32.mrf.mxu1  ;;  %3514 = vmatmul.mubr.bf16.gmra.mxu1 %v9481_v36  ;;  %v10858_v0 = vpop.f32.mrf.mxu0  ;;  %4335 = vmatprep.subr.bf16.mxu0 %v8774_v25  ;;  %v8720_v36 = vld [vmem:[%s12034_s1 + $0xe64] ss:$16 sps:$4 sm:$0xff]   ;;  %v8742_v41 = vld [vmem:[%s12034_s1 + $0xcc8] ss:$16 sps:$4 sm:$0xff]   ;;  %v8747_v56 = vld [vmem:[%s12034_s1 + $0xcac] ss:$16 sps:$4 sm:$0xff]  }
 0x1be   : > { %v10861_v53 = vadd.f32 %v10610_v59, %v1894_v42  ;;  %v1898_v17 = vadd.f32 %v1897_v39, %v10479_v12  ;;  %4234 = vmatpush1.bf16.msra.mxu1 %v8706_v44  ;;  %4261 = vmatprep.mubr.bf16.mxu1 %v9146_v2  ;;  %v3691_v25 = vsel %vm3682_vm3, %v3689_v8, %v3690_v60  ;;  %v8744_v44 = vld [vmem:[%s12034_s1 + $0xccc] ss:$16 sps:$4 sm:$0xff]   ;;  %v8781_v8 = vld [vmem:[%s12034_s1 + $0xda8] ss:$16 sps:$4 sm:$0xff]  }
 0x1bf   : > { %v1899_v63 = vpop.f32.mrf.mxu1  ;;  %4235 = vmatprep.subr.bf16.mxu1 %v8714_v28  ;;  %v10871_v18 = vpop.f32.mrf.mxu0  ;;  %4221 = vmatmul.mubr.bf16.gmra.mxu0 %v10691_v46  ;;  %v8783_v35 = vld [vmem:[%s12034_s1 + $0xdac] ss:$16 sps:$4 sm:$0xff]  }
 0x1c0   : > { %v1900_v59 = vadd.f32 %v1899_v63, %v10490_v13  ;;  %v10876_v12 = vadd.f32 %v10630_v1, %v1898_v17  ;;  %4336 = vmatpush1.bf16.msra.mxu0 %v8772_v52  ;;  %4363 = vmatprep.mubr.bf16.mxu0 %v9146_v2  ;;  %v8718_v1 = vld [vmem:[%s12034_s1 + $0xe60] ss:$16 sps:$4 sm:$0xff]   ;;  %v8789_v11 = vld [vmem:[%s12034_s1 + $0xd8c] ss:$16 sps:$4 sm:$0xff]  }
 0x1c1   : > { %v1901_v55 = vpop.f32.mrf.mxu1  ;;  %v10882_v51 = vpop.f32.mrf.mxu0  ;;  %4337 = vmatprep.subr.bf16.mxu0 %v8780_v49 }
 0x1c2   : > { %v10888_v13 = vadd.f32 %v10639_v19, %v1900_v59  ;;  %4236 = vmatpush1.bf16.msra.mxu1 %v8712_v6  ;;  %v8792_v19 = vld [vmem:[%s12034_s1 + $0xe4c] ss:$16 sps:$4 sm:$0xff]  }
 0x1c3   : > { %4237 = vmatprep.subr.bf16.mxu1 %v8720_v36  ;;  %v1902_v54 = vpop.f32.mrf.mxu1  ;;  %v2596_v7 = vpop.f32.mrf.mxu0  ;;  %v8745_v36 = vld [vmem:[%s12034_s1 + $0xca8] ss:$16 sps:$4 sm:$0xff]  }
 0x1c4   : > { %4338 = vmatpush1.bf16.msra.mxu0 %v8778_v47 }
 0x1c5   : > { %4339 = vmatprep.subr.bf16.mxu0 %v8786_v21  ;;  %v2597_v30 = vpop.f32.mrf.mxu0 }
 0x1c6   : > { %4238 = vmatpush1.bf16.msra.mxu1 %v8718_v1 }
 0x1c7   : > { %4239 = vmatprep.subr.bf16.mxu1 %v8726_v22  ;;  %v8748_v22 = vld [vmem:[%s12034_s1 + $0xc88] ss:$16 sps:$4 sm:$0xff]  }
 0x1c8   : > { %4340 = vmatpush1.bf16.msra.mxu0 %v8784_v20 }
 0x1c9   : > { %4341 = vmatprep.subr.bf16.mxu0 %v8792_v19  ;;  %v8751_v19 = vld [vmem:[%s12034_s1 + $0xc68] ss:$16 sps:$4 sm:$0xff]  }
 0x1ca   : > { %4240 = vmatpush1.bf16.msra.mxu1 %v8724_v33 }
 0x1cb   : > { %4241 = vmatprep.subr.bf16.mxu1 %v8732_v3  ;;  %v8754_v3 = vld [vmem:[%s12034_s1 + $0xc48] ss:$16 sps:$4 sm:$0xff]  }
 0x1cc   : > { %4342 = vmatpush1.bf16.msra.mxu0 %v8790_v24  ;;  %v8757_v24 = vld [vmem:[%s12034_s1 + $0xc28] ss:$16 sps:$4 sm:$0xff]  }
 0x1cd   : > { %4343 = vmatprep.subr.bf16.mxu0 %v8798_v57  ;;  %v8765_v57 = vld [vmem:[%s12034_s1 + $0xc0c] ss:$16 sps:$4 sm:$0xff]  }
 0x1ce   : > { %4242 = vmatpush1.bf16.msra.mxu1 %v8730_v26  ;;  %v8763_v26 = vld [vmem:[%s12034_s1 + $0xc08] ss:$16 sps:$4 sm:$0xff]  }
 0x1cf   : > { %4243 = vmatprep.subr.bf16.mxu1 %v8738_v29  ;;  %v8771_v29 = vld [vmem:[%s12034_s1 + $0xdec] ss:$16 sps:$4 sm:$0xff]  }
 0x1d0   : > { %4344 = vmatpush1.bf16.msra.mxu0 %v8796_v37  ;;  %v8769_v37 = vld [vmem:[%s12034_s1 + $0xde8] ss:$16 sps:$4 sm:$0xff]  }
 0x1d1   : > { %4345 = vmatprep.subr.bf16.mxu0 %v8804_v40  ;;  %v8777_v40 = vld [vmem:[%s12034_s1 + $0xdcc] ss:$16 sps:$4 sm:$0xff]  }
 0x1d2   : > { %4244 = vmatpush1.bf16.msra.mxu1 %v8736_v34  ;;  %v8775_v34 = vld [vmem:[%s12034_s1 + $0xdc8] ss:$16 sps:$4 sm:$0xff]  }
 0x1d3   : > { %4280 = vmatprep.subr.bf16.mxu1 %v8741_v27  ;;  %v8795_v27 = vld [vmem:[%s12034_s1 + $0xd6c] ss:$16 sps:$4 sm:$0xff]  }
 0x1d4   : > { %4346 = vmatpush1.bf16.msra.mxu0 %v8802_v61  ;;  %v8793_v61 = vld [vmem:[%s12034_s1 + $0xd68] ss:$16 sps:$4 sm:$0xff]  }
 0x1d5   : > { %v2633_v45 = vpop.f32.mrf.mxu1  ;;  %4262 = vmatmul.mubr.bf16.vlgmr.msra.gmra.mxu1 %v3691_v25 }
 0x1d6   : > { %v2634_v28 = vadd.f32 %v2633_v45, %v10822_v62  ;;  %4281 = vmatpush1.bf16.msra.mxu1 %v8739_v43  ;;  %4271 = vmatprep.mubr.bf16.mxu1 %v9146_v2  ;;  %v8799_v43 = vld [vmem:[%s12034_s1 + $0xd48] ss:$16 sps:$4 sm:$0xff]  }
 0x1d7   : > { %v2635_v52 = vpop.f32.mrf.mxu1  ;;  %4282 = vmatprep.subr.bf16.mxu1 %v8744_v44  ;;  %4364 = vmatmul.mubr.bf16.vlgmr.msra.gmra.mxu0 %v3691_v25  ;;  %v10952_v49 = vpop.f32.mrf.mxu0  ;;  %v8801_v25 = vld [vmem:[%s12034_s1 + $0xd4c] ss:$16 sps:$4 sm:$0xff]   ;;  %v8805_v45 = vld [vmem:[%s12034_s1 + $0xd28] ss:$16 sps:$4 sm:$0xff]  }
 0x1d8   : > { %v10955_v42 = vadd.f32 %v2634_v28, %v10561_v38  ;;  %v2636_v62 = vadd.f32 %v2635_v52, %v10839_v9  ;;  %4373 = vmatprep.mubr.bf16.mxu0 %v9146_v2  ;;  %v8750_v38 = vld [vmem:[%s12034_s1 + $0xc8c] ss:$16 sps:$4 sm:$0xff]  }
 0x1d9   : > { %v2637_v39 = vpop.f32.mrf.mxu1  ;;  %v10959_v17 = vpop.f32.mrf.mxu0  ;;  %v8807_v44 = vld [vmem:[%s12034_s1 + $0xd2c] ss:$16 sps:$4 sm:$0xff]  }
 0x1da   : > { %v10962_v6 = vadd.f32 %v2636_v62, %v10580_v58  ;;  %v2638_v63 = vadd.f32 %v2637_v39, %v10848_v23  ;;  %4283 = vmatpush1.bf16.msra.mxu1 %v8742_v41  ;;  %v8810_v28 = vld [vmem:[%s12034_s1 + $0xd0c] ss:$16 sps:$4 sm:$0xff]   ;;  %v8808_v41 = vld [vmem:[%s12034_s1 + $0xd08] ss:$16 sps:$4 sm:$0xff]  }
 0x1db   : > { %v2639_v59 = vpop.f32.mrf.mxu1  ;;  %4284 = vmatprep.subr.bf16.mxu1 %v8747_v56  ;;  %v10971_v9 = vpop.f32.mrf.mxu0 }
 0x1dc   : > { %v10974_v47 = vadd.f32 %v2638_v63, %v10593_v4  ;;  %v2640_v58 = vadd.f32 %v2639_v59, %v10858_v0  ;;  %v8753_v0 = vld [vmem:[%s12034_s1 + $0xc6c] ss:$16 sps:$4 sm:$0xff]  }
 0x1dd   : > { %v2643_v55 = vpop.f32.mrf.mxu1  ;;  %4272 = vmatmul.mubr.bf16.gmra.mxu1 %v3690_v60  ;;  %v10977_v23 = vpop.f32.mrf.mxu0 }
 0x1de   : > { %v10980_v21 = vadd.f32 %v2640_v58, %v10604_v5  ;;  %v2644_v1 = vadd.f32 %v2643_v55, %v10871_v18  ;;  %4285 = vmatpush1.bf16.msra.mxu1 %v8745_v36  ;;  %4312 = vmatprep.mubr.bf16.mxu1 %v10614_v14 }
 0x1df   : > { %v2645_v4 = vpop.f32.mrf.mxu1  ;;  %4286 = vmatprep.subr.bf16.mxu1 %v8750_v38  ;;  %4374 = vmatmul.mubr.bf16.gmra.mxu0 %v3690_v60  ;;  %v10990_v54 = vpop.f32.mrf.mxu0  ;;  %v8787_v60 = vld [vmem:[%s12034_s1 + $0xd88] ss:$16 sps:$4 sm:$0xff]  }
 0x1e0   : > { %v10993_v5 = vadd.f32 %v2644_v1, %v10617_v15  ;;  %v2646_v18 = vadd.f32 %v2645_v4, %v10882_v51  ;;  %4532 = vmatprep.mubr.bf16.mxu0 %v9146_v2  ;;  %v8756_v15 = vld [vmem:[%s12034_s1 + $0xc4c] ss:$16 sps:$4 sm:$0xff]  }
 0x1e1   : > { %v2647_v7 = vpop.f32.mrf.mxu1  ;;  %v10997_v20 = vpop.f32.mrf.mxu0 }
 0x1e2   : > { %v11000_v14 = vadd.f32 %v2646_v18, %v10633_v48  ;;  %4287 = vmatpush1.bf16.msra.mxu1 %v8748_v22  ;;  %v8759_v48 = vld [vmem:[%s12034_s1 + $0xc2c] ss:$16 sps:$4 sm:$0xff]  }
 0x1e3   : > { %4288 = vmatprep.subr.bf16.mxu1 %v8753_v0  ;;  %v2648_v30 = vpop.f32.mrf.mxu1  ;;  %v2749_v51 = vpop.f32.mrf.mxu0 }
 0x1e5   : > { %v2750_v33 = vpop.f32.mrf.mxu0 }
 0x1e6   : > { %4289 = vmatpush1.bf16.msra.mxu1 %v8751_v19 }
 0x1e7   : > { %4290 = vmatprep.subr.bf16.mxu1 %v8756_v15 }
 0x1ea   : > { %4291 = vmatpush1.bf16.msra.mxu1 %v8754_v3 }
 0x1eb   : > { %4292 = vmatprep.subr.bf16.mxu1 %v8759_v48 }
 0x1ee   : > { %4293 = vmatpush1.bf16.msra.mxu1 %v8757_v24 }
 0x1ef   : > { %4294 = vmatprep.subr.bf16.mxu1 %v8765_v57 }
 0x1f2   : > { %4295 = vmatpush1.bf16.msra.mxu1 %v8763_v26 }
 0x1f3   : > { %4296 = vmatprep.subr.bf16.mxu1 %v8771_v29 }
 0x1f6   : > { %4297 = vmatpush2.bf16.msra.mxu1 %v8769_v37 }
 0x1f7   : > { %4298 = vmatprep.subr.bf16.mxu1 %v8777_v40 }
 0x1fa   : > { %4299 = vmatpush2.bf16.msra.mxu1 %v8775_v34 }
 0x1fb   : > { %4300 = vmatprep.subr.bf16.mxu1 %v8783_v35 }
 0x1fe   : > { %4301 = vmatpush2.bf16.msra.mxu1 %v8781_v8 }
 0x1ff   : > { %4302 = vmatprep.subr.bf16.mxu1 %v8789_v11 }
 0x202   : > { %4303 = vmatpush2.bf16.msra.mxu1 %v8787_v60 }
 0x203   : > { %4304 = vmatprep.subr.bf16.mxu1 %v8795_v27 }
 0x206   : > { %4305 = vmatpush2.bf16.msra.mxu1 %v8793_v61 }
 0x207   : > { %4306 = vmatprep.subr.bf16.mxu1 %v8801_v25 }
 0x20a   : > { %4307 = vmatpush2.bf16.msra.mxu1 %v8799_v43 }
 0x20b   : > { %4308 = vmatprep.subr.bf16.mxu1 %v8807_v44  ;;  %v4396_v44 = vlaneseq }
 0x20e   : > { %4309 = vmatpush2.bf16.msra.mxu1 %v8805_v45  ;;  %v4397_v45 = vshrl.u32 %v4396_v44, 7 }
 0x20f   : > { %4310 = vmatprep.subr.bf16.mxu1 %v8810_v28 }
 0x210   : > { %v4406_v28 = vsub.s32 2, %v4397_v45 }
 0x212   : > { %4311 = vmatpush2.bf16.msra.mxu1 %v8808_v41 }
 0x215   : > { %v2684_v52 = vpop.f32.mrf.mxu1  ;;  %4313 = vmatmul.mubr.bf16.vlgmr.msra.gmra.mxu1 %v10811_v32 }
 0x216   : > { %v2736_v56 = vadd.f32 %v10952_v49, %v2684_v52  ;;  %4322 = vmatprep.mubr.bf16.mxu1 %v10590_v50  ;;  %v4410_v52 = vsub.s32 3, %v4397_v45 }
 0x217   : > { %v2686_v62 = vpop.f32.mrf.mxu1  ;;  %v3403_v39 = vpop.f32.mrf.mxu0 }
 0x218   : > { %v11075_v63 = vadd.f32 %v2736_v56, %v10829_v31  ;;  %v2738_v36 = vadd.f32 %v10959_v17, %v2686_v62 }
 0x219   : > { %v2688_v59 = vpop.f32.mrf.mxu1  ;;  %v3405_v38 = vpop.f32.mrf.mxu0 }
 0x21a   : > { %v11079_v58 = vadd.f32 %v2738_v36, %v10842_v10  ;;  %v2740_v55 = vadd.f32 %v10971_v9, %v2688_v59 }
 0x21b   : > { %v2690_v1 = vpop.f32.mrf.mxu1  ;;  %v3407_v32 = vpop.f32.mrf.mxu0 }
 0x21c   : > { %v11083_v49 = vadd.f32 %v2740_v55, %v10854_v16  ;;  %v2742_v50 = vadd.f32 %v10977_v23, %v2690_v1 }
 0x21d   : > { %v2694_v22 = vpop.f32.mrf.mxu1  ;;  %4323 = vmatmul.mubr.bf16.gmra.mxu1 %v10691_v46  ;;  %v3409_v31 = vpop.f32.mrf.mxu0 }
 0x21e   : > { %v11088_v17 = vadd.f32 %v2742_v50, %v10861_v53  ;;  %v2746_v4 = vadd.f32 %v10990_v54, %v2694_v22  ;;  %4573 = vmatprep.mubr.bf16.mxu1 %v9146_v2 }
 0x21f   : > { %v2696_v10 = vpop.f32.mrf.mxu1  ;;  %v3413_v9 = vpop.f32.mrf.mxu0 }
 0x220   : > { %v11093_v0 = vadd.f32 %v2746_v4, %v10876_v12  ;;  %v2748_v16 = vadd.f32 %v10997_v20, %v2696_v10 }
 0x221   : > { %v2698_v18 = vpop.f32.mrf.mxu1  ;;  %v3415_v23 = vpop.f32.mrf.mxu0 }
 0x222   : > { %v11097_v7 = vadd.f32 %v2748_v16, %v10888_v13 }
 0x223   : > { %v2699_v46 = vpop.f32.mrf.mxu1  ;;  %v3417_v19 = vpop.f32.mrf.mxu0 }
 0x225   : > { %v3418_v53 = vpop.f32.mrf.mxu0 }
 0x235   : > { %v3454_v15 = vpop.f32.mrf.mxu1 }
 0x236   : > { %v3455_v30 = vadd.f32 %v3454_v15, %v3403_v39 }
 0x237   : > { %v3456_v54 = vpop.f32.mrf.mxu1  ;;  %v3556_v51 = vpop.f32.mrf.mxu0 }
 0x238   : > { %v11100_v33 = vadd.f32 %v3455_v30, %v10955_v42  ;;  %v3457_v3 = vadd.f32 %v3456_v54, %v3405_v38 }
 0x239   : > { %v3458_v12 = vpop.f32.mrf.mxu1  ;;  %v3558_v48 = vpop.f32.mrf.mxu0 }
 0x23a   : > { %v11103_v20 = vadd.f32 %v3457_v3, %v10962_v6  ;;  %v3459_v24 = vadd.f32 %v3458_v12, %v3407_v32 }
 0x23b   : > { %v3460_v57 = vpop.f32.mrf.mxu1  ;;  %v3560_v13 = vpop.f32.mrf.mxu0 }
 0x23c   : > { %v11106_v26 = vadd.f32 %v3459_v24, %v10974_v47  ;;  %v3461_v29 = vadd.f32 %v3460_v57, %v3409_v31  ;;  %v4402_v24 = vsub.s32 1, %v4397_v45 }
 0x23d   : > { %v3464_v37 = vpop.f32.mrf.mxu1  ;;  %v3562_v40 = vpop.f32.mrf.mxu0 }
 0x23e   : > { %v11109_v34 = vadd.f32 %v3461_v29, %v10980_v21  ;;  %v3465_v42 = vadd.f32 %v3464_v37, %v3413_v9  ;;  %v4394_v21 = vld [vmem:[%s12035_s2] sm:$0xf] }
 0x23f   : > { %v3466_v35 = vpop.f32.mrf.mxu1  ;;  %v3566_v8 = vpop.f32.mrf.mxu0  ;;  %v11123_v41 = vrot.slane %v4394_v21, %v4406_v28 }
 0x240   : > { %v11112_v11 = vadd.f32 %v3465_v42, %v10993_v5  ;;  %v3467_v6 = vadd.f32 %v3466_v35, %v3415_v23  ;;  %v4428_v5 = vld [vmem:[%s12036_s3] sm:$0xf]  ;;  %v4403_v42 = vrot.slane %v4394_v21, %v4402_v24 }
 0x241   : > { %v3468_v60 = vpop.f32.mrf.mxu1  ;;  %v3568_v27 = vpop.f32.mrf.mxu0  ;;  %v11125_v56 = vrot.slane %v4428_v5, %v4406_v28  ;;  %v11129_v62 = vrot.slane %v4428_v5, %v4410_v52 }
 0x242   : > { %v11115_v61 = vadd.f32 %v3467_v6, %v11000_v14  ;;  %v11127_v14 = vrot.slane %v4394_v21, %v4410_v52 }
 0x243   : > { %v3469_v47 = vpop.f32.mrf.mxu1  ;;  %v3570_v25 = vpop.f32.mrf.mxu0 }
 0x244   : > { %v4437_v25 = vrot.slane %v4428_v5, %v4402_v24 }
 0x245   : > { %v3571_v43 = vpop.f32.mrf.mxu0 }
 0x275   : > { %v3505_v39 = vpop.f32.mrf.mxu1 }
 0x276   : > { %v3557_v36 = vadd.f32 %v3556_v51, %v3505_v39 }
 0x277   : > { %v3507_v59 = vpop.f32.mrf.mxu1  ;;  %v4212_v38 = vpop.f32.mrf.mxu0 }
 0x278   : > { %v11132_v55 = vadd.f32 %v3557_v36, %v11075_v63  ;;  %v3559_v1 = vadd.f32 %v3558_v48, %v3507_v59  ;;  %v4398_v48 = vsub.s32 0, %v4397_v45 }
 0x279   : > { %v3509_v32 = vpop.f32.mrf.mxu1  ;;  %v4214_v50 = vpop.f32.mrf.mxu0 }
 0x27a   : > { %v11135_v22 = vadd.f32 %v3559_v1, %v11079_v58  ;;  %v3561_v31 = vadd.f32 %v3560_v13, %v3509_v32  ;;  %v4399_v13 = vrot.slane %v4394_v21, %v4398_v48  ;;  %v4433_v35 = vrot.slane %v4428_v5, %v4398_v48 }
 0x27b   : > { %v3511_v4 = vpop.f32.mrf.mxu1  ;;  %v4216_v10 = vpop.f32.mrf.mxu0 }
 0x27c   : > { %v11138_v9 = vadd.f32 %v3561_v31, %v11083_v49  ;;  %v3563_v16 = vadd.f32 %v3562_v40, %v3511_v4 }
 0x27d   : > { %v3515_v18 = vpop.f32.mrf.mxu1  ;;  %v4218_v23 = vpop.f32.mrf.mxu0 }
 0x27e   : > { %v11141_v46 = vadd.f32 %v3563_v16, %v11088_v17  ;;  %v3567_v63 = vadd.f32 %v3566_v8, %v3515_v18 }
 0x27f   : > { %v3517_v19 = vpop.f32.mrf.mxu1  ;;  %v4222_v53 = vpop.f32.mrf.mxu0 }
 0x280   : > { %v11144_v15 = vadd.f32 %v3567_v63, %v11093_v0  ;;  %v3569_v58 = vadd.f32 %v3568_v27, %v3517_v19 }
 0x281   : > { %v3519_v30 = vpop.f32.mrf.mxu1  ;;  %v4224_v54 = vpop.f32.mrf.mxu0 }
 0x282   : > { %v11147_v51 = vadd.f32 %v3569_v58, %v11097_v7 }
 0x283   : > { %v3520_v49 = vpop.f32.mrf.mxu1  ;;  %v4226_v3 = vpop.f32.mrf.mxu0 }
 0x285   : > { %v4227_v12 = vpop.f32.mrf.mxu0 }
 0x295   : > { %v4263_v57 = vpop.f32.mrf.mxu1 }
 0x296   : > { %v4264_v17 = vadd.f32 %v4263_v57, %v4212_v38 }
 0x297   : > { %v4265_v29 = vpop.f32.mrf.mxu1  ;;  %v11149_v37 = vpop.f32.mrf.mxu0 }
 0x298   : > { %v4382_v0 = vadd.f32 %v4264_v17, %v11100_v33  ;;  %v4266_v40 = vadd.f32 %v4265_v29, %v4214_v50  ;;  %v8813_v29 = vld [vmem:[%s12038_s5 + $0x74] ss:$8 sps:$4 sm:$0xff]  }
 0x299   : > { %v4267_v8 = vpop.f32.mrf.mxu1  ;;  %v11152_v6 = vpop.f32.mrf.mxu0 }
 0x29a   : > { %v4416_v7 = vmul.f32 %v4399_v13, %v4382_v0  ;;  %v4383_v60 = vadd.f32 %v4266_v40, %v11103_v20  ;;  %v4268_v27 = vadd.f32 %v4267_v8, %v4216_v10  ;;  %v11184_v0 = vld [vmem:[%s12037_s4 + $0x4] sm:$0xf]  ;;  %v8811_v40 = vld [vmem:[%s12038_s5 + $0x70] ss:$8 sps:$4 sm:$0xff]   ;;  %v8819_v8 = vld [vmem:[%s12038_s5 + $0x54] ss:$8 sps:$4 sm:$0xff]  }
 0x29b   : > { %v4269_v47 = vpop.f32.mrf.mxu1  ;;  %v11155_v43 = vpop.f32.mrf.mxu0 }
 0x29c   : > { %v4417_v44 = vmul.f32 %v4403_v42, %v4383_v60  ;;  %v4386_v45 = vadd.f32 %v4268_v27, %v11106_v26  ;;  %v4270_v28 = vadd.f32 %v4269_v47, %v4218_v23  ;;  %v4450_v52 = vadd.f32 %v4433_v35, %v4416_v7  ;;  %v8817_v7 = vld [vmem:[%s12038_s5 + $0x50] ss:$8 sps:$4 sm:$0xff]   ;;  %v8822_v60 = vld [vmem:[%s12038_s5 + $0x44] ss:$8 sps:$4 sm:$0xff]   ;;  %v8820_v27 = vld [vmem:[%s12038_s5 + $0x40] ss:$8 sps:$4 sm:$0xff]  }
 0x29d   : > { %v4273_v33 = vpop.f32.mrf.mxu1  ;;  %v11158_v39 = vpop.f32.mrf.mxu0  ;;  %v8825_v47 = vld [vmem:[%s12038_s5 + $0x34] ss:$8 sps:$4 sm:$0xff]  }
 0x29e   : > { %v4420_v21 = vmul.f32 %v4399_v13, %v4386_v45  ;;  %v4387_v36 = vadd.f32 %v4270_v28, %v11109_v34  ;;  %v4274_v59 = vadd.f32 %v4273_v33, %v4222_v53  ;;  %v4451_v1 = vadd.f32 %v4437_v25, %v4417_v44  ;;  %v8828_v44 = vld [vmem:[%s12038_s5 + $0x24] ss:$8 sps:$4 sm:$0xff]   ;;  %v8826_v45 = vld [vmem:[%s12038_s5 + $0x20] ss:$8 sps:$4 sm:$0xff]   ;;  %v8831_v28 = vld [vmem:[%s12038_s5 + $0x14] ss:$8 sps:$4 sm:$0xff]  }
 0x29f   : > { %v4275_v38 = vpop.f32.mrf.mxu1  ;;  %v11161_v20 = vpop.f32.mrf.mxu0  ;;  %v4462_v4 = vmax.f32 %v4450_v52, 0.0  ;;  %v8829_v52 = vld [vmem:[%s12038_s5 + $0x10] ss:$8 sps:$4 sm:$0xff]   ;;  %v8834_v33 = vld [vmem:[%s12038_s5 + $0x4] ss:$8 sps:$4 sm:$0xff]  }
 0x2a0   : > { %v4454_v32 = vadd.f32 %v4433_v35, %v4420_v21  ;;  %v4421_v5 = vmul.f32 %v4403_v42, %v4387_v36  ;;  %v4390_v50 = vadd.f32 %v4274_v59, %v11112_v11  ;;  %v4276_v31 = vadd.f32 %v4275_v38, %v4224_v54  ;;  %v8832_v36 = vld [vmem:[%s12038_s5] ss:$8 sps:$4 sm:$0xff]   ;;  %v8837_v38 = vld [vmem:[%s12038_s5 + $0xf4] ss:$8 sps:$4 sm:$0xff]  }
 0x2a1   : > { %v4277_v26 = vpop.f32.mrf.mxu1  ;;  %v11164_v10 = vpop.f32.mrf.mxu0  ;;  %v4463_v34 = vmax.f32 %v4451_v1, 0.0 }
 0x2a2   : > { %v4466_v16 = vmax.f32 %v4454_v32, 0.0  ;;  %v4424_v18 = vmul.f32 %v4399_v13, %v4390_v50  ;;  %v4391_v23 = vadd.f32 %v4276_v31, %v11115_v61  ;;  %v4455_v63 = vadd.f32 %v4437_v25, %v4421_v5  ;;  %v11172_v13 = vld [vmem:[%s12037_s4] sm:$0xf]  ;;  %v8835_v31 = vld [vmem:[%s12038_s5 + $0xf0] ss:$8 sps:$4 sm:$0xff]  }
 0x2a3   : > { %v4278_v19 = vpop.f32.mrf.mxu1  ;;  %v4379_v53 = vpop.f32.mrf.mxu0 }
 0x2a4   : > { %v4425_v58 = vmul.f32 %v4403_v42, %v4391_v23  ;;  %v4458_v30 = vadd.f32 %v4433_v35, %v4424_v18  ;;  %v4467_v49 = vmax.f32 %v4455_v63, 0.0  ;;  %v4474_v3 = vpack.c.bf16 %v4466_v16, %v4462_v4  ;;  %v8816_v42 = vld [vmem:[%s12038_s5 + $0x64] ss:$8 sps:$4 sm:$0xff]   ;;  %v8814_v35 = vld [vmem:[%s12038_s5 + $0x60] ss:$8 sps:$4 sm:$0xff]  }
 0x2a5   : > { %v4380_v12 = vpop.f32.mrf.mxu0  ;;  %v8840_v16 = vld [vmem:[%s12038_s5 + $0xe4] ss:$8 sps:$4 sm:$0xff]  }
 0x2a6   : > { %v4459_v48 = vadd.f32 %v4437_v25, %v4425_v58  ;;  %v4470_v11 = vmax.f32 %v4458_v30, 0.0  ;;  %v4475_v54 = vpack.c.bf16 %v4467_v49, %v4463_v34  ;;  %v8823_v25 = vld [vmem:[%s12038_s5 + $0x30] ss:$8 sps:$4 sm:$0xff]   ;;  %v8843_v58 = vld [vmem:[%s12038_s5 + $0xd4] ss:$8 sps:$4 sm:$0xff]  }
 0x2a8   : > { %v4471_v24 = vmax.f32 %v4459_v48, 0.0  ;;  %v4478_v57 = vpack.c.bf16 %v4470_v11, %v4470_v11 }
 0x2aa   : > { %v4479_v17 = vpack.c.bf16 %v4471_v24, %v4471_v24  ;;  %v4489_v61 = vsel %vm4487_vm4, %v4478_v57, 0 }
 0x2ac   : > { %7588 = vmatprep.subr.msk.bf16.mxu0 %vm4487_vm4, %v4479_v17 }
 0x2ad   : > { %4513 = vmatpush1.bf16.msra.mxu0 %v4489_v61 }
 0x2ae   : > { %4514 = vmatprep.subr.bf16.mxu0 %v4475_v54 }
 0x2b1   : > { %4515 = vmatpush1.bf16.msra.mxu0 %v4474_v3 }
 0x2b2   : > { %7593 = vmatprep.subr.msk.bf16.mxu0 %vm4487_vm4, %v4479_v17 }
 0x2b4   : > { %7589 = vmatmul.mubr.msk.bf16.vlgmr.msra.gmra.mxu0 %vm4483_vm5, %v11172_v13 }
 0x2b5   : > { %4600 = vmatpush1.bf16.msra.mxu0 %v4489_v61  ;;  %4619 = vmatprep.mubr.bf16.mxu0 %v9146_v2 }
 0x2b6   : > { %4601 = vmatprep.subr.bf16.mxu0 %v4475_v54 }
 0x2b9   : > { %4602 = vmatpush1.bf16.msra.mxu0 %v4474_v3 }
 0x2ba   : > { %5017 = vmatprep.subr.bf16.mxu0 %v8813_v29 }
 0x2bc   : > { %7594 = vmatmul.mubr.msk.bf16.vlgmr.msra.gmra.mxu0 %vm4483_vm5, %v11184_v0 }
 0x2bd   : > { %5018 = vmatpush1.bf16.msra.mxu0 %v8811_v40 }
 0x2be   : > { %5019 = vmatprep.subr.bf16.mxu0 %v8816_v42 }
 0x2c1   : > { %5020 = vmatpush1.bf16.msra.mxu0 %v8814_v35 }
 0x2c2   : > { %5021 = vmatprep.subr.bf16.mxu0 %v8819_v8 }
 0x2c5   : > { %5022 = vmatpush1.bf16.msra.mxu0 %v8817_v7  ;;  %v8849_v7 = vld [vmem:[%s12038_s5 + $0xb4] ss:$8 sps:$4 sm:$0xff]  }
 0x2c6   : > { %5023 = vmatprep.subr.bf16.mxu0 %v8822_v60 }
 0x2c9   : > { %5024 = vmatpush1.bf16.msra.mxu0 %v8820_v27 }
 0x2ca   : > { %5025 = vmatprep.subr.bf16.mxu0 %v8825_v47  ;;  %v8850_v47 = vld [vmem:[%s12038_s5 + $0xa0] ss:$8 sps:$4 sm:$0xff]  }
 0x2cd   : > { %5026 = vmatpush1.bf16.msra.mxu0 %v8823_v25  ;;  %v8852_v25 = vld [vmem:[%s12038_s5 + $0xa4] ss:$8 sps:$4 sm:$0xff]  }
 0x2ce   : > { %5027 = vmatprep.subr.bf16.mxu0 %v8828_v44  ;;  %v8853_v44 = vld [vmem:[%s12038_s5 + $0x90] ss:$8 sps:$4 sm:$0xff]  }
 0x2d1   : > { %5028 = vmatpush1.bf16.msra.mxu0 %v8826_v45  ;;  %v8856_v45 = vld [vmem:[%s12038_s5 + $0x80] ss:$8 sps:$4 sm:$0xff]  }
 0x2d2   : > { %5029 = vmatprep.subr.bf16.mxu0 %v8831_v28  ;;  %v8858_v28 = vld [vmem:[%s12038_s5 + $0x84] ss:$8 sps:$4 sm:$0xff]  }
 0x2d5   : > { %v4314_v21 = vpop.f32.mrf.mxu1  ;;  %5030 = vmatpush1.bf16.msra.mxu0 %v8829_v52  ;;  %v8859_v52 = vld [vmem:[%s12038_s5 + $0x170] ss:$8 sps:$4 sm:$0xff]  }
 0x2d6   : > { %v4366_v59 = vadd.f32 %v11149_v37, %v4314_v21  ;;  %5031 = vmatprep.subr.bf16.mxu0 %v8834_v33  ;;  %v8861_v33 = vld [vmem:[%s12038_s5 + $0x174] ss:$8 sps:$4 sm:$0xff]   ;;  %v8865_v21 = vld [vmem:[%s12038_s5 + $0x160] ss:$8 sps:$4 sm:$0xff]  }
 0x2d7   : > { %v4316_v1 = vpop.f32.mrf.mxu1 }
 0x2d8   : > { %v4384_v32 = vadd.f32 %v4366_v59, %v11132_v55  ;;  %v4368_v5 = vadd.f32 %v11152_v6, %v4316_v1  ;;  %v8871_v59 = vld [vmem:[%s12038_s5 + $0x150] ss:$8 sps:$4 sm:$0xff]   ;;  %v8877_v1 = vld [vmem:[%s12038_s5 + $0x140] ss:$8 sps:$4 sm:$0xff]  }
 0x2d9   : > { %v4318_v50 = vpop.f32.mrf.mxu1  ;;  %5032 = vmatpush1.bf16.msra.mxu0 %v8832_v36  ;;  %v8867_v36 = vld [vmem:[%s12038_s5 + $0x164] ss:$8 sps:$4 sm:$0xff]  }
 0x2da   : > { %v4418_v4 = vmul.f32 %v11123_v41, %v4384_v32  ;;  %v4385_v37 = vadd.f32 %v4368_v5, %v11135_v22  ;;  %v4370_v26 = vadd.f32 %v11155_v43, %v4318_v50  ;;  %5033 = vmatprep.subr.bf16.mxu0 %v8837_v38  ;;  %v8838_v22 = vld [vmem:[%s12038_s5 + $0xe0] ss:$8 sps:$4 sm:$0xff]   ;;  %v8873_v38 = vld [vmem:[%s12038_s5 + $0x154] ss:$8 sps:$4 sm:$0xff]   ;;  %v8879_v32 = vld [vmem:[%s12038_s5 + $0x144] ss:$8 sps:$4 sm:$0xff]  }
 0x2db   : > { %v4320_v55 = vpop.f32.mrf.mxu1  ;;  %v8883_v5 = vld [vmem:[%s12038_s5 + $0x130] ss:$8 sps:$4 sm:$0xff]   ;;  %v8885_v50 = vld [vmem:[%s12038_s5 + $0x134] ss:$8 sps:$4 sm:$0xff]  }
 0x2dc   : > { %v4452_v6 = vadd.f32 %v11125_v56, %v4418_v4  ;;  %v4419_v18 = vmul.f32 %v11127_v14, %v4385_v37  ;;  %v4388_v23 = vadd.f32 %v4370_v26, %v11138_v9  ;;  %v4372_v63 = vadd.f32 %v11158_v39, %v4320_v55  ;;  %v8891_v4 = vld [vmem:[%s12038_s5 + $0x124] ss:$8 sps:$4 sm:$0xff]   ;;  %v8895_v37 = vld [vmem:[%s12038_s5 + $0x110] ss:$8 sps:$4 sm:$0xff]   ;;  %v8897_v26 = vld [vmem:[%s12038_s5 + $0x114] ss:$8 sps:$4 sm:$0xff]  }
 0x2dd   : > { %v4324_v34 = vpop.f32.mrf.mxu1  ;;  %5034 = vmatpush2.bf16.msra.mxu0 %v8835_v31  ;;  %v8889_v31 = vld [vmem:[%s12038_s5 + $0x120] ss:$8 sps:$4 sm:$0xff]   ;;  %v8903_v55 = vld [vmem:[%s12038_s5 + $0x104] ss:$8 sps:$4 sm:$0xff]  }
 0x2de   : > { %v4422_v43 = vmul.f32 %v11123_v41, %v4388_v23  ;;  %v4389_v19 = vadd.f32 %v4372_v63, %v11141_v46  ;;  %v4376_v53 = vadd.f32 %v11161_v20, %v4324_v34  ;;  %5035 = vmatprep.subr.bf16.mxu0 %v8840_v16  ;;  %v4453_v39 = vadd.f32 %v11129_v62, %v4419_v18  ;;  %v8841_v20 = vld [vmem:[%s12038_s5 + $0xd0] ss:$8 sps:$4 sm:$0xff]   ;;  %v8901_v16 = vld [vmem:[%s12038_s5 + $0x100] ss:$8 sps:$4 sm:$0xff]   ;;  %v8909_v18 = vld [vmem:[%s12038_s5 + $0x1b4] ss:$8 sps:$4 sm:$0xff]  }
 0x2df   : > { %v4326_v9 = vpop.f32.mrf.mxu1  ;;  %v4464_v48 = vmax.f32 %v4452_v6, 0.0  ;;  %v8907_v6 = vld [vmem:[%s12038_s5 + $0x1b0] ss:$8 sps:$4 sm:$0xff]   ;;  %v8913_v23 = vld [vmem:[%s12038_s5 + $0x1a0] ss:$8 sps:$4 sm:$0xff]  }
 0x2e0   : > { %v4456_v30 = vadd.f32 %v11125_v56, %v4422_v43  ;;  %v4423_v49 = vmul.f32 %v11127_v14, %v4389_v19  ;;  %v4392_v3 = vadd.f32 %v4376_v53, %v11144_v15  ;;  %v4378_v12 = vadd.f32 %v11164_v10, %v4326_v9  ;;  %v8846_v15 = vld [vmem:[%s12038_s5 + $0xc4] ss:$8 sps:$4 sm:$0xff]   ;;  %v8919_v34 = vld [vmem:[%s12038_s5 + $0x190] ss:$8 sps:$4 sm:$0xff]   ;;  %v8925_v19 = vld [vmem:[%s12038_s5 + $0x180] ss:$8 sps:$4 sm:$0xff]  }
 0x2e1   : > { %v4328_v46 = vpop.f32.mrf.mxu1  ;;  %5036 = vmatpush2.bf16.msra.mxu0 %v8838_v22  ;;  %v4465_v17 = vmax.f32 %v4453_v39, 0.0  ;;  %v8915_v63 = vld [vmem:[%s12038_s5 + $0x1a4] ss:$8 sps:$4 sm:$0xff]   ;;  %v8921_v22 = vld [vmem:[%s12038_s5 + $0x194] ss:$8 sps:$4 sm:$0xff]  }
 0x2e2   : > { %v4468_v11 = vmax.f32 %v4456_v30, 0.0  ;;  %v4426_v54 = vmul.f32 %v11123_v41, %v4392_v3  ;;  %v4393_v24 = vadd.f32 %v4378_v12, %v11147_v51  ;;  %v4457_v57 = vadd.f32 %v11129_v62, %v4423_v49  ;;  %5037 = vmatprep.subr.bf16.mxu0 %v8843_v58  ;;  %v8844_v41 = vld [vmem:[%s12038_s5 + $0xc0] ss:$8 sps:$4 sm:$0xff]   ;;  %v8927_v43 = vld [vmem:[%s12038_s5 + $0x184] ss:$8 sps:$4 sm:$0xff]  }
 0x2e3   : > { %v4329_v10 = vpop.f32.mrf.mxu1  ;;  %v8933_v53 = vld [vmem:[%s12038_s5 + $0x234] ss:$8 sps:$4 sm:$0xff]  }
 0x2e4   : > { %v4427_v61 = vmul.f32 %v11127_v14, %v4393_v24  ;;  %v4460_v29 = vadd.f32 %v11125_v56, %v4426_v54  ;;  %v4469_v40 = vmax.f32 %v4457_v57, 0.0  ;;  %v4476_v42 = vpack.c.bf16 %v4468_v11, %v4464_v48  ;;  %v8847_v56 = vld [vmem:[%s12038_s5 + $0xb0] ss:$8 sps:$4 sm:$0xff]   ;;  %v8870_v24 = vld [vmem:[%s12038_s5 + $0x324] ss:$8 sps:$4 sm:$0xff]  }
 0x2e5   : > { %5038 = vmatpush2.bf16.msra.mxu0 %v8841_v20  ;;  %v8862_v54 = vld [vmem:[%s12038_s5 + $0x330] ss:$8 sps:$4 sm:$0xff]   ;;  %v8876_v10 = vld [vmem:[%s12038_s5 + $0x314] ss:$8 sps:$4 sm:$0xff]  }
 0x2e6   : > { %v4461_v51 = vadd.f32 %v11129_v62, %v4427_v61  ;;  %v4472_v35 = vmax.f32 %v4460_v29, 0.0  ;;  %v4477_v8 = vpack.c.bf16 %v4469_v40, %v4465_v17  ;;  %5039 = vmatprep.subr.bf16.mxu0 %v8846_v15  ;;  %v8868_v15 = vld [vmem:[%s12038_s5 + $0x320] ss:$8 sps:$4 sm:$0xff]   ;;  %v8874_v17 = vld [vmem:[%s12038_s5 + $0x310] ss:$8 sps:$4 sm:$0xff]  }
 0x2e7   : > { %v8882_v61 = vld [vmem:[%s12038_s5 + $0x304] ss:$8 sps:$4 sm:$0xff]   ;;  %v8880_v29 = vld [vmem:[%s12038_s5 + $0x300] ss:$8 sps:$4 sm:$0xff]   ;;  %v8888_v40 = vld [vmem:[%s12038_s5 + $0x2f4] ss:$8 sps:$4 sm:$0xff]  }
 0x2e8   : > { %v4473_v60 = vmax.f32 %v4461_v51, 0.0  ;;  %v4480_v14 = vpack.c.bf16 %v4472_v35, %v4472_v35  ;;  %v8892_v51 = vld [vmem:[%s12038_s5 + $0x2e0] ss:$8 sps:$4 sm:$0xff]   ;;  %v8900_v35 = vld [vmem:[%s12038_s5 + $0x2d4] ss:$8 sps:$4 sm:$0xff]  }
 0x2e9   : > { %5040 = vmatpush2.bf16.msra.mxu0 %v8844_v41  ;;  %v8894_v41 = vld [vmem:[%s12038_s5 + $0x2e4] ss:$8 sps:$4 sm:$0xff]  }
 0x2ea   : > { %v4481_v27 = vpack.c.bf16 %v4473_v60, %v4473_v60  ;;  %5041 = vmatprep.subr.bf16.mxu0 %v8849_v7  ;;  %v4495_v62 = vsel %vm4487_vm4, %v4480_v14, 0  ;;  %v8906_v7 = vld [vmem:[%s12038_s5 + $0x2c4] ss:$8 sps:$4 sm:$0xff]   ;;  %v8904_v60 = vld [vmem:[%s12038_s5 + $0x2c0] ss:$8 sps:$4 sm:$0xff]  }
 0x2eb   : > { %v8912_v14 = vld [vmem:[%s12038_s5 + $0x374] ss:$8 sps:$4 sm:$0xff]  }
 0x2ec   : > { %7590 = vmatprep.subr.msk.bf16.mxu1 %vm4487_vm4, %v4481_v27 }
 0x2ed   : > { %4554 = vmatpush1.bf16.msra.mxu1 %v4495_v62  ;;  %5042 = vmatpush2.bf16.msra.mxu0 %v8847_v56  ;;  %v8910_v56 = vld [vmem:[%s12038_s5 + $0x370] ss:$8 sps:$4 sm:$0xff]  }
 0x2ee   : > { %4555 = vmatprep.subr.bf16.mxu1 %v4477_v8  ;;  %5043 = vmatprep.subr.bf16.mxu0 %v8852_v25  ;;  %v8922_v25 = vld [vmem:[%s12038_s5 + $0x350] ss:$8 sps:$4 sm:$0xff]  }
 0x2f1   : > { %4556 = vmatpush1.bf16.msra.mxu1 %v4476_v42  ;;  %5044 = vmatpush2.bf16.msra.mxu0 %v8850_v47  ;;  %v8924_v47 = vld [vmem:[%s12038_s5 + $0x354] ss:$8 sps:$4 sm:$0xff]  }
 0x2f2   : > { %7595 = vmatprep.subr.msk.bf16.mxu1 %vm4487_vm4, %v4481_v27  ;;  %v8918_v27 = vld [vmem:[%s12038_s5 + $0x364] ss:$8 sps:$4 sm:$0xff]  }
 0x2f4   : > { %7591 = vmatmul.mubr.msk.bf16.vlgmr.msra.gmra.mxu1 %vm4483_vm5, %v11172_v13  ;;  %v8855_v13 = vld [vmem:[%s12038_s5 + $0x94] ss:$8 sps:$4 sm:$0xff]  }
 0x2f5   : > { %4641 = vmatpush1.bf16.msra.mxu1 %v4495_v62  ;;  %4660 = vmatprep.mubr.bf16.mxu1 %v9146_v2  ;;  %v8916_v62 = vld [vmem:[%s12038_s5 + $0x360] ss:$8 sps:$4 sm:$0xff]  }
 0x2f6   : > { %4642 = vmatprep.subr.bf16.mxu1 %v4477_v8  ;;  %5045 = vmatprep.subr.bf16.mxu0 %v8855_v13  ;;  %v8898_v8 = vld [vmem:[%s12038_s5 + $0x2d0] ss:$8 sps:$4 sm:$0xff]   ;;  %v8928_v13 = vld [vmem:[%s12038_s5 + $0x340] ss:$8 sps:$4 sm:$0xff]  }
 0x2f7   : > { %5046 = vmatpush2.bf16.msra.mxu0 %v8853_v44  ;;  %v8930_v44 = vld [vmem:[%s12038_s5 + $0x344] ss:$8 sps:$4 sm:$0xff]  }
 0x2f8   : > { %5047 = vmatprep.subr.bf16.mxu0 %v8858_v28 }
 0x2f9   : > { %4643 = vmatpush1.bf16.msra.mxu1 %v4476_v42  ;;  %v8886_v42 = vld [vmem:[%s12038_s5 + $0x2f0] ss:$8 sps:$4 sm:$0xff]  }
 0x2fa   : > { %5058 = vmatprep.subr.bf16.mxu1 %v8861_v33 }
 0x2fb   : > { %5048 = vmatpush2.bf16.msra.mxu0 %v8856_v45 }
 0x2fc   : > { %7596 = vmatmul.mubr.msk.bf16.vlgmr.msra.gmra.mxu1 %vm4483_vm5, %v11184_v0  ;;  %v8864_v0 = vld [vmem:[%s12038_s5 + $0x334] ss:$8 sps:$4 sm:$0xff]  }
 0x2fd   : > { %5059 = vmatpush1.bf16.msra.mxu1 %v8859_v52  ;;  %5477 = vmatprep.subr.bf16.mxu0 %v8864_v0 }
 0x2fe   : > { %5060 = vmatprep.subr.bf16.mxu1 %v8867_v36 }
 0x301   : > { %5061 = vmatpush1.bf16.msra.mxu1 %v8865_v21 }
 0x302   : > { %5062 = vmatprep.subr.bf16.mxu1 %v8873_v38 }
 0x305   : > { %5063 = vmatpush1.bf16.msra.mxu1 %v8871_v59 }
 0x306   : > { %5064 = vmatprep.subr.bf16.mxu1 %v8879_v32  ;;  %v8931_v32 = vld [vmem:[%s12038_s5 + $0x230] ss:$8 sps:$4 sm:$0xff]  }
 0x309   : > { %5065 = vmatpush1.bf16.msra.mxu1 %v8877_v1 }
 0x30a   : > { %5066 = vmatprep.subr.bf16.mxu1 %v8885_v50 }
 0x30d   : > { %5067 = vmatpush1.bf16.msra.mxu1 %v8883_v5 }
 0x30e   : > { %5068 = vmatprep.subr.bf16.mxu1 %v8891_v4  ;;  %v8934_v4 = vld [vmem:[%s12038_s5 + $0x220] ss:$8 sps:$4 sm:$0xff]  }
 0x311   : > { %5069 = vmatpush1.bf16.msra.mxu1 %v8889_v31  ;;  %v8936_v31 = vld [vmem:[%s12038_s5 + $0x224] ss:$8 sps:$4 sm:$0xff]  }
 0x312   : > { %5070 = vmatprep.subr.bf16.mxu1 %v8897_v26  ;;  %v8937_v26 = vld [vmem:[%s12038_s5 + $0x210] ss:$8 sps:$4 sm:$0xff]  }
 0x315   : > { %5071 = vmatpush1.bf16.msra.mxu1 %v8895_v37  ;;  %v8939_v37 = vld [vmem:[%s12038_s5 + $0x214] ss:$8 sps:$4 sm:$0xff]  }
 0x316   : > { %5072 = vmatprep.subr.bf16.mxu1 %v8903_v55  ;;  %v8940_v55 = vld [vmem:[%s12038_s5 + $0x200] ss:$8 sps:$4 sm:$0xff]  }
 0x319   : > { %5073 = vmatpush1.bf16.msra.mxu1 %v8901_v16  ;;  %v8942_v16 = vld [vmem:[%s12038_s5 + $0x204] ss:$8 sps:$4 sm:$0xff]  }
 0x31a   : > { %5082 = vmatprep.subr.bf16.mxu1 %v8909_v18  ;;  %v8943_v18 = vld [vmem:[%s12038_s5 + $0x1f0] ss:$8 sps:$4 sm:$0xff]  }
 0x31d   : > { %5083 = vmatpush2.bf16.msra.mxu1 %v8907_v6  ;;  %v8945_v6 = vld [vmem:[%s12038_s5 + $0x1f4] ss:$8 sps:$4 sm:$0xff]  }
 0x31e   : > { %5084 = vmatprep.subr.bf16.mxu1 %v8915_v63  ;;  %v8946_v63 = vld [vmem:[%s12038_s5 + $0x1e0] ss:$8 sps:$4 sm:$0xff]  }
 0x321   : > { %5085 = vmatpush2.bf16.msra.mxu1 %v8913_v23  ;;  %v8948_v23 = vld [vmem:[%s12038_s5 + $0x1e4] ss:$8 sps:$4 sm:$0xff]  }
 0x322   : > { %5086 = vmatprep.subr.bf16.mxu1 %v8921_v22  ;;  %v8949_v22 = vld [vmem:[%s12038_s5 + $0x1d0] ss:$8 sps:$4 sm:$0xff]  }
 0x325   : > { %5087 = vmatpush2.bf16.msra.mxu1 %v8919_v34  ;;  %v8951_v34 = vld [vmem:[%s12038_s5 + $0x1d4] ss:$8 sps:$4 sm:$0xff]  }
 0x326   : > { %5088 = vmatprep.subr.bf16.mxu1 %v8927_v43  ;;  %v8954_v43 = vld [vmem:[%s12038_s5 + $0x1c4] ss:$8 sps:$4 sm:$0xff]  }
 0x329   : > { %5089 = vmatpush2.bf16.msra.mxu1 %v8925_v19  ;;  %v8952_v19 = vld [vmem:[%s12038_s5 + $0x1c0] ss:$8 sps:$4 sm:$0xff]  }
 0x32a   : > { %5436 = vmatprep.subr.bf16.mxu1 %v8933_v53  ;;  %v8957_v53 = vld [vmem:[%s12038_s5 + $0x2b4] ss:$8 sps:$4 sm:$0xff]  }
 0x374   : > { %v4534_v58 = vpop.f32.mrf.mxu0 }
 0x376   : > { %v4536_v9 = vpop.f32.mrf.mxu0 }
 0x378   : > { %v4538_v39 = vpop.f32.mrf.mxu0 }
 0x379   : > { %v8958_v39 = vld [vmem:[%s12038_s5 + $0x2a0] ss:$8 sps:$4 sm:$0xff]  }
 0x37a   : > { %v4539_v30 = vpop.f32.mrf.mxu0 }
 0x37b   : > { %v8963_v30 = vld [vmem:[%s12038_s5 + $0x294] ss:$8 sps:$4 sm:$0xff]  }
 0x37c   : > { %v4621_v49 = vpop.f32.mrf.mxu0 }
 0x37d   : > { %v4669_v3 = vmax.f32 %v4534_v58, %v4621_v49  ;;  %v8955_v58 = vld [vmem:[%s12038_s5 + $0x2b0] ss:$8 sps:$4 sm:$0xff]  }
 0x37e   : > { %v4623_v12 = vpop.f32.mrf.mxu0  ;;  %v8961_v49 = vld [vmem:[%s12038_s5 + $0x290] ss:$8 sps:$4 sm:$0xff]  }
 0x37f   : > { %v4670_v48 = vmax.f32 %v4536_v9, %v4623_v12  ;;  %v11391_v46 = vpack.c.bf16 %v4669_v3, %v4669_v3  ;;  %v8960_v9 = vld [vmem:[%s12038_s5 + $0x2a4] ss:$8 sps:$4 sm:$0xff]   ;;  %v8964_v12 = vld [vmem:[%s12038_s5 + $0x280] ss:$8 sps:$4 sm:$0xff]  }
 0x380   : > { %v4625_v20 = vpop.f32.mrf.mxu0  ;;  %v8966_v3 = vld [vmem:[%s12038_s5 + $0x284] ss:$8 sps:$4 sm:$0xff]  }
 0x381   : > { %v11393_v11 = vpack.c.bf16 %v4670_v48, %v4670_v48  ;;  %v8969_v48 = vld [vmem:[%s12038_s5 + $0x274] ss:$8 sps:$4 sm:$0xff]   ;;  %v8967_v20 = vld [vmem:[%s12038_s5 + $0x270] ss:$8 sps:$4 sm:$0xff]  }
 0x382   : > { %v4626_v57 = vpop.f32.mrf.mxu0 }
 0x383   : > { %5049 = vmatprep.mubr.bf16.mxu0 %v11393_v11  ;;  %v8973_v57 = vld [vmem:[%s12038_s5 + $0x250] ss:$8 sps:$4 sm:$0xff]  }
 0x384   : > { %5050 = vmatmul.mubr.bf16.vlgmr.msra.gmra.mxu0 %v11391_v46 }
 0x385   : > { %5478 = vmatpush1.bf16.msra.mxu0 %v8862_v54  ;;  %v8970_v54 = vld [vmem:[%s12038_s5 + $0x260] ss:$8 sps:$4 sm:$0xff]  }
 0x386   : > { %5479 = vmatprep.subr.bf16.mxu0 %v8870_v24  ;;  %v8975_v24 = vld [vmem:[%s12038_s5 + $0x254] ss:$8 sps:$4 sm:$0xff]  }
 0x389   : > { %5480 = vmatpush1.bf16.msra.mxu0 %v8868_v15  ;;  %v8978_v15 = vld [vmem:[%s12038_s5 + $0x244] ss:$8 sps:$4 sm:$0xff]  }
 0x38a   : > { %5481 = vmatprep.subr.bf16.mxu0 %v8876_v10  ;;  %v8976_v10 = vld [vmem:[%s12038_s5 + $0x240] ss:$8 sps:$4 sm:$0xff]  }
 0x38d   : > { %5482 = vmatpush1.bf16.msra.mxu0 %v8874_v17  ;;  %v8979_v17 = vld [vmem:[%s12039_s6 + $0x38] sm:$0xff]  }
 0x38e   : > { %5483 = vmatprep.subr.bf16.mxu0 %v8882_v61  ;;  %v8980_v61 = vld [vmem:[%s12039_s6 + $0xa8] sm:$0xff]  }
 0x391   : > { %5484 = vmatpush1.bf16.msra.mxu0 %v8880_v29  ;;  %v8981_v29 = vld [vmem:[%s12039_s6 + $0x30] sm:$0xff]  }
 0x392   : > { %5485 = vmatprep.subr.bf16.mxu0 %v8888_v40  ;;  %v8982_v40 = vld [vmem:[%s12039_s6 + $0xa0] sm:$0xff]  }
 0x395   : > { %5486 = vmatpush1.bf16.msra.mxu0 %v8886_v42  ;;  %v8984_v42 = vld [vmem:[%s12039_s6 + $0x98] sm:$0xff]  }
 0x396   : > { %5487 = vmatprep.subr.bf16.mxu0 %v8894_v41  ;;  %v8985_v41 = vld [vmem:[%s12039_s6 + $0x20] sm:$0xff]  }
 0x399   : > { %5488 = vmatpush1.bf16.msra.mxu0 %v8892_v51  ;;  %v8986_v51 = vld [vmem:[%s12039_s6 + $0x90] sm:$0xff]  }
 0x39a   : > { %5489 = vmatprep.subr.bf16.mxu0 %v8900_v35  ;;  %v8987_v35 = vld [vmem:[%s12039_s6 + $0x18] sm:$0xff]  }
 0x39d   : > { %5490 = vmatpush1.bf16.msra.mxu0 %v8898_v8  ;;  %v8988_v8 = vld [vmem:[%s12039_s6 + $0x88] sm:$0xff]  }
 0x39e   : > { %5491 = vmatprep.subr.bf16.mxu0 %v8906_v7  ;;  %v8989_v7 = vld [vmem:[%s12039_s6 + $0x10] sm:$0xff]  }
 0x3a1   : > { %5492 = vmatpush1.bf16.msra.mxu0 %v8904_v60  ;;  %v8990_v60 = vld [vmem:[%s12039_s6 + $0x80] sm:$0xff]  }
 0x3a2   : > { %5501 = vmatprep.subr.bf16.mxu0 %v8912_v14  ;;  %v8991_v14 = vld [vmem:[%s12039_s6 + $0x8] sm:$0xff]  }
 0x3a5   : > { %5502 = vmatpush2.bf16.msra.mxu0 %v8910_v56  ;;  %v8992_v56 = vld [vmem:[%s12039_s6 + $0x78] sm:$0xff]  }
 0x3a6   : > { %5503 = vmatprep.subr.bf16.mxu0 %v8918_v27  ;;  %v8993_v27 = vld [vmem:[%s12039_s6] sm:$0xff]  }
 0x3a9   : > { %5504 = vmatpush2.bf16.msra.mxu0 %v8916_v62  ;;  %v8994_v62 = vld [vmem:[%s12039_s6 + $0x70] sm:$0xff]  }
 0x3aa   : > { %5505 = vmatprep.subr.bf16.mxu0 %v8924_v47  ;;  %v8995_v47 = vld [vmem:[%s12039_s6 + $0x68] sm:$0xff]  }
 0x3ad   : > { %5506 = vmatpush2.bf16.msra.mxu0 %v8922_v25  ;;  %v8996_v25 = vld [vmem:[%s12039_s6 + $0xd8] sm:$0xff]  }
 0x3ae   : > { %5507 = vmatprep.subr.bf16.mxu0 %v8930_v44  ;;  %v8997_v44 = vld [vmem:[%s12039_s6 + $0x60] sm:$0xff]  }
 0x3b1   : > { %5508 = vmatpush2.bf16.msra.mxu0 %v8928_v13  ;;  %v8998_v13 = vld [vmem:[%s12039_s6 + $0xd0] sm:$0xff]  }
 0x3b2   : > { %5674 = vmatprep.subr.bf16.mxu0 %v9146_v2 }
 0x3b4   : > { %v4575_v45 = vpop.f32.mrf.mxu1 }
 0x3b6   : > { %v4577_v28 = vpop.f32.mrf.mxu1 }
 0x3b8   : > { %v4579_v52 = vpop.f32.mrf.mxu1 }
 0x3b9   : > { %v9001_v52 = vld [vmem:[%s12039_s6 + $0x50] sm:$0xff]  }
 0x3ba   : > { %v4580_v33 = vpop.f32.mrf.mxu1 }
 0x3bb   : > { %v9002_v33 = vld [vmem:[%s12039_s6 + $0xc0] sm:$0xff]  }
 0x3bc   : > { %v4662_v0 = vpop.f32.mrf.mxu1 }
 0x3bd   : > { %v4671_v21 = vmax.f32 %v4575_v45, %v4662_v0  ;;  %v8999_v45 = vld [vmem:[%s12039_s6 + $0x58] sm:$0xff]  }
 0x3be   : > { %v4664_v36 = vpop.f32.mrf.mxu1 }
 0x3bf   : > { %v4672_v59 = vmax.f32 %v4577_v28, %v4664_v36  ;;  %v4675_v5 = vpack.c.bf16 %v4671_v21, %v4671_v21  ;;  %v9000_v28 = vld [vmem:[%s12039_s6 + $0xc8] sm:$0xff]  }
 0x3c0   : > { %v4666_v38 = vpop.f32.mrf.mxu1  ;;  %v9003_v21 = vld [vmem:[%s12039_s6 + $0x48] sm:$0xff]  }
 0x3c1   : > { %v4676_v1 = vpack.c.bf16 %v4672_v59, %v4672_v59  ;;  %v9004_v59 = vld [vmem:[%s12039_s6 + $0xb8] sm:$0xff]  }
 0x3c2   : > { %v4667_v50 = vpop.f32.mrf.mxu1 }
 0x3c3   : > { %7653 = vmatprep.mubr.msk.bf16.mxu1 %vm5013_vm6, %v4676_v1  ;;  %7766 = vmatprep.mubr.msk.bf16.mxu0 %vm5013_vm6, %v4676_v1  ;;  %v9005_v1 = vld [vmem:[%s12039_s6 + $0x40] sm:$0xff]  }
 0x3c4   : > { %5091 = vmatmul.mubr.bf16.vlgmr.msra.gmra.mxu1 %v4675_v5  ;;  %5510 = vmatmul.mubr.bf16.vlgmr.msra.gmra.mxu0 %v4675_v5  ;;  %v9006_v5 = vld [vmem:[%s12039_s6 + $0xb0] sm:$0xff]  }
 0x3c5   : > { %5437 = vmatpush1.bf16.msra.mxu1 %v8931_v32  ;;  %5468 = vmatprep.mubr.bf16.mxu1 %v11393_v11  ;;  %v8972_v11 = vld [vmem:[%s12038_s5 + $0x264] ss:$8 sps:$4 sm:$0xff]  }
 0x3c6   : > { %5438 = vmatprep.subr.bf16.mxu1 %v8936_v31  ;;  %5675 = vmatpush1.bf16.msra.mxu0 %v8980_v61  ;;  %v9015_v61 = vld [vmem:[%s12039_s6 + $0x168] sm:$0xff]  }
 0x3c7   : > { %5676 = vmatprep.subr.bf16.mxu0 %v9146_v2 }
 0x3c9   : > { %5439 = vmatpush1.bf16.msra.mxu1 %v8934_v4 }
 0x3ca   : > { %5440 = vmatprep.subr.bf16.mxu1 %v8939_v37  ;;  %5677 = vmatpush1.bf16.msra.mxu0 %v8982_v40  ;;  %v9017_v40 = vld [vmem:[%s12039_s6 + $0x160] sm:$0xff]  }
 0x3cb   : > { %5678 = vmatprep.subr.bf16.mxu0 %v9146_v2 }
 0x3cd   : > { %5441 = vmatpush1.bf16.msra.mxu1 %v8937_v26 }
 0x3ce   : > { %5442 = vmatprep.subr.bf16.mxu1 %v8942_v16  ;;  %5679 = vmatpush1.bf16.msra.mxu0 %v8984_v42  ;;  %v9019_v42 = vld [vmem:[%s12039_s6 + $0x158] sm:$0xff]  }
 0x3cf   : > { %5680 = vmatprep.subr.bf16.mxu0 %v9146_v2 }
 0x3d1   : > { %5443 = vmatpush1.bf16.msra.mxu1 %v8940_v55 }
 0x3d2   : > { %5444 = vmatprep.subr.bf16.mxu1 %v8945_v6  ;;  %5681 = vmatpush1.bf16.msra.mxu0 %v8986_v51  ;;  %v9021_v51 = vld [vmem:[%s12039_s6 + $0x150] sm:$0xff]  }
 0x3d3   : > { %5682 = vmatprep.subr.bf16.mxu0 %v9146_v2 }
 0x3d5   : > { %5445 = vmatpush1.bf16.msra.mxu1 %v8943_v18 }
 0x3d6   : > { %5446 = vmatprep.subr.bf16.mxu1 %v8948_v23  ;;  %5683 = vmatpush1.bf16.msra.mxu0 %v8988_v8  ;;  %v9023_v8 = vld [vmem:[%s12039_s6 + $0x1b8] sm:$0xff]  }
 0x3d7   : > { %5684 = vmatprep.subr.bf16.mxu0 %v9146_v2 }
 0x3d9   : > { %5447 = vmatpush1.bf16.msra.mxu1 %v8946_v63 }
 0x3da   : > { %5448 = vmatprep.subr.bf16.mxu1 %v8951_v34  ;;  %5685 = vmatpush1.bf16.msra.mxu0 %v8990_v60  ;;  %v9025_v60 = vld [vmem:[%s12039_s6 + $0x1b0] sm:$0xff]  }
 0x3db   : > { %5686 = vmatprep.subr.bf16.mxu0 %v9146_v2 }
 0x3dd   : > { %5449 = vmatpush1.bf16.msra.mxu1 %v8949_v22 }
 0x3de   : > { %5450 = vmatprep.subr.bf16.mxu1 %v8954_v43  ;;  %5687 = vmatpush1.bf16.msra.mxu0 %v8992_v56  ;;  %v9027_v56 = vld [vmem:[%s12039_s6 + $0x1a8] sm:$0xff]  }
 0x3df   : > { %5688 = vmatprep.subr.bf16.mxu0 %v9146_v2 }
 0x3e1   : > { %5451 = vmatpush1.bf16.msra.mxu1 %v8952_v19 }
 0x3e2   : > { %5452 = vmatprep.subr.bf16.mxu1 %v8957_v53  ;;  %5689 = vmatpush1.bf16.msra.mxu0 %v8994_v62  ;;  %v9029_v62 = vld [vmem:[%s12039_s6 + $0x1a0] sm:$0xff]  }
 0x3e3   : > { %5694 = vmatprep.subr.bf16.mxu0 %v9146_v2 }
 0x3e5   : > { %5453 = vmatpush2.bf16.msra.mxu1 %v8955_v58 }
 0x3e6   : > { %5454 = vmatprep.subr.bf16.mxu1 %v8960_v9  ;;  %5695 = vmatpush2.bf16.msra.mxu0 %v8996_v25  ;;  %v9031_v25 = vld [vmem:[%s12039_s6 + $0x198] sm:$0xff]  }
 0x3e7   : > { %5696 = vmatprep.subr.bf16.mxu0 %v9146_v2 }
 0x3e9   : > { %5455 = vmatpush2.bf16.msra.mxu1 %v8958_v39 }
 0x3ea   : > { %5456 = vmatprep.subr.bf16.mxu1 %v8963_v30  ;;  %5697 = vmatpush2.bf16.msra.mxu0 %v8998_v13  ;;  %v9033_v13 = vld [vmem:[%s12039_s6 + $0x190] sm:$0xff]  }
 0x3eb   : > { %5698 = vmatprep.subr.bf16.mxu0 %v9146_v2 }
 0x3ed   : > { %5457 = vmatpush2.bf16.msra.mxu1 %v8961_v49  ;;  %v9007_v49 = vld [vmem:[%s12039_s6 + $0x188] sm:$0xff]  }
 0x3ee   : > { %5458 = vmatprep.subr.bf16.mxu1 %v8966_v3  ;;  %5699 = vmatpush2.bf16.msra.mxu0 %v9000_v28  ;;  %v9035_v28 = vld [vmem:[%s12039_s6 + $0x268] sm:$0xff]  }
 0x3ef   : > { %5700 = vmatprep.subr.bf16.mxu0 %v9146_v2 }
 0x3f1   : > { %5459 = vmatpush2.bf16.msra.mxu1 %v8964_v12  ;;  %v9008_v12 = vld [vmem:[%s12039_s6 + $0x118] sm:$0xff]  }
 0x3f2   : > { %5460 = vmatprep.subr.bf16.mxu1 %v8969_v48  ;;  %5701 = vmatpush2.bf16.msra.mxu0 %v9002_v33 }
 0x3f3   : > { %5702 = vmatprep.subr.bf16.mxu0 %v9146_v2 }
 0x3f5   : > { %5461 = vmatpush2.bf16.msra.mxu1 %v8967_v20 }
 0x3f6   : > { %5462 = vmatprep.subr.bf16.mxu1 %v8972_v11  ;;  %5703 = vmatpush2.bf16.msra.mxu0 %v9004_v59  ;;  %v9037_v59 = vld [vmem:[%s12039_s6 + $0x260] sm:$0xff]  }
 0x3f7   : > { %5704 = vmatprep.subr.bf16.mxu0 %v9146_v2 }
 0x3f9   : > { %5463 = vmatpush2.bf16.msra.mxu1 %v8970_v54  ;;  %v9009_v54 = vld [vmem:[%s12039_s6 + $0x180] sm:$0xff]  }
 0x3fa   : > { %5464 = vmatprep.subr.bf16.mxu1 %v8975_v24  ;;  %5705 = vmatpush2.bf16.msra.mxu0 %v9006_v5  ;;  %v9010_v24 = vld [vmem:[%s12039_s6 + $0x110] sm:$0xff]  }
 0x3fb   : > { %5961 = vmatprep.subr.bf16.mxu0 %v9146_v2  ;;  %v9041_v5 = vld [vmem:[%s12039_s6 + $0x250] sm:$0xff]  }
 0x3fd   : > { %5465 = vmatpush2.bf16.msra.mxu1 %v8973_v57  ;;  %v9011_v57 = vld [vmem:[%s12039_s6 + $0x178] sm:$0xff]  }
 0x3fe   : > { %5466 = vmatprep.subr.bf16.mxu1 %v8978_v15  ;;  %v9012_v15 = vld [vmem:[%s12039_s6 + $0x108] sm:$0xff]  }
 0x401   : > { %5467 = vmatpush2.bf16.msra.mxu1 %v8976_v10  ;;  %v9013_v10 = vld [vmem:[%s12039_s6 + $0x170] sm:$0xff]  }
 0x402   : > { %5800 = vmatprep.subr.bf16.mxu1 %v9146_v2 }
 0x404   : > { %5469 = vmatmul.mubr.bf16.vlgmr.msra.gmra.mxu1 %v11391_v46  ;;  %v8983_v46 = vld [vmem:[%s12039_s6 + $0x28] sm:$0xff]  }
 0x405   : > { %5801 = vmatpush1.bf16.msra.mxu1 %v8979_v17  ;;  %v9014_v17 = vld [vmem:[%s12039_s6 + $0x100] sm:$0xff]  }
 0x406   : > { %5802 = vmatprep.subr.bf16.mxu1 %v9146_v2 }
 0x409   : > { %5803 = vmatpush1.bf16.msra.mxu1 %v8981_v29  ;;  %v9016_v29 = vld [vmem:[%s12039_s6 + $0xf8] sm:$0xff]  }
 0x40a   : > { %5804 = vmatprep.subr.bf16.mxu1 %v9146_v2 }
 0x40d   : > { %5805 = vmatpush1.bf16.msra.mxu1 %v8983_v46  ;;  %v9018_v46 = vld [vmem:[%s12039_s6 + $0xf0] sm:$0xff]  }
 0x40e   : > { %5806 = vmatprep.subr.bf16.mxu1 %v9146_v2 }
 0x411   : > { %5807 = vmatpush1.bf16.msra.mxu1 %v8985_v41  ;;  %v9020_v41 = vld [vmem:[%s12039_s6 + $0xe8] sm:$0xff]  }
 0x412   : > { %5808 = vmatprep.subr.bf16.mxu1 %v9146_v2 }
 0x415   : > { %5809 = vmatpush1.bf16.msra.mxu1 %v8987_v35  ;;  %v9022_v35 = vld [vmem:[%s12039_s6 + $0xe0] sm:$0xff]  }
 0x416   : > { %5810 = vmatprep.subr.bf16.mxu1 %v9146_v2 }
 0x419   : > { %5811 = vmatpush1.bf16.msra.mxu1 %v8989_v7  ;;  %v9024_v7 = vld [vmem:[%s12039_s6 + $0x148] sm:$0xff]  }
 0x41a   : > { %5812 = vmatprep.subr.bf16.mxu1 %v9146_v2 }
 0x41d   : > { %5813 = vmatpush1.bf16.msra.mxu1 %v8991_v14  ;;  %v9026_v14 = vld [vmem:[%s12039_s6 + $0x140] sm:$0xff]  }
 0x41e   : > { %5814 = vmatprep.subr.bf16.mxu1 %v9146_v2 }
 0x421   : > { %5815 = vmatpush1.bf16.msra.mxu1 %v8993_v27  ;;  %v9028_v27 = vld [vmem:[%s12039_s6 + $0x138] sm:$0xff]  }
 0x422   : > { %5820 = vmatprep.subr.bf16.mxu1 %v9146_v2 }
 0x425   : > { %5821 = vmatpush2.bf16.msra.mxu1 %v8995_v47  ;;  %v9030_v47 = vld [vmem:[%s12039_s6 + $0x130] sm:$0xff]  }
 0x426   : > { %5822 = vmatprep.subr.bf16.mxu1 %v9146_v2 }
 0x429   : > { %5823 = vmatpush2.bf16.msra.mxu1 %v8997_v44  ;;  %v9032_v44 = vld [vmem:[%s12039_s6 + $0x128] sm:$0xff]  }
 0x42a   : > { %5824 = vmatprep.subr.bf16.mxu1 %v9146_v2 }
 0x42d   : > { %5825 = vmatpush2.bf16.msra.mxu1 %v8999_v45  ;;  %v9034_v45 = vld [vmem:[%s12039_s6 + $0x120] sm:$0xff]  }
 0x42e   : > { %5826 = vmatprep.subr.bf16.mxu1 %v9146_v2 }
 0x431   : > { %5827 = vmatpush2.bf16.msra.mxu1 %v9001_v52 }
 0x432   : > { %5828 = vmatprep.subr.bf16.mxu1 %v9146_v2 }
 0x435   : > { %5829 = vmatpush2.bf16.msra.mxu1 %v9003_v21 }
 0x436   : > { %5830 = vmatprep.subr.bf16.mxu1 %v9146_v2 }
 0x439   : > { %5831 = vmatpush2.bf16.msra.mxu1 %v9005_v1  ;;  %v9039_v1 = vld [vmem:[%s12039_s6 + $0x258] sm:$0xff]  }
 0x43a   : > { %6121 = vmatprep.subr.bf16.mxu1 %v9146_v2 }
 0x444   : > { %v5051_v0 = vpop.f32.mrf.mxu0 }
 0x446   : > { %v5053_v36 = vpop.f32.mrf.mxu0 }
 0x448   : > { %v5055_v38 = vpop.f32.mrf.mxu0 }
 0x449   : > { %v9038_v38 = vld [vmem:[%s12039_s6 + $0x1f0] sm:$0xff]  }
 0x44a   : > { %v5056_v32 = vpop.f32.mrf.mxu0 }
 0x44b   : > { %v9040_v32 = vld [vmem:[%s12039_s6 + $0x1e8] sm:$0xff]  }
 0x484   : > { %v5092_v50 = vpop.f32.mrf.mxu1  ;;  %v5511_v31 = vpop.f32.mrf.mxu0 }
 0x485   : > { %v5093_v4 = vadd.f32 %v5092_v50, %v5051_v0  ;;  %v9036_v0 = vld [vmem:[%s12039_s6 + $0x1f8] sm:$0xff]   ;;  %v9042_v50 = vld [vmem:[%s12039_s6 + $0x1e0] sm:$0xff]  }
 0x486   : > { %v5094_v37 = vpop.f32.mrf.mxu1  ;;  %v5513_v26 = vpop.f32.mrf.mxu0 }
 0x487   : > { %v5095_v16 = vadd.f32 %v5094_v37, %v5053_v36  ;;  %v9045_v37 = vld [vmem:[%s12039_s6 + $0x240] sm:$0xff]  }
 0x488   : > { %v5096_v55 = vpop.f32.mrf.mxu1  ;;  %v5515_v6 = vpop.f32.mrf.mxu0 }
 0x489   : > { %v9048_v55 = vld [vmem:[%s12039_s6 + $0x1c8] sm:$0xff]   ;;  %v9049_v6 = vld [vmem:[%s12039_s6 + $0x230] sm:$0xff]  }
 0x48a   : > { %v5097_v18 = vpop.f32.mrf.mxu1  ;;  %v5516_v23 = vpop.f32.mrf.mxu0 }
 0x48b   : > { %v9050_v18 = vld [vmem:[%s12039_s6 + $0x1c0] sm:$0xff]   ;;  %v9051_v23 = vld [vmem:[%s12039_s6 + $0x298] sm:$0xff]  }
 0x4c4   : > { %v5470_v63 = vpop.f32.mrf.mxu1 }
 0x4c5   : > { %v5512_v34 = vadd.f32 %v5511_v31, %v5470_v63  ;;  %v9043_v31 = vld [vmem:[%s12039_s6 + $0x248] sm:$0xff]  }
 0x4c6   : > { %v5472_v22 = vpop.f32.mrf.mxu1  ;;  %v9052_v63 = vld [vmem:[%s12039_s6 + $0x228] sm:$0xff]  }
 0x4c7   : > { %v5518_v43 = vmax.f32 %v5093_v4, %v5512_v34  ;;  %v5514_v19 = vadd.f32 %v5513_v26, %v5472_v22  ;;  %v9044_v4 = vld [vmem:[%s12039_s6 + $0x1d8] sm:$0xff]   ;;  %v9046_v26 = vld [vmem:[%s12039_s6 + $0x1d0] sm:$0xff]   ;;  %v9054_v22 = vld [vmem:[%s12039_s6 + $0x220] sm:$0xff]  }
 0x4c8   : > { %v5474_v53 = vpop.f32.mrf.mxu1  ;;  %v9053_v34 = vld [vmem:[%s12039_s6 + $0x290] sm:$0xff]  }
 0x4c9   : > { %v5519_v58 = vmax.f32 %v5095_v16, %v5514_v19  ;;  %v11675_v9 = vpack.c.bf16 %v5518_v43, %v5518_v43  ;;  %v9047_v16 = vld [vmem:[%s12039_s6 + $0x238] sm:$0xff]   ;;  %v9055_v43 = vld [vmem:[%s12039_s6 + $0x288] sm:$0xff]   ;;  %v9057_v53 = vld [vmem:[%s12039_s6 + $0x280] sm:$0xff]  }
 0x4ca   : > { %v5475_v39 = vpop.f32.mrf.mxu1  ;;  %v9056_v19 = vld [vmem:[%s12039_s6 + $0x218] sm:$0xff]  }
 0x4cb   : > { %v11677_v30 = vpack.c.bf16 %v5519_v58, %v5519_v58  ;;  %v11692_v48 = vshrl.u32 %v11675_v9, 16  ;;  %v5871_v21 = vrot.slane %v11675_v9, 1  ;;  %v9058_v58 = vld [vmem:[%s12039_s6 + $0x210] sm:$0xff]   ;;  %v9059_v39 = vld [vmem:[%s12039_s6 + $0x278] sm:$0xff]  }
 0x4cd   : > { %7824 = vmatprep.mubr.msk.bf16.mxu1 %vm5670_vm7, %v11677_v30  ;;  %v11685_v3 = vshrl.u32 %v11677_v30, 16  ;;  %v5872_v20 = vrot.slane %v11677_v30, 1  ;;  %v6031_v52 = vrot.slane %v11692_v48, 1  ;;  %v6192_v36 = vrot.slane %v11677_v30, 2 }
 0x4ce   : > { %5833 = vmatmul.mubr.bf16.vlgmr.msra.gmra.mxu1 %v11675_v9 }
 0x4cf   : > { %6122 = vmatpush1.bf16.msra.mxu1 %v9007_v49  ;;  %7809 = vmatprep.mubr.msk.bf16.mxu0 %vm5670_vm7, %v11685_v3  ;;  %v6032_v11 = vrot.slane %v11685_v3, 1  ;;  %v6352_v33 = vrot.slane %v11685_v3, 2  ;;  %v9060_v49 = vld [vmem:[%s12039_s6 + $0x208] sm:$0xff]   ;;  %v9061_v3 = vld [vmem:[%s12039_s6 + $0x270] sm:$0xff]  }
 0x4d0   : > { %5707 = vmatmul.mubr.bf16.vlgmr.msra.gmra.mxu0 %v11692_v48  ;;  %6123 = vmatprep.subr.bf16.mxu1 %v9146_v2 }
 0x4d1   : > { %5962 = vmatpush1.bf16.msra.mxu0 %v9008_v12  ;;  %7867 = vmatprep.mubr.msk.bf16.mxu0 %vm5670_vm7, %v5872_v20  ;;  %v9062_v12 = vld [vmem:[%s12039_s6 + $0x200] sm:$0xff]   ;;  %v6351_v20 = vrot.slane %v11692_v48, 2  ;;  %v9064_v48 = vld [vmem:[%s12039_s6 + $0x2d0] sm:$0xff]  }
 0x4d2   : > { %7910 = vmatprep.mubr.msk.bf16.mxu1 %vm5670_vm7, %v6032_v11  ;;  %5963 = vmatprep.subr.bf16.mxu0 %v9146_v2  ;;  %v9063_v11 = vld [vmem:[%s12039_s6 + $0x2d8] sm:$0xff]  }
 0x4d3   : > { %6124 = vmatpush1.bf16.msra.mxu1 %v9009_v54  ;;  %v6191_v54 = vrot.slane %v11675_v9, 2 }
 0x4d4   : > { %6125 = vmatprep.subr.bf16.mxu1 %v9146_v2 }
 0x4d5   : > { %5964 = vmatpush1.bf16.msra.mxu0 %v9010_v24  ;;  %v6512_v24 = vrot.slane %v11677_v30, 3  ;;  %v9066_v30 = vld [vmem:[%s12039_s6 + $0x2c0] sm:$0xff]  }
 0x4d6   : > { %5965 = vmatprep.subr.bf16.mxu0 %v9146_v2 }
 0x4d7   : > { %6126 = vmatpush1.bf16.msra.mxu1 %v9011_v57  ;;  %v9065_v57 = vld [vmem:[%s12039_s6 + $0x2c8] sm:$0xff]  }
 0x4d8   : > { %6127 = vmatprep.subr.bf16.mxu1 %v9146_v2 }
 0x4d9   : > { %5966 = vmatpush1.bf16.msra.mxu0 %v9012_v15  ;;  %v9067_v15 = vld [vmem:[%s12039_s6 + $0x2b8] sm:$0xff]  }
 0x4da   : > { %5967 = vmatprep.subr.bf16.mxu0 %v9146_v2 }
 0x4db   : > { %6128 = vmatpush1.bf16.msra.mxu1 %v9013_v10  ;;  %v9068_v10 = vld [vmem:[%s12039_s6 + $0x2b0] sm:$0xff]  }
 0x4dc   : > { %6129 = vmatprep.subr.bf16.mxu1 %v9146_v2 }
 0x4dd   : > { %5968 = vmatpush1.bf16.msra.mxu0 %v9014_v17  ;;  %v9069_v17 = vld [vmem:[%s12039_s6 + $0x2a8] sm:$0xff]  }
 0x4de   : > { %5969 = vmatprep.subr.bf16.mxu0 %v9146_v2 }
 0x4df   : > { %6130 = vmatpush1.bf16.msra.mxu1 %v9015_v61  ;;  %v9070_v61 = vld [vmem:[%s12039_s6 + $0x2a0] sm:$0xff]  }
 0x4e0   : > { %6131 = vmatprep.subr.bf16.mxu1 %v9146_v2 }
 0x4e1   : > { %5970 = vmatpush1.bf16.msra.mxu0 %v9016_v29  ;;  %v9071_v29 = vld [vmem:[%s12039_s6 + $0x308] sm:$0xff]  }
 0x4e2   : > { %5971 = vmatprep.subr.bf16.mxu0 %v9146_v2 }
 0x4e3   : > { %6132 = vmatpush1.bf16.msra.mxu1 %v9017_v40  ;;  %v9072_v40 = vld [vmem:[%s12039_s6 + $0x300] sm:$0xff]  }
 0x4e4   : > { %6133 = vmatprep.subr.bf16.mxu1 %v9146_v2 }
 0x4e5   : > { %5972 = vmatpush1.bf16.msra.mxu0 %v9018_v46  ;;  %v9073_v46 = vld [vmem:[%s12039_s6 + $0x2f8] sm:$0xff]  }
 0x4e6   : > { %5973 = vmatprep.subr.bf16.mxu0 %v9146_v2 }
 0x4e7   : > { %6134 = vmatpush1.bf16.msra.mxu1 %v9019_v42  ;;  %v9074_v42 = vld [vmem:[%s12039_s6 + $0x2f0] sm:$0xff]  }
 0x4e8   : > { %6135 = vmatprep.subr.bf16.mxu1 %v9146_v2 }
 0x4e9   : > { %5974 = vmatpush1.bf16.msra.mxu0 %v9020_v41  ;;  %v9075_v41 = vld [vmem:[%s12039_s6 + $0x2e8] sm:$0xff]  }
 0x4ea   : > { %5975 = vmatprep.subr.bf16.mxu0 %v9146_v2 }
 0x4eb   : > { %6136 = vmatpush1.bf16.msra.mxu1 %v9021_v51  ;;  %v9076_v51 = vld [vmem:[%s12039_s6 + $0x2e0] sm:$0xff]  }
 0x4ec   : > { %6141 = vmatprep.subr.bf16.mxu1 %v9146_v2 }
 0x4ed   : > { %5976 = vmatpush1.bf16.msra.mxu0 %v9022_v35  ;;  %v6511_v35 = vrot.slane %v11675_v9, 3 }
 0x4ee   : > { %5981 = vmatprep.subr.bf16.mxu0 %v9146_v2 }
 0x4ef   : > { %6142 = vmatpush2.bf16.msra.mxu1 %v9023_v8 }
 0x4f0   : > { %6143 = vmatprep.subr.bf16.mxu1 %v9146_v2 }
 0x4f1   : > { %5982 = vmatpush2.bf16.msra.mxu0 %v9024_v7 }
 0x4f2   : > { %5983 = vmatprep.subr.bf16.mxu0 %v9146_v2 }
 0x4f3   : > { %6144 = vmatpush2.bf16.msra.mxu1 %v9025_v60 }
 0x4f4   : > { %6145 = vmatprep.subr.bf16.mxu1 %v9146_v2 }
 0x4f5   : > { %5984 = vmatpush2.bf16.msra.mxu0 %v9026_v14 }
 0x4f6   : > { %5985 = vmatprep.subr.bf16.mxu0 %v9146_v2 }
 0x4f7   : > { %6146 = vmatpush2.bf16.msra.mxu1 %v9027_v56 }
 0x4f8   : > { %6147 = vmatprep.subr.bf16.mxu1 %v9146_v2 }
 0x4f9   : > { %5986 = vmatpush2.bf16.msra.mxu0 %v9028_v27 }
 0x4fa   : > { %5987 = vmatprep.subr.bf16.mxu0 %v9146_v2 }
 0x4fb   : > { %6148 = vmatpush2.bf16.msra.mxu1 %v9029_v62 }
 0x4fc   : > { %6149 = vmatprep.subr.bf16.mxu1 %v9146_v2 }
 0x4fd   : > { %5988 = vmatpush2.bf16.msra.mxu0 %v9030_v47 }
 0x4fe   : > { %5989 = vmatprep.subr.bf16.mxu0 %v9146_v2 }
 0x4ff   : > { %6150 = vmatpush2.bf16.msra.mxu1 %v9031_v25 }
 0x500   : > { %6151 = vmatprep.subr.bf16.mxu1 %v9146_v2 }
 0x501   : > { %5990 = vmatpush2.bf16.msra.mxu0 %v9032_v44 }
 0x502   : > { %5991 = vmatprep.subr.bf16.mxu0 %v9146_v2 }
 0x503   : > { %6152 = vmatpush2.bf16.msra.mxu1 %v9033_v13 }
 0x504   : > { %6441 = vmatprep.subr.bf16.mxu1 %v9146_v2 }
 0x505   : > { %5992 = vmatpush2.bf16.msra.mxu0 %v9034_v45 }
 0x506   : > { %6154 = vmatmul.mubr.bf16.vlgmr.msra.gmra.mxu1 %v6031_v52  ;;  %6281 = vmatprep.subr.bf16.mxu0 %v9146_v2 }
 0x507   : > { %6442 = vmatpush1.bf16.msra.mxu1 %v9035_v28  ;;  %7996 = vmatprep.mubr.msk.bf16.mxu1 %vm5670_vm7, %v6352_v33 }
 0x508   : > { %5994 = vmatmul.mubr.bf16.vlgmr.msra.gmra.mxu0 %v5871_v21  ;;  %6443 = vmatprep.subr.bf16.mxu1 %v9146_v2 }
 0x509   : > { %6282 = vmatpush1.bf16.msra.mxu0 %v9036_v0  ;;  %7953 = vmatprep.mubr.msk.bf16.mxu0 %vm5670_vm7, %v6192_v36 }
 0x50a   : > { %6283 = vmatprep.subr.bf16.mxu0 %v9146_v2 }
 0x50b   : > { %6444 = vmatpush1.bf16.msra.mxu1 %v9037_v59 }
 0x50c   : > { %6445 = vmatprep.subr.bf16.mxu1 %v9146_v2 }
 0x50d   : > { %6284 = vmatpush1.bf16.msra.mxu0 %v9038_v38 }
 0x50e   : > { %6285 = vmatprep.subr.bf16.mxu0 %v9146_v2 }
 0x50f   : > { %6446 = vmatpush1.bf16.msra.mxu1 %v9039_v1 }
 0x510   : > { %6447 = vmatprep.subr.bf16.mxu1 %v9146_v2 }
 0x511   : > { %6286 = vmatpush1.bf16.msra.mxu0 %v9040_v32 }
 0x512   : > { %6287 = vmatprep.subr.bf16.mxu0 %v9146_v2 }
 0x513   : > { %6448 = vmatpush1.bf16.msra.mxu1 %v9041_v5 }
 0x514   : > { %6449 = vmatprep.subr.bf16.mxu1 %v9146_v2 }
 0x515   : > { %6288 = vmatpush1.bf16.msra.mxu0 %v9042_v50 }
 0x516   : > { %6289 = vmatprep.subr.bf16.mxu0 %v9146_v2 }
 0x517   : > { %6450 = vmatpush1.bf16.msra.mxu1 %v9043_v31 }
 0x518   : > { %6451 = vmatprep.subr.bf16.mxu1 %v9146_v2 }
 0x519   : > { %6290 = vmatpush1.bf16.msra.mxu0 %v9044_v4 }
 0x51a   : > { %6291 = vmatprep.subr.bf16.mxu0 %v9146_v2 }
 0x51b   : > { %6452 = vmatpush1.bf16.msra.mxu1 %v9045_v37 }
 0x51c   : > { %6453 = vmatprep.subr.bf16.mxu1 %v9146_v2 }
 0x51d   : > { %6292 = vmatpush1.bf16.msra.mxu0 %v9046_v26 }
 0x51e   : > { %6293 = vmatprep.subr.bf16.mxu0 %v9146_v2 }
 0x51f   : > { %6454 = vmatpush1.bf16.msra.mxu1 %v9047_v16  ;;  %v6642_v16 = vld [vmem:[%s12040_s7] sm:$0x1] }
 0x520   : > { %6455 = vmatprep.subr.bf16.mxu1 %v9146_v2 }
 0x521   : > { %6294 = vmatpush1.bf16.msra.mxu0 %v9048_v55 }
 0x522   : > { %6295 = vmatprep.subr.bf16.mxu0 %v9146_v2 }
 0x523   : > { %6456 = vmatpush1.bf16.msra.mxu1 %v9049_v6 }
 0x524   : > { %6461 = vmatprep.subr.bf16.mxu1 %v9146_v2 }
 0x525   : > { %6296 = vmatpush1.bf16.msra.mxu0 %v9050_v18 }
 0x526   : > { %6301 = vmatprep.subr.bf16.mxu0 %v9146_v2 }
 0x527   : > { %6462 = vmatpush2.bf16.msra.mxu1 %v9051_v23 }
 0x528   : > { %6463 = vmatprep.subr.bf16.mxu1 %v9146_v2 }
 0x529   : > { %6302 = vmatpush2.bf16.msra.mxu0 %v9052_v63 }
 0x52a   : > { %6303 = vmatprep.subr.bf16.mxu0 %v9146_v2 }
 0x52b   : > { %6464 = vmatpush2.bf16.msra.mxu1 %v9053_v34 }
 0x52c   : > { %6465 = vmatprep.subr.bf16.mxu1 %v9146_v2 }
 0x52d   : > { %6304 = vmatpush2.bf16.msra.mxu0 %v9054_v22 }
 0x52e   : > { %6305 = vmatprep.subr.bf16.mxu0 %v9146_v2 }
 0x52f   : > { %6466 = vmatpush2.bf16.msra.mxu1 %v9055_v43 }
 0x530   : > { %6467 = vmatprep.subr.bf16.mxu1 %v9146_v2 }
 0x531   : > { %6306 = vmatpush2.bf16.msra.mxu0 %v9056_v19 }
 0x532   : > { %6307 = vmatprep.subr.bf16.mxu0 %v9146_v2 }
 0x533   : > { %6468 = vmatpush2.bf16.msra.mxu1 %v9057_v53 }
 0x534   : > { %6469 = vmatprep.subr.bf16.mxu1 %v9146_v2 }
 0x535   : > { %6308 = vmatpush2.bf16.msra.mxu0 %v9058_v58 }
 0x536   : > { %6309 = vmatprep.subr.bf16.mxu0 %v9146_v2 }
 0x537   : > { %6470 = vmatpush2.bf16.msra.mxu1 %v9059_v39 }
 0x538   : > { %6471 = vmatprep.subr.bf16.mxu1 %v9146_v2 }
 0x539   : > { %6310 = vmatpush2.bf16.msra.mxu0 %v9060_v49 }
 0x53a   : > { %6311 = vmatprep.subr.bf16.mxu0 %v9146_v2 }
 0x53b   : > { %6472 = vmatpush2.bf16.msra.mxu1 %v9061_v3 }
 0x53d   : > { %6312 = vmatpush2.bf16.msra.mxu0 %v9062_v12 }
 0x53e   : > { %6474 = vmatmul.mubr.bf16.vlgmr.msra.gmra.mxu1 %v6351_v20  ;;  %6601 = vmatprep.subr.bf16.mxu0 %v9146_v2 }
 0x540   : > { %6314 = vmatmul.mubr.bf16.vlgmr.msra.gmra.mxu0 %v6191_v54 }
 0x541   : > { %6602 = vmatpush1.bf16.msra.mxu0 %v9063_v11  ;;  %8039 = vmatprep.mubr.msk.bf16.mxu0 %vm5670_vm7, %v6512_v24 }
 0x542   : > { %6603 = vmatprep.subr.bf16.mxu0 %v9146_v2 }
 0x545   : > { %6604 = vmatpush1.bf16.msra.mxu0 %v9064_v48 }
 0x546   : > { %6605 = vmatprep.subr.bf16.mxu0 %v9146_v2 }
 0x549   : > { %6606 = vmatpush1.bf16.msra.mxu0 %v9065_v57 }
 0x54a   : > { %6607 = vmatprep.subr.bf16.mxu0 %v9146_v2 }
 0x54d   : > { %6608 = vmatpush1.bf16.msra.mxu0 %v9066_v30 }
 0x54e   : > { %6609 = vmatprep.subr.bf16.mxu0 %v9146_v2 }
 0x551   : > { %6610 = vmatpush1.bf16.msra.mxu0 %v9067_v15 }
 0x552   : > { %6611 = vmatprep.subr.bf16.mxu0 %v9146_v2 }
 0x555   : > { %6612 = vmatpush1.bf16.msra.mxu0 %v9068_v10 }
 0x556   : > { %6613 = vmatprep.subr.bf16.mxu0 %v9146_v2 }
 0x559   : > { %6614 = vmatpush1.bf16.msra.mxu0 %v9069_v17 }
 0x55a   : > { %6615 = vmatprep.subr.bf16.mxu0 %v9146_v2 }
 0x55d   : > { %6616 = vmatpush1.bf16.msra.mxu0 %v9070_v61 }
 0x55e   : > { %6621 = vmatprep.subr.bf16.mxu0 %v9146_v2 }
 0x561   : > { %6622 = vmatpush2.bf16.msra.mxu0 %v9071_v29 }
 0x562   : > { %6623 = vmatprep.subr.bf16.mxu0 %v9146_v2 }
 0x565   : > { %6624 = vmatpush2.bf16.msra.mxu0 %v9072_v40 }
 0x566   : > { %6625 = vmatprep.subr.bf16.mxu0 %v9146_v2 }
 0x569   : > { %6626 = vmatpush2.bf16.msra.mxu0 %v9073_v46 }
 0x56a   : > { %6627 = vmatprep.subr.bf16.mxu0 %v9146_v2 }
 0x56d   : > { %6628 = vmatpush2.bf16.msra.mxu0 %v9074_v42 }
 0x56e   : > { %6629 = vmatprep.subr.bf16.mxu0 %v9146_v2 }
 0x571   : > { %6630 = vmatpush2.bf16.msra.mxu0 %v9075_v41 }
 0x572   : > { %6631 = vmatprep.subr.bf16.mxu0 %v9146_v2 }
 0x575   : > { %6632 = vmatpush2.bf16.msra.mxu0 %v9076_v51 }
 0x578   : > { %6634 = vmatmul.mubr.bf16.vlgmr.msra.gmra.mxu0 %v6511_v35 }
 0x58e   : > { %v5834_v8 = vpop.f32.mrf.mxu1 }
 0x590   : > { %v5708_v7 = vpop.f32.mrf.mxu0  ;;  %v5836_v60 = vpop.f32.mrf.mxu1 }
 0x591   : > { %v5835_v14 = vadd.f32 %v5834_v8, %v5708_v7 }
 0x592   : > { %v5710_v56 = vpop.f32.mrf.mxu0  ;;  %v5837_v27 = vpop.f32.mrf.mxu1 }
 0x594   : > { %v5711_v62 = vpop.f32.mrf.mxu0  ;;  %v5838_v47 = vpop.f32.mrf.mxu1 }
 0x596   : > { %v5712_v25 = vpop.f32.mrf.mxu0 }
 0x5c6   : > { %v6155_v44 = vpop.f32.mrf.mxu1 }
 0x5c8   : > { %v5995_v13 = vpop.f32.mrf.mxu0  ;;  %v6157_v45 = vpop.f32.mrf.mxu1 }
 0x5c9   : > { %v6001_v28 = vadd.f32 %v5995_v13, %v5835_v14 }
 0x5ca   : > { %v5997_v52 = vpop.f32.mrf.mxu0  ;;  %v6158_v2 = vpop.f32.mrf.mxu1 }
 0x5cb   : > { %v6161_v33 = vadd.f32 %v6155_v44, %v6001_v28 }
 0x5cc   : > { %v5998_v0 = vpop.f32.mrf.mxu0  ;;  %v6159_v9 = vpop.f32.mrf.mxu1 }
 0x5ce   : > { %v5999_v21 = vpop.f32.mrf.mxu0 }
 0x5fe   : > { %v6475_v36 = vpop.f32.mrf.mxu1 }
 0x600   : > { %v6315_v59 = vpop.f32.mrf.mxu0  ;;  %v6477_v38 = vpop.f32.mrf.mxu1 }
 0x601   : > { %v6321_v4 = vadd.f32 %v6315_v59, %v6161_v33 }
 0x602   : > { %v6317_v1 = vpop.f32.mrf.mxu0  ;;  %v6478_v32 = vpop.f32.mrf.mxu1 }
 0x603   : > { %v6481_v37 = vadd.f32 %v6475_v36, %v6321_v4 }
 0x604   : > { %v6318_v5 = vpop.f32.mrf.mxu0  ;;  %v6479_v50 = vpop.f32.mrf.mxu1 }
 0x606   : > { %v6319_v31 = vpop.f32.mrf.mxu0 }
 0x638   : > { %v6635_v26 = vpop.f32.mrf.mxu0 }
 0x639   : > { %v6641_v55 = vadd.f32 %v6635_v26, %v6481_v37 }
 0x63a   : > { %v6637_v6 = vpop.f32.mrf.mxu0 }
 0x63b   : > { %v6643_v18 = vadd.f32 %v6642_v16, %v6641_v55 }
 0x63c   : > { %v6638_v23 = vpop.f32.mrf.mxu0 }
 0x63d   : > { %6644 = vst [vmem:[%s300_s17] sm:$0x1] %v6643_v18 }
 0x63e   : > { %v6639_v63 = vpop.f32.mrf.mxu0 }
 0x63f   : > { %9097 = shalt.err (!%p9094_p3)
}
 0x640   : > { %s9098_s12 = scalar_lea.hbm %s11992_s20, 16  ;;  %s9102_s13 = scalar_lea.hbm %s12041_s8, 32 }
 0x641   : > { %p9099_p4 = scmp.ne.s32.totalorder %s11992_s20, %s9098_s12  ;;  %p9103_p9 = scmp.lt.s32.totalorder %s11992_s20, %s12041_s8 }
 0x642   : > { %p9104_p10 = scmp.lt.s32.totalorder %s9102_s13, %s9098_s12 }
 0x643   : > { %p9100_p7 = pnand %p9099_p4, %p9231_p5 }
 0x644   : > { %p9105_p11 = por %p9104_p10, %p9103_p9 }
 0x645   : > { %p9101_p8 = pneg %p9100_p7 }
 0x647   : > { %p9106_p12 = pnand %p9105_p11, %p9101_p8 }
 0x649   : > { %9109 = shalt.err (!%p9106_p12)
}
 0x64a   : > { %8044 = dma.vmem_to_hbm [thread:$0]  (%p9231_p5), %s11994_s19, 16, %s11992_s20, %s6646_s22  }
 0x64b PF: > { %p8050_p13 = scmp.ge.s32.totalorder %s9144_s30, 2  ;;  %s6670_s18 = sand.u32 1, %s9132_s27  }
 0x64c   : > { %s6671_s9 = scalar_lea.sflag [#allocation3], %s6670_s18 }
 0x64d   : > { %p8047_p0 = pnand %p8050_p13, %p9235_p6 }
 0x64f   : > { %p8048_p1 = pneg %p8047_p0 }
 0x651   : > { %9127 = dma.done.wait (%p8048_p1), %s6671_s9, 16  }
 0x652   : > { %9129 = vsyncadd (%p8048_p1), %s6671_s9, 4294967280  ;;  %p18_p2 = scmp.ge.s32.totalorder %s9218_s11, 4   ;;  %s12044_s27 = smov %s9136_s28 }
 0x653   : > { %s12045_s28 = smov %s9140_s29  ;;  %s12046_s29 = smov %s9229_s14 }
 0x654   : > { %s12047_s30 = smov %s9218_s11  ;;  %20 = sbr.rel (!%p18_p2) target bundleno = 3 (0x3), region = 99 }
 0x659   :  { %6675 = vsyncpa [#allocation3], 1 }
 0x65a   :  { %6677 = vsyncpa [#allocation3 + $0x1], 1 }

</bundles_post_ra>
